<compile_context>
chip_gen: v7x
topology: tpu7x:2x2x1
jax: 0.10.0
libtpu: 0.0.40
codegen_flags: <defaults>
</compile_context>

<pallas_src>
import functools

import numpy as np
import jax
import jax.numpy as jnp
from jax.experimental import pallas as pl
from jax.experimental.pallas import tpu as pltpu

# ----------------------------- configuration --------------------------------
V_TYPES = 6                      # v_types
TYPE_ARITY = [1, 0, 2, 2, 1, 0]  # default arity
MAX_V = 8                        # max_v
START_IDX = 0
END_IDX = 1
H = 32                           # h_dim (small for the demo; 4H == 128 lanes)
Z = 8                            # z_dim
BETA = 0.001
EPS = 0.01                       # reparameterize eps

BP = 8                           # per-vertex/step batch block rows (sublane-aligned)
XK = 16                          # padded GRU-input contraction dim (V_TYPES=6 -> 16)

# encoder slab lane offsets (B, 128): [ adjT rows | part | last_sel | noise ]
ADJ_OFF = 0
PART_OFF = MAX_V * MAX_V          # 64
LAST_OFF = PART_OFF + MAX_V       # 72
NOISE_OFF = LAST_OFF + MAX_V      # 80  (+Z = 88 <= 128)

# decoder per-step slab lane offsets (T, B, 128)
DLS_OFF = 0                       # last_sel
DVS_OFF = MAX_V                   # vpred_sel
DPM_OFF = 2 * MAX_V               # pmask
DTG_OFF = 3 * MAX_V               # tgt (V_TYPES-2 lanes)
DPART_OFF = 4 * MAX_V             # part (1 lane)

# bf16 weight slab row offsets (all multiples of 16 = bf16 sublane tile)
WXE_OFF = 0
WHE_OFF = WXE_OFF + XK            # 16
WXD_OFF = WHE_OFF + H             # 48
WHD_OFF = WXD_OFF + XK            # 64
WGM_OFF = WHD_OFF + H             # 96
WMS_OFF = WGM_OFF + H             # 128
W1A_OFF = WMS_OFF + H             # 160
W1B_OFF = W1A_OFF + H             # 192
W2_OFF = W1B_OFF + H              # 224
WB_ROWS = W2_OFF + 4 * H          # 352

# bias slab rows (8, 128) f32
B_E_ROW, B_D_ROW, B_GM_ROW, B_MS_ROW, B_FL_ROW, B_1_ROW, B_2_ROW = range(7)


# --------------------------- in-kernel math helpers ---------------------------
def _sigmoid(x):
    # sigmoid(x) == 0.5*(1 + tanh(x/2)); tanh runs on the EUP, no divide, no inf.
    return 0.5 * (jnp.tanh(0.5 * x) + 1.0)


def _bdot(a, w):
    # bf16 operands, f32 MXU accumulation.
    return jnp.dot(a.astype(jnp.bfloat16), w, preferred_element_type=jnp.float32)


def _tree_sum(terms):
    # pairwise reduction: dependence depth log2(N) instead of N serial adds.
    terms = list(terms)
    while len(terms) > 1:
        nxt = [terms[i] + terms[i + 1] for i in range(0, len(terms) - 1, 2)]
        if len(terms) % 2 == 1:
            nxt.append(terms[-1])
        terms = nxt
    return terms[0]


# ------------------------------ fused kernel ----------------------------------
def logic_vae_kernel(v_rows,      # static tuple: decoder row index per step
                     enc_x_ref, dec_x_ref, enc_slab_ref, dec_slab_ref,
                     wb_ref, bias_ref, wfl_ref,
                     loss_ref):
    B = enc_slab_ref.shape[0]
    N = enc_x_ref.shape[0] // BP
    Hs = H
    Vt = V_TYPES - 2

    # ---- weights: static, tile-aligned slices of the packed bf16 slab ----
    wx_e = wb_ref[WXE_OFF:WXE_OFF + XK, :]
    wh_e = wb_ref[WHE_OFF:WHE_OFF + Hs, :]
    wx_d = wb_ref[WXD_OFF:WXD_OFF + XK, :]
    wh_d = wb_ref[WHD_OFF:WHD_OFF + Hs, :]
    wgm = wb_ref[WGM_OFF:WGM_OFF + Hs, 0:2 * Hs]
    wms = wb_ref[WMS_OFF:WMS_OFF + Hs, 0:2 * Z]
    w1a = wb_ref[W1A_OFF:W1A_OFF + Hs, :]
    w1b = wb_ref[W1B_OFF:W1B_OFF + Hs, :]
    w2 = wb_ref[W2_OFF:W2_OFF + 4 * Hs, 0:Vt]

    b_e = bias_ref[B_E_ROW:B_E_ROW + 1, :]
    b_d = bias_ref[B_D_ROW:B_D_ROW + 1, :]
    bgm = bias_ref[B_GM_ROW:B_GM_ROW + 1, 0:2 * Hs]
    bms = bias_ref[B_MS_ROW:B_MS_ROW + 1, 0:2 * Z]
    bfl = bias_ref[B_FL_ROW:B_FL_ROW + 1, 0:Hs]
    b1 = bias_ref[B_1_ROW:B_1_ROW + 1, :]
    b2 = bias_ref[B_2_ROW:B_2_ROW + 1, 0:Vt]

    # ---- batched non-recurrent GRU input projections (bias folded in) ----
    # One MXU pass each; serial GRU chain keeps only the h @ W_hh matmul.
    xg_enc = jnp.dot(enc_x_ref[...], wx_e, preferred_element_type=jnp.float32) + b_e
    xg_dec = jnp.dot(dec_x_ref[...], wx_d, preferred_element_type=jnp.float32) + b_d

    enc_slab = enc_slab_ref[...]

    def gru(xg, hprev, wh):
        # PyTorch GRUCell semantics, packed gate columns [r | z | n_x | n_h].
        g = xg + _bdot(hprev, wh)
        r = _sigmoid(g[:, :Hs])
        zg = _sigmoid(g[:, Hs:2 * Hs])
        n = jnp.tanh(g[:, 2 * Hs:3 * Hs] + r * g[:, 3 * Hs:4 * Hs])
        return (1.0 - zg) * n + zg * hprev

    def message(h):
        # fused gate_forward | map_forward: one (H, 2H) matmul (gate has bias).
        gm = _bdot(h, wgm) + bgm
        return _sigmoid(gm[:, :Hs]) * gm[:, Hs:2 * Hs]

    # ================= encoder: topological sweep, value-carried h ===========
    # (edges are assumed topologically ordered: predecessors j < v)
    h_list, msg_list = [], []
    for v in range(N):
        if v == 0:
            agg = jnp.zeros((B, Hs), jnp.float32)      # hidden_agg_zero
        else:
            agg = _tree_sum([
                enc_slab[:, ADJ_OFF + v * N + j:ADJ_OFF + v * N + j + 1] * msg_list[j]
                for j in range(v)])
        hnew = gru(xg_enc[v * BP:v * BP + B, :], agg, wh_e)
        hv = enc_slab[:, PART_OFF + v:PART_OFF + v + 1] * hnew   # padded rows -> 0
        h_list.append(hv)
        if v < N - 1:                                  # last vertex's message never consumed
            msg_list.append(message(hv))

    # graph state = hidden of each graph's last vertex
    hg = _tree_sum([enc_slab[:, LAST_OFF + v:LAST_OFF + v + 1] * h_list[v]
                    for v in range(N)])
    ms = _bdot(hg, wms) + bms                          # fused [mlp_mean | mlp_std]
    mu = ms[:, :Z]
    sigma = ms[:, Z:2 * Z]

    # ============ reparameterize + KLD (exp(0.5*sigma) computed once) ========
    e = jnp.exp(0.5 * sigma)
    zlat = enc_slab[:, NOISE_OFF:NOISE_OFF + Z] * EPS * e + mu
    kld = -0.5 * jnp.sum(1.0 + sigma - mu * mu - e * e, keepdims=True)

    hz = jnp.tanh(_bdot(zlat, wfl_ref[...]) + bfl)     # from_latent

    # ================== teacher-forced decoder NLL ===========================
    h0 = gru(xg_dec[0:B, :], hz, wh_d)                 # GRU(start one-hot, from_latent)
    h_vert = {0: h0}                                   # value-carried hidden per row
    msg_vert = {0: message(h0)}                        # incremental gated messages

    ll = jnp.zeros((1, 1), jnp.float32)
    for t, vrow in enumerate(v_rows):
        rows = sorted(h_vert.keys())                   # rows present so far (static)
        st = dec_slab_ref[t]                           # (B, 128) per-step selector slab

        hg_d = _tree_sum([st[:, DLS_OFF + r:DLS_OFF + r + 1] * h_vert[r] for r in rows])
        hv_d = _tree_sum([st[:, DVS_OFF + r:DVS_OFF + r + 1] * h_vert[r] for r in rows])

        # vertex_type MLP without concat: w1 split host-side into w1a/w1b halves
        s1 = jnp.maximum(_bdot(hg_d, w1a) + _bdot(hv_d, w1b) + b1, 0.0)
        scores = _bdot(s1, w2) + b2
        m = jnp.max(scores, axis=1, keepdims=True)
        vll = scores - (m + jnp.log(jnp.sum(jnp.exp(scores - m), axis=1, keepdims=True)))
        ll = ll + jnp.sum(-vll * st[:, DTG_OFF:DTG_OFF + Vt], keepdims=True)

        # decoder message_to at row vrow: masked tree-sum of precomputed messages
        agg = _tree_sum([st[:, DPM_OFF + r:DPM_OFF + r + 1] * msg_vert[r] for r in rows])
        hnew = gru(xg_dec[(t + 1) * BP:(t + 1) * BP + B, :], agg, wh_d)
        hrow = st[:, DPART_OFF:DPART_OFF + 1] * hnew   # inactive graphs keep zero row
        h_vert[vrow] = hrow
        if t < len(v_rows) - 1:
            msg_vert[vrow] = message(hrow)

    total = ll + BETA * kld
    # lane-dense, unmasked output block; host reads [0, 0].
    loss_ref[...] = jnp.zeros((8, 128), jnp.float32) + total


# ------------------------------ host-side glue --------------------------------
def run_logic_vae(enc_x, dec_x, enc_slab, dec_slab, wb, bias, wfl, v_rows):
    assert dec_slab.shape[0] == len(v_rows)
    kern = functools.partial(logic_vae_kernel, tuple(int(v) for v in v_rows))
    vm = pl.BlockSpec(memory_space=pltpu.MemorySpace.VMEM)
    return pl.pallas_call(
        kern,
        out_shape=jax.ShapeDtypeStruct((8, 128), jnp.float32),
        in_specs=[vm] * 7,
        out_specs=vm,
    )(enc_x, dec_x, enc_slab, dec_slab, wb, bias, wfl)


# ------------------------------ demo graph data --------------------------------
def build_graphs():
    # graph 0: start -> AND -> (lit, lit) -> end   (5 vertices)
    t0 = [0, 2, 5, 5, 1]
    e0 = [(0, 1), (1, 2), (1, 3), (2, 4), (3, 4)]
    # graph 1: start -> NOT -> lit -> end          (4 vertices)
    t1 = [0, 4, 5, 1]
    e1 = [(0, 1), (1, 2), (2, 3)]
    graphs = []
    for ts, es in [(t0, e0), (t1, e1)]:
        n = len(ts)
        adj = np.zeros((n, n), np.float32)
        for j, v in es:
            adj[j, v] = 1.0
        attr = np.zeros((n, V_TYPES), np.float32)
        for v, tt in enumerate(ts):
            attr[v, tt] = 1.0
        graphs.append((adj, attr))
    return graphs


def prep_encoder_inputs(graphs, Npad, noise):
    """enc_x: (Npad*BP, XK) one-hot vertex types (per-vertex batch blocks of BP rows).
    enc_slab: (B, 128) = [adjT rows | part | last_sel | noise] lane-dense slab."""
    B = len(graphs)
    enc_x = np.zeros((Npad * BP, XK), np.float32)
    slab = np.zeros((B, 128), np.float32)
    for b, (adj, attr) in enumerate(graphs):
        n = adj.shape[0]
        for v in range(n):
            tt = int(np.nonzero(attr[v])[0][0])
            enc_x[v * BP + b, tt] = 1.0
            slab[b, ADJ_OFF + v * Npad:ADJ_OFF + v * Npad + n] = adj[:, v]  # preds of v
        slab[b, PART_OFF:PART_OFF + n] = 1.0
        slab[b, LAST_OFF + n - 1] = 1.0
        slab[b, NOISE_OFF:NOISE_OFF + Z] = noise[b]
    return enc_x, slab


def prep_decoder_inputs(sim, B, Npad):
    """dec_x: ((T+1)*BP, XK) — block 0 = start one-hot, block t+1 = teacher x at step t.
    dec_slab: (T, B, 128) = [last_sel | vpred_sel | pmask | tgt | part] per step."""
    T = len(sim['v_rows'])
    dec_x = np.zeros(((T + 1) * BP, XK), np.float32)
    for b in range(B):
        dec_x[b, START_IDX] = 1.0
    for t in range(T):
        for b in range(B):
            dec_x[(t + 1) * BP + b, :V_TYPES] = sim['x_steps'][t][b]
    slab = np.zeros((T, B, 128), np.float32)
    slab[:, :, DLS_OFF:DLS_OFF + Npad] = sim['last_sel']
    slab[:, :, DVS_OFF:DVS_OFF + Npad] = sim['vpred_sel']
    slab[:, :, DPM_OFF:DPM_OFF + Npad] = sim['pmask']
    slab[:, :, DTG_OFF:DTG_OFF + (V_TYPES - 2)] = sim['tgt']
    slab[:, :, DPART_OFF:DPART_OFF + 1] = sim['part']
    return dec_x, slab


def simulate_loss_bookkeeping(graphs, Npad):
    """Replicates the teacher-forced Python bookkeeping of LogicVAE.loss on the
    host (it depends only on the true graphs, not on network outputs) and emits
    dense per-step selector masks for the Pallas loss path."""
    B = len(graphs)
    n_vert = [g[0].shape[0] for g in graphs]
    Vt = V_TYPES - 2
    g_adj = [np.zeros((1, 1), np.float32) for _ in range(B)]
    g_attr = [np.zeros((1, V_TYPES), np.float32) for _ in range(B)]
    for a in g_attr:
        a[0, 0] = 1.0
    completed = [False] * B
    complete_vertexes = [set() for _ in range(B)]
    current_nodes = [1] * B
    steps = []
    for v_true in range(1, max(n_vert)):
        if sum(completed) == B:
            break
        true_types = []
        for i, (_, attr_t) in enumerate(graphs):
            if v_true < n_vert[i]:
                true_types.append(int(np.nonzero(attr_t[v_true, :])[0][0]))
            else:
                true_types.append(START_IDX)
        last_sel = np.zeros((B, Npad), np.float32)
        vpred_sel = np.zeros((B, Npad), np.float32)
        tgt = np.zeros((B, Vt), np.float32)
        v_pred = []
        for i in range(B):
            glen = g_adj[i].shape[0]
            last_sel[i, glen - 1] = 1.0
            diff = np.setdiff1d(np.arange(current_nodes[i]),
                                np.array(sorted(complete_vertexes[i])))
            vp = int(np.max(diff)) if len(diff) > 0 else -1
            v_pred.append(vp)
            if vp < glen:  # get_vertexes_state: zeros if vp >= graph size
                idx = vp if vp >= 0 else glen - 1      # negative index == last row
                vpred_sel[i, idx] = 1.0
            if (not completed[i]) and true_types[i] != END_IDX and true_types[i] != START_IDX:
                tgt[i, true_types[i] - 2] = 1.0
        # structural (teacher-forced) updates
        for i in range(B):
            if completed[i]:
                continue
            tt = true_types[i]
            vp = v_pred[i]
            if tt != END_IDX and tt != START_IDX:
                current_nodes[i] += 1
                if tt >= len(TYPE_ARITY) - 1:
                    complete_vertexes[i].add(v_true)
                type_v_p = int(np.nonzero(g_attr[i][vp, :])[0][0])
                type_v_pred = len(TYPE_ARITY) - 1 if type_v_p >= len(TYPE_ARITY) - 1 else type_v_p
                n_edge = int(np.count_nonzero(g_adj[i][vp, :]))
                if n_edge == TYPE_ARITY[type_v_pred]:
                    complete_vertexes[i].add(vp)
            if tt != START_IDX:
                new_row = np.zeros((V_TYPES,), np.float32)
                new_row[tt] = 1.0
                g_attr[i] = np.concatenate([g_attr[i], new_row[None, :]], axis=0)
                old = g_adj[i]
                new_adj = np.zeros((old.shape[0] + 1, old.shape[1] + 1), np.float32)
                new_adj[:-1, :-1] = old
                g_adj[i] = new_adj
                g_adj[i][vp, v_true] = 1.0 if vp != -1 else 0.0
            if tt == END_IDX:
                leaf_rows = np.where(~np.any(g_attr[i][:, :5] != 0, axis=1))[0]
                g_adj[i][leaf_rows, -1] = 1.0
                current_nodes[i] += 1
                completed[i] = True
                complete_vertexes[i].add(v_true)
            if current_nodes[i] == len(complete_vertexes[i]) and len(complete_vertexes[i]) > 1:
                completed[i] = True
        # inputs for message_to(g_batch, v_true, gru_dec, ...)
        part = np.zeros((B, 1), np.float32)
        x_step = np.zeros((B, V_TYPES), np.float32)
        pmask = np.zeros((B, Npad), np.float32)
        for i in range(B):
            glen = g_adj[i].shape[0]
            if glen > v_true:
                part[i, 0] = 1.0
                x_step[i, :] = g_attr[i][v_true, :]
                pmask[i, :glen] = (g_adj[i][:, v_true] == 1).astype(np.float32)
        steps.append((v_true, last_sel, vpred_sel, tgt, x_step, pmask, part))

    return dict(
        v_rows=tuple(s[0] for s in steps),
        last_sel=np.stack([s[1] for s in steps], 0),
        vpred_sel=np.stack([s[2] for s in steps], 0),
        tgt=np.stack([s[3] for s in steps], 0),
        x_steps=np.stack([s[4] for s in steps], 0),
        pmask=np.stack([s[5] for s in steps], 0),
        part=np.stack([s[6] for s in steps], 0),
    )


# ------------------------------- parameters -----------------------------------
def init_params(key):
    ks = jax.random.split(key, 20)

    def w(k, shape):
        return jax.random.normal(k, shape, jnp.float32) * 0.1

    p = {}
    # encoder GRU (weights stored transposed: (in, out)), gate order (r, z, n)
    p['wih_e'] = w(ks[0], (V_TYPES, 3 * H))
    p['whh_e'] = w(ks[1], (H, 3 * H))
    p['bih_e'] = w(ks[2], (1, 3 * H))
    p['bhh_e'] = w(ks[3], (1, 3 * H))
    # gate_forward / map_forward (vertex_state_size == H since v_id=False)
    p['wg'] = w(ks[4], (H, H))
    p['bg'] = w(ks[5], (1, H))
    p['wm'] = w(ks[6], (H, H))
    # mlp_mean / mlp_std
    p['wmu'] = w(ks[7], (H, Z))
    p['bmu'] = w(ks[8], (1, Z))
    p['wsig'] = w(ks[9], (H, Z))
    p['bsig'] = w(ks[10], (1, Z))
    # from_latent
    p['wfl'] = w(ks[11], (Z, H))
    p['bfl'] = w(ks[12], (1, H))
    # decoder GRU
    p['wih_d'] = w(ks[13], (V_TYPES, 3 * H))
    p['whh_d'] = w(ks[14], (H, 3 * H))
    p['bih_d'] = w(ks[15], (1, 3 * H))
    p['bhh_d'] = w(ks[16], (1, 3 * H))
    # vertex_type MLP
    p['w1'] = w(ks[17], (2 * H, 4 * H))
    p['b1'] = w(ks[18], (1, 4 * H))
    p['w2'] = w(ks[19], (4 * H, V_TYPES - 2))
    p['b2'] = jnp.zeros((1, V_TYPES - 2), jnp.float32)
    return p


def pack_params(p):
    """Packs raw weights into one tile-aligned bf16 weight slab + one f32 bias slab.

    GRU gate columns of the packed (.,4H) blocks: [r | z | n_x | n_h] so that
    n = tanh(W_in x + b_in + r*(W_hn h + b_hn)) matches nn.GRUCell; the full
    fused bias is folded into the batched x-projection inside the kernel."""
    pn = {k: np.asarray(v, np.float32) for k, v in p.items()}

    def pack_gru(wih, whh, bih, bhh):
        Hs = whh.shape[0]
        wx = np.zeros((XK, 4 * Hs), np.float32)
        wx[:wih.shape[0], :2 * Hs] = wih[:, :2 * Hs]
        wx[:wih.shape[0], 2 * Hs:3 * Hs] = wih[:, 2 * Hs:]
        wh = np.zeros((Hs, 4 * Hs), np.float32)
        wh[:, :2 * Hs] = whh[:, :2 * Hs]
        wh[:, 3 * Hs:] = whh[:, 2 * Hs:]
        bb = np.zeros((1, 4 * Hs), np.float32)
        bb[:, :2 * Hs] = bih[:, :2 * Hs] + bhh[:, :2 * Hs]
        bb[:, 2 * Hs:3 * Hs] = bih[:, 2 * Hs:]
        bb[:, 3 * Hs:] = bhh[:, 2 * Hs:]
        return wx, wh, bb

    wx_e, wh_e, b_e = pack_gru(pn['wih_e'], pn['whh_e'], pn['bih_e'], pn['bhh_e'])
    wx_d, wh_d, b_d = pack_gru(pn['wih_d'], pn['whh_d'], pn['bih_d'], pn['bhh_d'])

    wb = np.zeros((WB_ROWS, 128), np.float32)
    wb[WXE_OFF:WXE_OFF + XK, :] = wx_e
    wb[WHE_OFF:WHE_OFF + H, :] = wh_e
    wb[WXD_OFF:WXD_OFF + XK, :] = wx_d
    wb[WHD_OFF:WHD_OFF + H, :] = wh_d
    wb[WGM_OFF:WGM_OFF + H, 0:H] = pn['wg']           # gate_forward
    wb[WGM_OFF:WGM_OFF + H, H:2 * H] = pn['wm']       # map_forward (no bias)
    wb[WMS_OFF:WMS_OFF + H, 0:Z] = pn['wmu']
    wb[WMS_OFF:WMS_OFF + H, Z:2 * Z] = pn['wsig']
    wb[W1A_OFF:W1A_OFF + H, :] = pn['w1'][:H, :]      # hg half of vertex_type w1
    wb[W1B_OFF:W1B_OFF + H, :] = pn['w1'][H:, :]      # hv half
    wb[W2_OFF:W2_OFF + 4 * H, 0:V_TYPES - 2] = pn['w2']

    bias = np.zeros((8, 128), np.float32)
    bias[B_E_ROW, :4 * H] = b_e[0]
    bias[B_D_ROW, :4 * H] = b_d[0]
    bias[B_GM_ROW, :H] = pn['bg'][0]
    bias[B_MS_ROW, :Z] = pn['bmu'][0]
    bias[B_MS_ROW, Z:2 * Z] = pn['bsig'][0]
    bias[B_FL_ROW, :H] = pn['bfl'][0]
    bias[B_1_ROW, :4 * H] = pn['b1'][0]
    bias[B_2_ROW, :V_TYPES - 2] = pn['b2'][0]

    wfl = jnp.asarray(pn['wfl'], jnp.bfloat16)        # (Z, H) kept as its own small operand
    return jnp.asarray(wb, jnp.bfloat16), jnp.asarray(bias, jnp.float32), wfl


# TODO(synk): LogicVAE.decode / generate_sample (stochastic multinomial graph
# construction) is not on the forward() path and has no clean Pallas equivalent;
# only encode + reparameterize + loss are implemented.

if __name__ == "__main__":
    key = jax.random.PRNGKey(0)
    pkey, nkey = jax.random.split(key)
    raw_params = init_params(pkey)
    wb, bias, wfl = pack_params(raw_params)

    graphs = build_graphs()
    B = len(graphs)
    Npad = MAX_V

    noise = np.asarray(jax.random.normal(nkey, (B, Z), jnp.float32))
    enc_x, enc_slab = prep_encoder_inputs(graphs, Npad, noise)

    sim = simulate_loss_bookkeeping(graphs, Npad)
    dec_x, dec_slab = prep_decoder_inputs(sim, B, Npad)

    out = run_logic_vae(jnp.asarray(enc_x, jnp.bfloat16),
                        jnp.asarray(dec_x, jnp.bfloat16),
                        jnp.asarray(enc_slab, jnp.float32),
                        jnp.asarray(dec_slab, jnp.float32),
                        wb, bias, wfl, sim['v_rows'])
    out = jax.block_until_ready(out)
    loss = float(np.asarray(out)[0, 0])
    assert np.isfinite(loss)
    print("KERNEL_OK")
</pallas_src>

<mosaic_0001>
module attributes {stable_mosaic.version = 11 : i64} {
  func.func @logic_vae_kernel(%arg0: memref<64x16xbf16, #tpu.memory_space<vmem>>, %arg1: memref<40x16xbf16, #tpu.memory_space<vmem>>, %arg2: memref<2x128xf32, #tpu.memory_space<vmem>>, %arg3: memref<4x2x128xf32, #tpu.memory_space<vmem>>, %arg4: memref<352x128xbf16, #tpu.memory_space<vmem>>, %arg5: memref<8x128xf32, #tpu.memory_space<vmem>>, %arg6: memref<8x32xbf16, #tpu.memory_space<vmem>>, %arg7: memref<8x128xf32, #tpu.memory_space<vmem>>) attributes {dimension_semantics = [], scalar_prefetch = 0 : i64, scratch_operands = 0 : i64, tpu.core_type = #tpu.core_type<tc>} {
    %c0 = arith.constant 0 : index
    %c0_0 = arith.constant 0 : index
    %0 = vector.load %arg4[%c0, %c0_0] : memref<352x128xbf16, #tpu.memory_space<vmem>>, vector<16x128xbf16>
    %c16 = arith.constant 16 : index
    %c0_1 = arith.constant 0 : index
    %1 = vector.load %arg4[%c16, %c0_1] : memref<352x128xbf16, #tpu.memory_space<vmem>>, vector<32x128xbf16>
    %c48 = arith.constant 48 : index
    %c0_2 = arith.constant 0 : index
    %2 = vector.load %arg4[%c48, %c0_2] : memref<352x128xbf16, #tpu.memory_space<vmem>>, vector<16x128xbf16>
    %c64 = arith.constant 64 : index
    %c0_3 = arith.constant 0 : index
    %3 = vector.load %arg4[%c64, %c0_3] : memref<352x128xbf16, #tpu.memory_space<vmem>>, vector<32x128xbf16>
    %c96 = arith.constant 96 : index
    %c0_4 = arith.constant 0 : index
    %4 = vector.load %arg4[%c96, %c0_4] : memref<352x128xbf16, #tpu.memory_space<vmem>>, vector<32x64xbf16>
    %c128 = arith.constant 128 : index
    %c0_5 = arith.constant 0 : index
    %5 = vector.load %arg4[%c128, %c0_5] : memref<352x128xbf16, #tpu.memory_space<vmem>>, vector<32x16xbf16>
    %c160 = arith.constant 160 : index
    %c0_6 = arith.constant 0 : index
    %6 = vector.load %arg4[%c160, %c0_6] : memref<352x128xbf16, #tpu.memory_space<vmem>>, vector<32x128xbf16>
    %c192 = arith.constant 192 : index
    %c0_7 = arith.constant 0 : index
    %7 = vector.load %arg4[%c192, %c0_7] : memref<352x128xbf16, #tpu.memory_space<vmem>>, vector<32x128xbf16>
    %c224 = arith.constant 224 : index
    %c0_8 = arith.constant 0 : index
    %8 = vector.load %arg4[%c224, %c0_8] : memref<352x128xbf16, #tpu.memory_space<vmem>>, vector<128x4xbf16>
    %c0_9 = arith.constant 0 : index
    %c0_10 = arith.constant 0 : index
    %9 = vector.load %arg5[%c0_9, %c0_10] : memref<8x128xf32, #tpu.memory_space<vmem>>, vector<1x128xf32>
    %c1 = arith.constant 1 : index
    %c0_11 = arith.constant 0 : index
    %10 = vector.load %arg5[%c1, %c0_11] : memref<8x128xf32, #tpu.memory_space<vmem>>, vector<1x128xf32>
    %c2 = arith.constant 2 : index
    %c0_12 = arith.constant 0 : index
    %11 = vector.load %arg5[%c2, %c0_12] : memref<8x128xf32, #tpu.memory_space<vmem>>, vector<1x64xf32>
    %c3 = arith.constant 3 : index
    %c0_13 = arith.constant 0 : index
    %12 = vector.load %arg5[%c3, %c0_13] : memref<8x128xf32, #tpu.memory_space<vmem>>, vector<1x16xf32>
    %c4 = arith.constant 4 : index
    %c0_14 = arith.constant 0 : index
    %13 = vector.load %arg5[%c4, %c0_14] : memref<8x128xf32, #tpu.memory_space<vmem>>, vector<1x32xf32>
    %c5 = arith.constant 5 : index
    %c0_15 = arith.constant 0 : index
    %14 = vector.load %arg5[%c5, %c0_15] : memref<8x128xf32, #tpu.memory_space<vmem>>, vector<1x128xf32>
    %c6 = arith.constant 6 : index
    %c0_16 = arith.constant 0 : index
    %15 = vector.load %arg5[%c6, %c0_16] : memref<8x128xf32, #tpu.memory_space<vmem>>, vector<1x4xf32>
    %c0_17 = arith.constant 0 : index
    %c0_18 = arith.constant 0 : index
    %16 = vector.load %arg0[%c0_17, %c0_18] : memref<64x16xbf16, #tpu.memory_space<vmem>>, vector<64x16xbf16>
    %cst = arith.constant dense<0.000000e+00> : vector<64x128xf32>
    %17 = tpu.matmul %16, %0, %cst {dimension_numbers = #tpu.dot_dimension_numbers<[1], [0], [0], [1], [0, 0, 1, 1], [], []>} : vector<64x16xbf16>, vector<16x128xbf16>, vector<64x128xf32> -> vector<64x128xf32>
    %18 = vector.broadcast %9 : vector<1x128xf32> to vector<64x128xf32>
    %19 = arith.addf %17, %18 : vector<64x128xf32>
    %c0_19 = arith.constant 0 : index
    %c0_20 = arith.constant 0 : index
    %20 = vector.load %arg1[%c0_19, %c0_20] : memref<40x16xbf16, #tpu.memory_space<vmem>>, vector<40x16xbf16>
    %cst_21 = arith.constant dense<0.000000e+00> : vector<40x128xf32>
    %21 = tpu.matmul %20, %2, %cst_21 {dimension_numbers = #tpu.dot_dimension_numbers<[1], [0], [0], [1], [0, 0, 1, 1], [], []>} : vector<40x16xbf16>, vector<16x128xbf16>, vector<40x128xf32> -> vector<40x128xf32>
    %22 = vector.broadcast %10 : vector<1x128xf32> to vector<40x128xf32>
    %23 = arith.addf %21, %22 : vector<40x128xf32>
    %c0_22 = arith.constant 0 : index
    %c0_23 = arith.constant 0 : index
    %24 = vector.load %arg2[%c0_22, %c0_23] : memref<2x128xf32, #tpu.memory_space<vmem>>, vector<2x128xf32>
    %cst_24 = arith.constant 0.000000e+00 : f32
    %25 = vector.broadcast %cst_24 : f32 to vector<2x32xf32>
    %26 = vector.extract_strided_slice %19 {offsets = [0, 0], sizes = [2, 128], strides = [1, 1]} : vector<64x128xf32> to vector<2x128xf32>
    %27 = arith.truncf %25 : vector<2x32xf32> to vector<2x32xbf16>
    %cst_25 = arith.constant dense<0.000000e+00> : vector<2x128xf32>
    %28 = tpu.matmul %27, %1, %cst_25 {dimension_numbers = #tpu.dot_dimension_numbers<[1], [0], [0], [1], [0, 0, 1, 1], [], []>} : vector<2x32xbf16>, vector<32x128xbf16>, vector<2x128xf32> -> vector<2x128xf32>
    %29 = arith.addf %26, %28 : vector<2x128xf32>
    %30 = vector.extract_strided_slice %29 {offsets = [0, 0], sizes = [2, 32], strides = [1, 1]} : vector<2x128xf32> to vector<2x32xf32>
    %cst_26 = arith.constant 5.000000e-01 : f32
    %31 = vector.broadcast %cst_26 : f32 to vector<2x32xf32>
    %32 = arith.mulf %31, %30 : vector<2x32xf32>
    %33 = math.tanh %32 : vector<2x32xf32>
    %cst_27 = arith.constant 1.000000e+00 : f32
    %34 = vector.broadcast %cst_27 : f32 to vector<2x32xf32>
    %35 = arith.addf %33, %34 : vector<2x32xf32>
    %cst_28 = arith.constant 5.000000e-01 : f32
    %36 = vector.broadcast %cst_28 : f32 to vector<2x32xf32>
    %37 = arith.mulf %36, %35 : vector<2x32xf32>
    %38 = vector.extract_strided_slice %29 {offsets = [0, 32], sizes = [2, 32], strides = [1, 1]} : vector<2x128xf32> to vector<2x32xf32>
    %cst_29 = arith.constant 5.000000e-01 : f32
    %39 = vector.broadcast %cst_29 : f32 to vector<2x32xf32>
    %40 = arith.mulf %39, %38 : vector<2x32xf32>
    %41 = math.tanh %40 : vector<2x32xf32>
    %cst_30 = arith.constant 1.000000e+00 : f32
    %42 = vector.broadcast %cst_30 : f32 to vector<2x32xf32>
    %43 = arith.addf %41, %42 : vector<2x32xf32>
    %cst_31 = arith.constant 5.000000e-01 : f32
    %44 = vector.broadcast %cst_31 : f32 to vector<2x32xf32>
    %45 = arith.mulf %44, %43 : vector<2x32xf32>
    %46 = vector.extract_strided_slice %29 {offsets = [0, 64], sizes = [2, 32], strides = [1, 1]} : vector<2x128xf32> to vector<2x32xf32>
    %47 = vector.extract_strided_slice %29 {offsets = [0, 96], sizes = [2, 32], strides = [1, 1]} : vector<2x128xf32> to vector<2x32xf32>
    %48 = arith.mulf %37, %47 : vector<2x32xf32>
    %49 = arith.addf %46, %48 : vector<2x32xf32>
    %50 = math.tanh %49 : vector<2x32xf32>
    %cst_32 = arith.constant 1.000000e+00 : f32
    %51 = vector.broadcast %cst_32 : f32 to vector<2x32xf32>
    %52 = arith.subf %51, %45 : vector<2x32xf32>
    %53 = arith.mulf %52, %50 : vector<2x32xf32>
    %54 = arith.mulf %45, %25 : vector<2x32xf32>
    %55 = arith.addf %53, %54 : vector<2x32xf32>
    %56 = vector.extract_strided_slice %24 {offsets = [0, 64], sizes = [2, 1], strides = [1, 1]} : vector<2x128xf32> to vector<2x1xf32>
    %57 = vector.broadcast %56 : vector<2x1xf32> to vector<2x32xf32>
    %58 = arith.mulf %57, %55 : vector<2x32xf32>
    %59 = arith.truncf %58 : vector<2x32xf32> to vector<2x32xbf16>
    %cst_33 = arith.constant dense<0.000000e+00> : vector<2x64xf32>
    %60 = tpu.matmul %59, %4, %cst_33 {dimension_numbers = #tpu.dot_dimension_numbers<[1], [0], [0], [1], [0, 0, 1, 1], [], []>} : vector<2x32xbf16>, vector<32x64xbf16>, vector<2x64xf32> -> vector<2x64xf32>
    %61 = vector.broadcast %11 : vector<1x64xf32> to vector<2x64xf32>
    %62 = arith.addf %60, %61 : vector<2x64xf32>
    %63 = vector.extract_strided_slice %62 {offsets = [0, 0], sizes = [2, 32], strides = [1, 1]} : vector<2x64xf32> to vector<2x32xf32>
    %cst_34 = arith.constant 5.000000e-01 : f32
    %64 = vector.broadcast %cst_34 : f32 to vector<2x32xf32>
    %65 = arith.mulf %64, %63 : vector<2x32xf32>
    %66 = math.tanh %65 : vector<2x32xf32>
    %cst_35 = arith.constant 1.000000e+00 : f32
    %67 = vector.broadcast %cst_35 : f32 to vector<2x32xf32>
    %68 = arith.addf %66, %67 : vector<2x32xf32>
    %cst_36 = arith.constant 5.000000e-01 : f32
    %69 = vector.broadcast %cst_36 : f32 to vector<2x32xf32>
    %70 = arith.mulf %69, %68 : vector<2x32xf32>
    %71 = vector.extract_strided_slice %62 {offsets = [0, 32], sizes = [2, 32], strides = [1, 1]} : vector<2x64xf32> to vector<2x32xf32>
    %72 = arith.mulf %70, %71 : vector<2x32xf32>
    %73 = vector.extract_strided_slice %24 {offsets = [0, 8], sizes = [2, 1], strides = [1, 1]} : vector<2x128xf32> to vector<2x1xf32>
    %74 = vector.broadcast %73 : vector<2x1xf32> to vector<2x32xf32>
    %75 = arith.mulf %74, %72 : vector<2x32xf32>
    %76 = vector.extract_strided_slice %19 {offsets = [8, 0], sizes = [2, 128], strides = [1, 1]} : vector<64x128xf32> to vector<2x128xf32>
    %77 = arith.truncf %75 : vector<2x32xf32> to vector<2x32xbf16>
    %cst_37 = arith.constant dense<0.000000e+00> : vector<2x128xf32>
    %78 = tpu.matmul %77, %1, %cst_37 {dimension_numbers = #tpu.dot_dimension_numbers<[1], [0], [0], [1], [0, 0, 1, 1], [], []>} : vector<2x32xbf16>, vector<32x128xbf16>, vector<2x128xf32> -> vector<2x128xf32>
    %79 = arith.addf %76, %78 : vector<2x128xf32>
    %80 = vector.extract_strided_slice %79 {offsets = [0, 0], sizes = [2, 32], strides = [1, 1]} : vector<2x128xf32> to vector<2x32xf32>
    %cst_38 = arith.constant 5.000000e-01 : f32
    %81 = vector.broadcast %cst_38 : f32 to vector<2x32xf32>
    %82 = arith.mulf %81, %80 : vector<2x32xf32>
    %83 = math.tanh %82 : vector<2x32xf32>
    %cst_39 = arith.constant 1.000000e+00 : f32
    %84 = vector.broadcast %cst_39 : f32 to vector<2x32xf32>
    %85 = arith.addf %83, %84 : vector<2x32xf32>
    %cst_40 = arith.constant 5.000000e-01 : f32
    %86 = vector.broadcast %cst_40 : f32 to vector<2x32xf32>
    %87 = arith.mulf %86, %85 : vector<2x32xf32>
    %88 = vector.extract_strided_slice %79 {offsets = [0, 32], sizes = [2, 32], strides = [1, 1]} : vector<2x128xf32> to vector<2x32xf32>
    %cst_41 = arith.constant 5.000000e-01 : f32
    %89 = vector.broadcast %cst_41 : f32 to vector<2x32xf32>
    %90 = arith.mulf %89, %88 : vector<2x32xf32>
    %91 = math.tanh %90 : vector<2x32xf32>
    %cst_42 = arith.constant 1.000000e+00 : f32
    %92 = vector.broadcast %cst_42 : f32 to vector<2x32xf32>
    %93 = arith.addf %91, %92 : vector<2x32xf32>
    %cst_43 = arith.constant 5.000000e-01 : f32
    %94 = vector.broadcast %cst_43 : f32 to vector<2x32xf32>
    %95 = arith.mulf %94, %93 : vector<2x32xf32>
    %96 = vector.extract_strided_slice %79 {offsets = [0, 64], sizes = [2, 32], strides = [1, 1]} : vector<2x128xf32> to vector<2x32xf32>
    %97 = vector.extract_strided_slice %79 {offsets = [0, 96], sizes = [2, 32], strides = [1, 1]} : vector<2x128xf32> to vector<2x32xf32>
    %98 = arith.mulf %87, %97 : vector<2x32xf32>
    %99 = arith.addf %96, %98 : vector<2x32xf32>
    %100 = math.tanh %99 : vector<2x32xf32>
    %cst_44 = arith.constant 1.000000e+00 : f32
    %101 = vector.broadcast %cst_44 : f32 to vector<2x32xf32>
    %102 = arith.subf %101, %95 : vector<2x32xf32>
    %103 = arith.mulf %102, %100 : vector<2x32xf32>
    %104 = arith.mulf %95, %75 : vector<2x32xf32>
    %105 = arith.addf %103, %104 : vector<2x32xf32>
    %106 = vector.extract_strided_slice %24 {offsets = [0, 65], sizes = [2, 1], strides = [1, 1]} : vector<2x128xf32> to vector<2x1xf32>
    %107 = vector.broadcast %106 : vector<2x1xf32> to vector<2x32xf32>
    %108 = arith.mulf %107, %105 : vector<2x32xf32>
    %109 = arith.truncf %108 : vector<2x32xf32> to vector<2x32xbf16>
    %cst_45 = arith.constant dense<0.000000e+00> : vector<2x64xf32>
    %110 = tpu.matmul %109, %4, %cst_45 {dimension_numbers = #tpu.dot_dimension_numbers<[1], [0], [0], [1], [0, 0, 1, 1], [], []>} : vector<2x32xbf16>, vector<32x64xbf16>, vector<2x64xf32> -> vector<2x64xf32>
    %111 = vector.broadcast %11 : vector<1x64xf32> to vector<2x64xf32>
    %112 = arith.addf %110, %111 : vector<2x64xf32>
    %113 = vector.extract_strided_slice %112 {offsets = [0, 0], sizes = [2, 32], strides = [1, 1]} : vector<2x64xf32> to vector<2x32xf32>
    %cst_46 = arith.constant 5.000000e-01 : f32
    %114 = vector.broadcast %cst_46 : f32 to vector<2x32xf32>
    %115 = arith.mulf %114, %113 : vector<2x32xf32>
    %116 = math.tanh %115 : vector<2x32xf32>
    %cst_47 = arith.constant 1.000000e+00 : f32
    %117 = vector.broadcast %cst_47 : f32 to vector<2x32xf32>
    %118 = arith.addf %116, %117 : vector<2x32xf32>
    %cst_48 = arith.constant 5.000000e-01 : f32
    %119 = vector.broadcast %cst_48 : f32 to vector<2x32xf32>
    %120 = arith.mulf %119, %118 : vector<2x32xf32>
    %121 = vector.extract_strided_slice %112 {offsets = [0, 32], sizes = [2, 32], strides = [1, 1]} : vector<2x64xf32> to vector<2x32xf32>
    %122 = arith.mulf %120, %121 : vector<2x32xf32>
    %123 = vector.extract_strided_slice %24 {offsets = [0, 16], sizes = [2, 1], strides = [1, 1]} : vector<2x128xf32> to vector<2x1xf32>
    %124 = vector.broadcast %123 : vector<2x1xf32> to vector<2x32xf32>
    %125 = arith.mulf %124, %72 : vector<2x32xf32>
    %126 = vector.extract_strided_slice %24 {offsets = [0, 17], sizes = [2, 1], strides = [1, 1]} : vector<2x128xf32> to vector<2x1xf32>
    %127 = vector.broadcast %126 : vector<2x1xf32> to vector<2x32xf32>
    %128 = arith.mulf %127, %122 : vector<2x32xf32>
    %129 = arith.addf %125, %128 : vector<2x32xf32>
    %130 = vector.extract_strided_slice %19 {offsets = [16, 0], sizes = [2, 128], strides = [1, 1]} : vector<64x128xf32> to vector<2x128xf32>
    %131 = arith.truncf %129 : vector<2x32xf32> to vector<2x32xbf16>
    %cst_49 = arith.constant dense<0.000000e+00> : vector<2x128xf32>
    %132 = tpu.matmul %131, %1, %cst_49 {dimension_numbers = #tpu.dot_dimension_numbers<[1], [0], [0], [1], [0, 0, 1, 1], [], []>} : vector<2x32xbf16>, vector<32x128xbf16>, vector<2x128xf32> -> vector<2x128xf32>
    %133 = arith.addf %130, %132 : vector<2x128xf32>
    %134 = vector.extract_strided_slice %133 {offsets = [0, 0], sizes = [2, 32], strides = [1, 1]} : vector<2x128xf32> to vector<2x32xf32>
    %cst_50 = arith.constant 5.000000e-01 : f32
    %135 = vector.broadcast %cst_50 : f32 to vector<2x32xf32>
    %136 = arith.mulf %135, %134 : vector<2x32xf32>
    %137 = math.tanh %136 : vector<2x32xf32>
    %cst_51 = arith.constant 1.000000e+00 : f32
    %138 = vector.broadcast %cst_51 : f32 to vector<2x32xf32>
    %139 = arith.addf %137, %138 : vector<2x32xf32>
    %cst_52 = arith.constant 5.000000e-01 : f32
    %140 = vector.broadcast %cst_52 : f32 to vector<2x32xf32>
    %141 = arith.mulf %140, %139 : vector<2x32xf32>
    %142 = vector.extract_strided_slice %133 {offsets = [0, 32], sizes = [2, 32], strides = [1, 1]} : vector<2x128xf32> to vector<2x32xf32>
    %cst_53 = arith.constant 5.000000e-01 : f32
    %143 = vector.broadcast %cst_53 : f32 to vector<2x32xf32>
    %144 = arith.mulf %143, %142 : vector<2x32xf32>
    %145 = math.tanh %144 : vector<2x32xf32>
    %cst_54 = arith.constant 1.000000e+00 : f32
    %146 = vector.broadcast %cst_54 : f32 to vector<2x32xf32>
    %147 = arith.addf %145, %146 : vector<2x32xf32>
    %cst_55 = arith.constant 5.000000e-01 : f32
    %148 = vector.broadcast %cst_55 : f32 to vector<2x32xf32>
    %149 = arith.mulf %148, %147 : vector<2x32xf32>
    %150 = vector.extract_strided_slice %133 {offsets = [0, 64], sizes = [2, 32], strides = [1, 1]} : vector<2x128xf32> to vector<2x32xf32>
    %151 = vector.extract_strided_slice %133 {offsets = [0, 96], sizes = [2, 32], strides = [1, 1]} : vector<2x128xf32> to vector<2x32xf32>
    %152 = arith.mulf %141, %151 : vector<2x32xf32>
    %153 = arith.addf %150, %152 : vector<2x32xf32>
    %154 = math.tanh %153 : vector<2x32xf32>
    %cst_56 = arith.constant 1.000000e+00 : f32
    %155 = vector.broadcast %cst_56 : f32 to vector<2x32xf32>
    %156 = arith.subf %155, %149 : vector<2x32xf32>
    %157 = arith.mulf %156, %154 : vector<2x32xf32>
    %158 = arith.mulf %149, %129 : vector<2x32xf32>
    %159 = arith.addf %157, %158 : vector<2x32xf32>
    %160 = vector.extract_strided_slice %24 {offsets = [0, 66], sizes = [2, 1], strides = [1, 1]} : vector<2x128xf32> to vector<2x1xf32>
    %161 = vector.broadcast %160 : vector<2x1xf32> to vector<2x32xf32>
    %162 = arith.mulf %161, %159 : vector<2x32xf32>
    %163 = arith.truncf %162 : vector<2x32xf32> to vector<2x32xbf16>
    %cst_57 = arith.constant dense<0.000000e+00> : vector<2x64xf32>
    %164 = tpu.matmul %163, %4, %cst_57 {dimension_numbers = #tpu.dot_dimension_numbers<[1], [0], [0], [1], [0, 0, 1, 1], [], []>} : vector<2x32xbf16>, vector<32x64xbf16>, vector<2x64xf32> -> vector<2x64xf32>
    %165 = vector.broadcast %11 : vector<1x64xf32> to vector<2x64xf32>
    %166 = arith.addf %164, %165 : vector<2x64xf32>
    %167 = vector.extract_strided_slice %166 {offsets = [0, 0], sizes = [2, 32], strides = [1, 1]} : vector<2x64xf32> to vector<2x32xf32>
    %cst_58 = arith.constant 5.000000e-01 : f32
    %168 = vector.broadcast %cst_58 : f32 to vector<2x32xf32>
    %169 = arith.mulf %168, %167 : vector<2x32xf32>
    %170 = math.tanh %169 : vector<2x32xf32>
    %cst_59 = arith.constant 1.000000e+00 : f32
    %171 = vector.broadcast %cst_59 : f32 to vector<2x32xf32>
    %172 = arith.addf %170, %171 : vector<2x32xf32>
    %cst_60 = arith.constant 5.000000e-01 : f32
    %173 = vector.broadcast %cst_60 : f32 to vector<2x32xf32>
    %174 = arith.mulf %173, %172 : vector<2x32xf32>
    %175 = vector.extract_strided_slice %166 {offsets = [0, 32], sizes = [2, 32], strides = [1, 1]} : vector<2x64xf32> to vector<2x32xf32>
    %176 = arith.mulf %174, %175 : vector<2x32xf32>
    %177 = vector.extract_strided_slice %24 {offsets = [0, 24], sizes = [2, 1], strides = [1, 1]} : vector<2x128xf32> to vector<2x1xf32>
    %178 = vector.broadcast %177 : vector<2x1xf32> to vector<2x32xf32>
    %179 = arith.mulf %178, %72 : vector<2x32xf32>
    %180 = vector.extract_strided_slice %24 {offsets = [0, 25], sizes = [2, 1], strides = [1, 1]} : vector<2x128xf32> to vector<2x1xf32>
    %181 = vector.broadcast %180 : vector<2x1xf32> to vector<2x32xf32>
    %182 = arith.mulf %181, %122 : vector<2x32xf32>
    %183 = vector.extract_strided_slice %24 {offsets = [0, 26], sizes = [2, 1], strides = [1, 1]} : vector<2x128xf32> to vector<2x1xf32>
    %184 = vector.broadcast %183 : vector<2x1xf32> to vector<2x32xf32>
    %185 = arith.mulf %184, %176 : vector<2x32xf32>
    %186 = arith.addf %179, %182 : vector<2x32xf32>
    %187 = arith.addf %186, %185 : vector<2x32xf32>
    %188 = vector.extract_strided_slice %19 {offsets = [24, 0], sizes = [2, 128], strides = [1, 1]} : vector<64x128xf32> to vector<2x128xf32>
    %189 = arith.truncf %187 : vector<2x32xf32> to vector<2x32xbf16>
    %cst_61 = arith.constant dense<0.000000e+00> : vector<2x128xf32>
    %190 = tpu.matmul %189, %1, %cst_61 {dimension_numbers = #tpu.dot_dimension_numbers<[1], [0], [0], [1], [0, 0, 1, 1], [], []>} : vector<2x32xbf16>, vector<32x128xbf16>, vector<2x128xf32> -> vector<2x128xf32>
    %191 = arith.addf %188, %190 : vector<2x128xf32>
    %192 = vector.extract_strided_slice %191 {offsets = [0, 0], sizes = [2, 32], strides = [1, 1]} : vector<2x128xf32> to vector<2x32xf32>
    %cst_62 = arith.constant 5.000000e-01 : f32
    %193 = vector.broadcast %cst_62 : f32 to vector<2x32xf32>
    %194 = arith.mulf %193, %192 : vector<2x32xf32>
    %195 = math.tanh %194 : vector<2x32xf32>
    %cst_63 = arith.constant 1.000000e+00 : f32
    %196 = vector.broadcast %cst_63 : f32 to vector<2x32xf32>
    %197 = arith.addf %195, %196 : vector<2x32xf32>
    %cst_64 = arith.constant 5.000000e-01 : f32
    %198 = vector.broadcast %cst_64 : f32 to vector<2x32xf32>
    %199 = arith.mulf %198, %197 : vector<2x32xf32>
    %200 = vector.extract_strided_slice %191 {offsets = [0, 32], sizes = [2, 32], strides = [1, 1]} : vector<2x128xf32> to vector<2x32xf32>
    %cst_65 = arith.constant 5.000000e-01 : f32
    %201 = vector.broadcast %cst_65 : f32 to vector<2x32xf32>
    %202 = arith.mulf %201, %200 : vector<2x32xf32>
    %203 = math.tanh %202 : vector<2x32xf32>
    %cst_66 = arith.constant 1.000000e+00 : f32
    %204 = vector.broadcast %cst_66 : f32 to vector<2x32xf32>
    %205 = arith.addf %203, %204 : vector<2x32xf32>
    %cst_67 = arith.constant 5.000000e-01 : f32
    %206 = vector.broadcast %cst_67 : f32 to vector<2x32xf32>
    %207 = arith.mulf %206, %205 : vector<2x32xf32>
    %208 = vector.extract_strided_slice %191 {offsets = [0, 64], sizes = [2, 32], strides = [1, 1]} : vector<2x128xf32> to vector<2x32xf32>
    %209 = vector.extract_strided_slice %191 {offsets = [0, 96], sizes = [2, 32], strides = [1, 1]} : vector<2x128xf32> to vector<2x32xf32>
    %210 = arith.mulf %199, %209 : vector<2x32xf32>
    %211 = arith.addf %208, %210 : vector<2x32xf32>
    %212 = math.tanh %211 : vector<2x32xf32>
    %cst_68 = arith.constant 1.000000e+00 : f32
    %213 = vector.broadcast %cst_68 : f32 to vector<2x32xf32>
    %214 = arith.subf %213, %207 : vector<2x32xf32>
    %215 = arith.mulf %214, %212 : vector<2x32xf32>
    %216 = arith.mulf %207, %187 : vector<2x32xf32>
    %217 = arith.addf %215, %216 : vector<2x32xf32>
    %218 = vector.extract_strided_slice %24 {offsets = [0, 67], sizes = [2, 1], strides = [1, 1]} : vector<2x128xf32> to vector<2x1xf32>
    %219 = vector.broadcast %218 : vector<2x1xf32> to vector<2x32xf32>
    %220 = arith.mulf %219, %217 : vector<2x32xf32>
    %221 = arith.truncf %220 : vector<2x32xf32> to vector<2x32xbf16>
    %cst_69 = arith.constant dense<0.000000e+00> : vector<2x64xf32>
    %222 = tpu.matmul %221, %4, %cst_69 {dimension_numbers = #tpu.dot_dimension_numbers<[1], [0], [0], [1], [0, 0, 1, 1], [], []>} : vector<2x32xbf16>, vector<32x64xbf16>, vector<2x64xf32> -> vector<2x64xf32>
    %223 = vector.broadcast %11 : vector<1x64xf32> to vector<2x64xf32>
    %224 = arith.addf %222, %223 : vector<2x64xf32>
    %225 = vector.extract_strided_slice %224 {offsets = [0, 0], sizes = [2, 32], strides = [1, 1]} : vector<2x64xf32> to vector<2x32xf32>
    %cst_70 = arith.constant 5.000000e-01 : f32
    %226 = vector.broadcast %cst_70 : f32 to vector<2x32xf32>
    %227 = arith.mulf %226, %225 : vector<2x32xf32>
    %228 = math.tanh %227 : vector<2x32xf32>
    %cst_71 = arith.constant 1.000000e+00 : f32
    %229 = vector.broadcast %cst_71 : f32 to vector<2x32xf32>
    %230 = arith.addf %228, %229 : vector<2x32xf32>
    %cst_72 = arith.constant 5.000000e-01 : f32
    %231 = vector.broadcast %cst_72 : f32 to vector<2x32xf32>
    %232 = arith.mulf %231, %230 : vector<2x32xf32>
    %233 = vector.extract_strided_slice %224 {offsets = [0, 32], sizes = [2, 32], strides = [1, 1]} : vector<2x64xf32> to vector<2x32xf32>
    %234 = arith.mulf %232, %233 : vector<2x32xf32>
    %235 = vector.extract_strided_slice %24 {offsets = [0, 32], sizes = [2, 1], strides = [1, 1]} : vector<2x128xf32> to vector<2x1xf32>
    %236 = vector.broadcast %235 : vector<2x1xf32> to vector<2x32xf32>
    %237 = arith.mulf %236, %72 : vector<2x32xf32>
    %238 = vector.extract_strided_slice %24 {offsets = [0, 33], sizes = [2, 1], strides = [1, 1]} : vector<2x128xf32> to vector<2x1xf32>
    %239 = vector.broadcast %238 : vector<2x1xf32> to vector<2x32xf32>
    %240 = arith.mulf %239, %122 : vector<2x32xf32>
    %241 = vector.extract_strided_slice %24 {offsets = [0, 34], sizes = [2, 1], strides = [1, 1]} : vector<2x128xf32> to vector<2x1xf32>
    %242 = vector.broadcast %241 : vector<2x1xf32> to vector<2x32xf32>
    %243 = arith.mulf %242, %176 : vector<2x32xf32>
    %244 = vector.extract_strided_slice %24 {offsets = [0, 35], sizes = [2, 1], strides = [1, 1]} : vector<2x128xf32> to vector<2x1xf32>
    %245 = vector.broadcast %244 : vector<2x1xf32> to vector<2x32xf32>
    %246 = arith.mulf %245, %234 : vector<2x32xf32>
    %247 = arith.addf %237, %240 : vector<2x32xf32>
    %248 = arith.addf %243, %246 : vector<2x32xf32>
    %249 = arith.addf %247, %248 : vector<2x32xf32>
    %250 = vector.extract_strided_slice %19 {offsets = [32, 0], sizes = [2, 128], strides = [1, 1]} : vector<64x128xf32> to vector<2x128xf32>
    %251 = arith.truncf %249 : vector<2x32xf32> to vector<2x32xbf16>
    %cst_73 = arith.constant dense<0.000000e+00> : vector<2x128xf32>
    %252 = tpu.matmul %251, %1, %cst_73 {dimension_numbers = #tpu.dot_dimension_numbers<[1], [0], [0], [1], [0, 0, 1, 1], [], []>} : vector<2x32xbf16>, vector<32x128xbf16>, vector<2x128xf32> -> vector<2x128xf32>
    %253 = arith.addf %250, %252 : vector<2x128xf32>
    %254 = vector.extract_strided_slice %253 {offsets = [0, 0], sizes = [2, 32], strides = [1, 1]} : vector<2x128xf32> to vector<2x32xf32>
    %cst_74 = arith.constant 5.000000e-01 : f32
    %255 = vector.broadcast %cst_74 : f32 to vector<2x32xf32>
    %256 = arith.mulf %255, %254 : vector<2x32xf32>
    %257 = math.tanh %256 : vector<2x32xf32>
    %cst_75 = arith.constant 1.000000e+00 : f32
    %258 = vector.broadcast %cst_75 : f32 to vector<2x32xf32>
    %259 = arith.addf %257, %258 : vector<2x32xf32>
    %cst_76 = arith.constant 5.000000e-01 : f32
    %260 = vector.broadcast %cst_76 : f32 to vector<2x32xf32>
    %261 = arith.mulf %260, %259 : vector<2x32xf32>
    %262 = vector.extract_strided_slice %253 {offsets = [0, 32], sizes = [2, 32], strides = [1, 1]} : vector<2x128xf32> to vector<2x32xf32>
    %cst_77 = arith.constant 5.000000e-01 : f32
    %263 = vector.broadcast %cst_77 : f32 to vector<2x32xf32>
    %264 = arith.mulf %263, %262 : vector<2x32xf32>
    %265 = math.tanh %264 : vector<2x32xf32>
    %cst_78 = arith.constant 1.000000e+00 : f32
    %266 = vector.broadcast %cst_78 : f32 to vector<2x32xf32>
    %267 = arith.addf %265, %266 : vector<2x32xf32>
    %cst_79 = arith.constant 5.000000e-01 : f32
    %268 = vector.broadcast %cst_79 : f32 to vector<2x32xf32>
    %269 = arith.mulf %268, %267 : vector<2x32xf32>
    %270 = vector.extract_strided_slice %253 {offsets = [0, 64], sizes = [2, 32], strides = [1, 1]} : vector<2x128xf32> to vector<2x32xf32>
    %271 = vector.extract_strided_slice %253 {offsets = [0, 96], sizes = [2, 32], strides = [1, 1]} : vector<2x128xf32> to vector<2x32xf32>
    %272 = arith.mulf %261, %271 : vector<2x32xf32>
    %273 = arith.addf %270, %272 : vector<2x32xf32>
    %274 = math.tanh %273 : vector<2x32xf32>
    %cst_80 = arith.constant 1.000000e+00 : f32
    %275 = vector.broadcast %cst_80 : f32 to vector<2x32xf32>
    %276 = arith.subf %275, %269 : vector<2x32xf32>
    %277 = arith.mulf %276, %274 : vector<2x32xf32>
    %278 = arith.mulf %269, %249 : vector<2x32xf32>
    %279 = arith.addf %277, %278 : vector<2x32xf32>
    %280 = vector.extract_strided_slice %24 {offsets = [0, 68], sizes = [2, 1], strides = [1, 1]} : vector<2x128xf32> to vector<2x1xf32>
    %281 = vector.broadcast %280 : vector<2x1xf32> to vector<2x32xf32>
    %282 = arith.mulf %281, %279 : vector<2x32xf32>
    %283 = arith.truncf %282 : vector<2x32xf32> to vector<2x32xbf16>
    %cst_81 = arith.constant dense<0.000000e+00> : vector<2x64xf32>
    %284 = tpu.matmul %283, %4, %cst_81 {dimension_numbers = #tpu.dot_dimension_numbers<[1], [0], [0], [1], [0, 0, 1, 1], [], []>} : vector<2x32xbf16>, vector<32x64xbf16>, vector<2x64xf32> -> vector<2x64xf32>
    %285 = vector.broadcast %11 : vector<1x64xf32> to vector<2x64xf32>
    %286 = arith.addf %284, %285 : vector<2x64xf32>
    %287 = vector.extract_strided_slice %286 {offsets = [0, 0], sizes = [2, 32], strides = [1, 1]} : vector<2x64xf32> to vector<2x32xf32>
    %cst_82 = arith.constant 5.000000e-01 : f32
    %288 = vector.broadcast %cst_82 : f32 to vector<2x32xf32>
    %289 = arith.mulf %288, %287 : vector<2x32xf32>
    %290 = math.tanh %289 : vector<2x32xf32>
    %cst_83 = arith.constant 1.000000e+00 : f32
    %291 = vector.broadcast %cst_83 : f32 to vector<2x32xf32>
    %292 = arith.addf %290, %291 : vector<2x32xf32>
    %cst_84 = arith.constant 5.000000e-01 : f32
    %293 = vector.broadcast %cst_84 : f32 to vector<2x32xf32>
    %294 = arith.mulf %293, %292 : vector<2x32xf32>
    %295 = vector.extract_strided_slice %286 {offsets = [0, 32], sizes = [2, 32], strides = [1, 1]} : vector<2x64xf32> to vector<2x32xf32>
    %296 = arith.mulf %294, %295 : vector<2x32xf32>
    %297 = vector.extract_strided_slice %24 {offsets = [0, 40], sizes = [2, 1], strides = [1, 1]} : vector<2x128xf32> to vector<2x1xf32>
    %298 = vector.broadcast %297 : vector<2x1xf32> to vector<2x32xf32>
    %299 = arith.mulf %298, %72 : vector<2x32xf32>
    %300 = vector.extract_strided_slice %24 {offsets = [0, 41], sizes = [2, 1], strides = [1, 1]} : vector<2x128xf32> to vector<2x1xf32>
    %301 = vector.broadcast %300 : vector<2x1xf32> to vector<2x32xf32>
    %302 = arith.mulf %301, %122 : vector<2x32xf32>
    %303 = vector.extract_strided_slice %24 {offsets = [0, 42], sizes = [2, 1], strides = [1, 1]} : vector<2x128xf32> to vector<2x1xf32>
    %304 = vector.broadcast %303 : vector<2x1xf32> to vector<2x32xf32>
    %305 = arith.mulf %304, %176 : vector<2x32xf32>
    %306 = vector.extract_strided_slice %24 {offsets = [0, 43], sizes = [2, 1], strides = [1, 1]} : vector<2x128xf32> to vector<2x1xf32>
    %307 = vector.broadcast %306 : vector<2x1xf32> to vector<2x32xf32>
    %308 = arith.mulf %307, %234 : vector<2x32xf32>
    %309 = vector.extract_strided_slice %24 {offsets = [0, 44], sizes = [2, 1], strides = [1, 1]} : vector<2x128xf32> to vector<2x1xf32>
    %310 = vector.broadcast %309 : vector<2x1xf32> to vector<2x32xf32>
    %311 = arith.mulf %310, %296 : vector<2x32xf32>
    %312 = arith.addf %299, %302 : vector<2x32xf32>
    %313 = arith.addf %305, %308 : vector<2x32xf32>
    %314 = arith.addf %312, %313 : vector<2x32xf32>
    %315 = arith.addf %314, %311 : vector<2x32xf32>
    %316 = vector.extract_strided_slice %19 {offsets = [40, 0], sizes = [2, 128], strides = [1, 1]} : vector<64x128xf32> to vector<2x128xf32>
    %317 = arith.truncf %315 : vector<2x32xf32> to vector<2x32xbf16>
    %cst_85 = arith.constant dense<0.000000e+00> : vector<2x128xf32>
    %318 = tpu.matmul %317, %1, %cst_85 {dimension_numbers = #tpu.dot_dimension_numbers<[1], [0], [0], [1], [0, 0, 1, 1], [], []>} : vector<2x32xbf16>, vector<32x128xbf16>, vector<2x128xf32> -> vector<2x128xf32>
    %319 = arith.addf %316, %318 : vector<2x128xf32>
    %320 = vector.extract_strided_slice %319 {offsets = [0, 0], sizes = [2, 32], strides = [1, 1]} : vector<2x128xf32> to vector<2x32xf32>
    %cst_86 = arith.constant 5.000000e-01 : f32
    %321 = vector.broadcast %cst_86 : f32 to vector<2x32xf32>
    %322 = arith.mulf %321, %320 : vector<2x32xf32>
    %323 = math.tanh %322 : vector<2x32xf32>
    %cst_87 = arith.constant 1.000000e+00 : f32
    %324 = vector.broadcast %cst_87 : f32 to vector<2x32xf32>
    %325 = arith.addf %323, %324 : vector<2x32xf32>
    %cst_88 = arith.constant 5.000000e-01 : f32
    %326 = vector.broadcast %cst_88 : f32 to vector<2x32xf32>
    %327 = arith.mulf %326, %325 : vector<2x32xf32>
    %328 = vector.extract_strided_slice %319 {offsets = [0, 32], sizes = [2, 32], strides = [1, 1]} : vector<2x128xf32> to vector<2x32xf32>
    %cst_89 = arith.constant 5.000000e-01 : f32
    %329 = vector.broadcast %cst_89 : f32 to vector<2x32xf32>
    %330 = arith.mulf %329, %328 : vector<2x32xf32>
    %331 = math.tanh %330 : vector<2x32xf32>
    %cst_90 = arith.constant 1.000000e+00 : f32
    %332 = vector.broadcast %cst_90 : f32 to vector<2x32xf32>
    %333 = arith.addf %331, %332 : vector<2x32xf32>
    %cst_91 = arith.constant 5.000000e-01 : f32
    %334 = vector.broadcast %cst_91 : f32 to vector<2x32xf32>
    %335 = arith.mulf %334, %333 : vector<2x32xf32>
    %336 = vector.extract_strided_slice %319 {offsets = [0, 64], sizes = [2, 32], strides = [1, 1]} : vector<2x128xf32> to vector<2x32xf32>
    %337 = vector.extract_strided_slice %319 {offsets = [0, 96], sizes = [2, 32], strides = [1, 1]} : vector<2x128xf32> to vector<2x32xf32>
    %338 = arith.mulf %327, %337 : vector<2x32xf32>
    %339 = arith.addf %336, %338 : vector<2x32xf32>
    %340 = math.tanh %339 : vector<2x32xf32>
    %cst_92 = arith.constant 1.000000e+00 : f32
    %341 = vector.broadcast %cst_92 : f32 to vector<2x32xf32>
    %342 = arith.subf %341, %335 : vector<2x32xf32>
    %343 = arith.mulf %342, %340 : vector<2x32xf32>
    %344 = arith.mulf %335, %315 : vector<2x32xf32>
    %345 = arith.addf %343, %344 : vector<2x32xf32>
    %346 = vector.extract_strided_slice %24 {offsets = [0, 69], sizes = [2, 1], strides = [1, 1]} : vector<2x128xf32> to vector<2x1xf32>
    %347 = vector.broadcast %346 : vector<2x1xf32> to vector<2x32xf32>
    %348 = arith.mulf %347, %345 : vector<2x32xf32>
    %349 = arith.truncf %348 : vector<2x32xf32> to vector<2x32xbf16>
    %cst_93 = arith.constant dense<0.000000e+00> : vector<2x64xf32>
    %350 = tpu.matmul %349, %4, %cst_93 {dimension_numbers = #tpu.dot_dimension_numbers<[1], [0], [0], [1], [0, 0, 1, 1], [], []>} : vector<2x32xbf16>, vector<32x64xbf16>, vector<2x64xf32> -> vector<2x64xf32>
    %351 = vector.broadcast %11 : vector<1x64xf32> to vector<2x64xf32>
    %352 = arith.addf %350, %351 : vector<2x64xf32>
    %353 = vector.extract_strided_slice %352 {offsets = [0, 0], sizes = [2, 32], strides = [1, 1]} : vector<2x64xf32> to vector<2x32xf32>
    %cst_94 = arith.constant 5.000000e-01 : f32
    %354 = vector.broadcast %cst_94 : f32 to vector<2x32xf32>
    %355 = arith.mulf %354, %353 : vector<2x32xf32>
    %356 = math.tanh %355 : vector<2x32xf32>
    %cst_95 = arith.constant 1.000000e+00 : f32
    %357 = vector.broadcast %cst_95 : f32 to vector<2x32xf32>
    %358 = arith.addf %356, %357 : vector<2x32xf32>
    %cst_96 = arith.constant 5.000000e-01 : f32
    %359 = vector.broadcast %cst_96 : f32 to vector<2x32xf32>
    %360 = arith.mulf %359, %358 : vector<2x32xf32>
    %361 = vector.extract_strided_slice %352 {offsets = [0, 32], sizes = [2, 32], strides = [1, 1]} : vector<2x64xf32> to vector<2x32xf32>
    %362 = arith.mulf %360, %361 : vector<2x32xf32>
    %363 = vector.extract_strided_slice %24 {offsets = [0, 48], sizes = [2, 1], strides = [1, 1]} : vector<2x128xf32> to vector<2x1xf32>
    %364 = vector.broadcast %363 : vector<2x1xf32> to vector<2x32xf32>
    %365 = arith.mulf %364, %72 : vector<2x32xf32>
    %366 = vector.extract_strided_slice %24 {offsets = [0, 49], sizes = [2, 1], strides = [1, 1]} : vector<2x128xf32> to vector<2x1xf32>
    %367 = vector.broadcast %366 : vector<2x1xf32> to vector<2x32xf32>
    %368 = arith.mulf %367, %122 : vector<2x32xf32>
    %369 = vector.extract_strided_slice %24 {offsets = [0, 50], sizes = [2, 1], strides = [1, 1]} : vector<2x128xf32> to vector<2x1xf32>
    %370 = vector.broadcast %369 : vector<2x1xf32> to vector<2x32xf32>
    %371 = arith.mulf %370, %176 : vector<2x32xf32>
    %372 = vector.extract_strided_slice %24 {offsets = [0, 51], sizes = [2, 1], strides = [1, 1]} : vector<2x128xf32> to vector<2x1xf32>
    %373 = vector.broadcast %372 : vector<2x1xf32> to vector<2x32xf32>
    %374 = arith.mulf %373, %234 : vector<2x32xf32>
    %375 = vector.extract_strided_slice %24 {offsets = [0, 52], sizes = [2, 1], strides = [1, 1]} : vector<2x128xf32> to vector<2x1xf32>
    %376 = vector.broadcast %375 : vector<2x1xf32> to vector<2x32xf32>
    %377 = arith.mulf %376, %296 : vector<2x32xf32>
    %378 = vector.extract_strided_slice %24 {offsets = [0, 53], sizes = [2, 1], strides = [1, 1]} : vector<2x128xf32> to vector<2x1xf32>
    %379 = vector.broadcast %378 : vector<2x1xf32> to vector<2x32xf32>
    %380 = arith.mulf %379, %362 : vector<2x32xf32>
    %381 = arith.addf %365, %368 : vector<2x32xf32>
    %382 = arith.addf %371, %374 : vector<2x32xf32>
    %383 = arith.addf %377, %380 : vector<2x32xf32>
    %384 = arith.addf %381, %382 : vector<2x32xf32>
    %385 = arith.addf %384, %383 : vector<2x32xf32>
    %386 = vector.extract_strided_slice %19 {offsets = [48, 0], sizes = [2, 128], strides = [1, 1]} : vector<64x128xf32> to vector<2x128xf32>
    %387 = arith.truncf %385 : vector<2x32xf32> to vector<2x32xbf16>
    %cst_97 = arith.constant dense<0.000000e+00> : vector<2x128xf32>
    %388 = tpu.matmul %387, %1, %cst_97 {dimension_numbers = #tpu.dot_dimension_numbers<[1], [0], [0], [1], [0, 0, 1, 1], [], []>} : vector<2x32xbf16>, vector<32x128xbf16>, vector<2x128xf32> -> vector<2x128xf32>
    %389 = arith.addf %386, %388 : vector<2x128xf32>
    %390 = vector.extract_strided_slice %389 {offsets = [0, 0], sizes = [2, 32], strides = [1, 1]} : vector<2x128xf32> to vector<2x32xf32>
    %cst_98 = arith.constant 5.000000e-01 : f32
    %391 = vector.broadcast %cst_98 : f32 to vector<2x32xf32>
    %392 = arith.mulf %391, %390 : vector<2x32xf32>
    %393 = math.tanh %392 : vector<2x32xf32>
    %cst_99 = arith.constant 1.000000e+00 : f32
    %394 = vector.broadcast %cst_99 : f32 to vector<2x32xf32>
    %395 = arith.addf %393, %394 : vector<2x32xf32>
    %cst_100 = arith.constant 5.000000e-01 : f32
    %396 = vector.broadcast %cst_100 : f32 to vector<2x32xf32>
    %397 = arith.mulf %396, %395 : vector<2x32xf32>
    %398 = vector.extract_strided_slice %389 {offsets = [0, 32], sizes = [2, 32], strides = [1, 1]} : vector<2x128xf32> to vector<2x32xf32>
    %cst_101 = arith.constant 5.000000e-01 : f32
    %399 = vector.broadcast %cst_101 : f32 to vector<2x32xf32>
    %400 = arith.mulf %399, %398 : vector<2x32xf32>
    %401 = math.tanh %400 : vector<2x32xf32>
    %cst_102 = arith.constant 1.000000e+00 : f32
    %402 = vector.broadcast %cst_102 : f32 to vector<2x32xf32>
    %403 = arith.addf %401, %402 : vector<2x32xf32>
    %cst_103 = arith.constant 5.000000e-01 : f32
    %404 = vector.broadcast %cst_103 : f32 to vector<2x32xf32>
    %405 = arith.mulf %404, %403 : vector<2x32xf32>
    %406 = vector.extract_strided_slice %389 {offsets = [0, 64], sizes = [2, 32], strides = [1, 1]} : vector<2x128xf32> to vector<2x32xf32>
    %407 = vector.extract_strided_slice %389 {offsets = [0, 96], sizes = [2, 32], strides = [1, 1]} : vector<2x128xf32> to vector<2x32xf32>
    %408 = arith.mulf %397, %407 : vector<2x32xf32>
    %409 = arith.addf %406, %408 : vector<2x32xf32>
    %410 = math.tanh %409 : vector<2x32xf32>
    %cst_104 = arith.constant 1.000000e+00 : f32
    %411 = vector.broadcast %cst_104 : f32 to vector<2x32xf32>
    %412 = arith.subf %411, %405 : vector<2x32xf32>
    %413 = arith.mulf %412, %410 : vector<2x32xf32>
    %414 = arith.mulf %405, %385 : vector<2x32xf32>
    %415 = arith.addf %413, %414 : vector<2x32xf32>
    %416 = vector.extract_strided_slice %24 {offsets = [0, 70], sizes = [2, 1], strides = [1, 1]} : vector<2x128xf32> to vector<2x1xf32>
    %417 = vector.broadcast %416 : vector<2x1xf32> to vector<2x32xf32>
    %418 = arith.mulf %417, %415 : vector<2x32xf32>
    %419 = arith.truncf %418 : vector<2x32xf32> to vector<2x32xbf16>
    %cst_105 = arith.constant dense<0.000000e+00> : vector<2x64xf32>
    %420 = tpu.matmul %419, %4, %cst_105 {dimension_numbers = #tpu.dot_dimension_numbers<[1], [0], [0], [1], [0, 0, 1, 1], [], []>} : vector<2x32xbf16>, vector<32x64xbf16>, vector<2x64xf32> -> vector<2x64xf32>
    %421 = vector.broadcast %11 : vector<1x64xf32> to vector<2x64xf32>
    %422 = arith.addf %420, %421 : vector<2x64xf32>
    %423 = vector.extract_strided_slice %422 {offsets = [0, 0], sizes = [2, 32], strides = [1, 1]} : vector<2x64xf32> to vector<2x32xf32>
    %cst_106 = arith.constant 5.000000e-01 : f32
    %424 = vector.broadcast %cst_106 : f32 to vector<2x32xf32>
    %425 = arith.mulf %424, %423 : vector<2x32xf32>
    %426 = math.tanh %425 : vector<2x32xf32>
    %cst_107 = arith.constant 1.000000e+00 : f32
    %427 = vector.broadcast %cst_107 : f32 to vector<2x32xf32>
    %428 = arith.addf %426, %427 : vector<2x32xf32>
    %cst_108 = arith.constant 5.000000e-01 : f32
    %429 = vector.broadcast %cst_108 : f32 to vector<2x32xf32>
    %430 = arith.mulf %429, %428 : vector<2x32xf32>
    %431 = vector.extract_strided_slice %422 {offsets = [0, 32], sizes = [2, 32], strides = [1, 1]} : vector<2x64xf32> to vector<2x32xf32>
    %432 = arith.mulf %430, %431 : vector<2x32xf32>
    %433 = vector.extract_strided_slice %24 {offsets = [0, 56], sizes = [2, 1], strides = [1, 1]} : vector<2x128xf32> to vector<2x1xf32>
    %434 = vector.broadcast %433 : vector<2x1xf32> to vector<2x32xf32>
    %435 = arith.mulf %434, %72 : vector<2x32xf32>
    %436 = vector.extract_strided_slice %24 {offsets = [0, 57], sizes = [2, 1], strides = [1, 1]} : vector<2x128xf32> to vector<2x1xf32>
    %437 = vector.broadcast %436 : vector<2x1xf32> to vector<2x32xf32>
    %438 = arith.mulf %437, %122 : vector<2x32xf32>
    %439 = vector.extract_strided_slice %24 {offsets = [0, 58], sizes = [2, 1], strides = [1, 1]} : vector<2x128xf32> to vector<2x1xf32>
    %440 = vector.broadcast %439 : vector<2x1xf32> to vector<2x32xf32>
    %441 = arith.mulf %440, %176 : vector<2x32xf32>
    %442 = vector.extract_strided_slice %24 {offsets = [0, 59], sizes = [2, 1], strides = [1, 1]} : vector<2x128xf32> to vector<2x1xf32>
    %443 = vector.broadcast %442 : vector<2x1xf32> to vector<2x32xf32>
    %444 = arith.mulf %443, %234 : vector<2x32xf32>
    %445 = vector.extract_strided_slice %24 {offsets = [0, 60], sizes = [2, 1], strides = [1, 1]} : vector<2x128xf32> to vector<2x1xf32>
    %446 = vector.broadcast %445 : vector<2x1xf32> to vector<2x32xf32>
    %447 = arith.mulf %446, %296 : vector<2x32xf32>
    %448 = vector.extract_strided_slice %24 {offsets = [0, 61], sizes = [2, 1], strides = [1, 1]} : vector<2x128xf32> to vector<2x1xf32>
    %449 = vector.broadcast %448 : vector<2x1xf32> to vector<2x32xf32>
    %450 = arith.mulf %449, %362 : vector<2x32xf32>
    %451 = vector.extract_strided_slice %24 {offsets = [0, 62], sizes = [2, 1], strides = [1, 1]} : vector<2x128xf32> to vector<2x1xf32>
    %452 = vector.broadcast %451 : vector<2x1xf32> to vector<2x32xf32>
    %453 = arith.mulf %452, %432 : vector<2x32xf32>
    %454 = arith.addf %435, %438 : vector<2x32xf32>
    %455 = arith.addf %441, %444 : vector<2x32xf32>
    %456 = arith.addf %447, %450 : vector<2x32xf32>
    %457 = arith.addf %454, %455 : vector<2x32xf32>
    %458 = arith.addf %456, %453 : vector<2x32xf32>
    %459 = arith.addf %457, %458 : vector<2x32xf32>
    %460 = vector.extract_strided_slice %19 {offsets = [56, 0], sizes = [2, 128], strides = [1, 1]} : vector<64x128xf32> to vector<2x128xf32>
    %461 = arith.truncf %459 : vector<2x32xf32> to vector<2x32xbf16>
    %cst_109 = arith.constant dense<0.000000e+00> : vector<2x128xf32>
    %462 = tpu.matmul %461, %1, %cst_109 {dimension_numbers = #tpu.dot_dimension_numbers<[1], [0], [0], [1], [0, 0, 1, 1], [], []>} : vector<2x32xbf16>, vector<32x128xbf16>, vector<2x128xf32> -> vector<2x128xf32>
    %463 = arith.addf %460, %462 : vector<2x128xf32>
    %464 = vector.extract_strided_slice %463 {offsets = [0, 0], sizes = [2, 32], strides = [1, 1]} : vector<2x128xf32> to vector<2x32xf32>
    %cst_110 = arith.constant 5.000000e-01 : f32
    %465 = vector.broadcast %cst_110 : f32 to vector<2x32xf32>
    %466 = arith.mulf %465, %464 : vector<2x32xf32>
    %467 = math.tanh %466 : vector<2x32xf32>
    %cst_111 = arith.constant 1.000000e+00 : f32
    %468 = vector.broadcast %cst_111 : f32 to vector<2x32xf32>
    %469 = arith.addf %467, %468 : vector<2x32xf32>
    %cst_112 = arith.constant 5.000000e-01 : f32
    %470 = vector.broadcast %cst_112 : f32 to vector<2x32xf32>
    %471 = arith.mulf %470, %469 : vector<2x32xf32>
    %472 = vector.extract_strided_slice %463 {offsets = [0, 32], sizes = [2, 32], strides = [1, 1]} : vector<2x128xf32> to vector<2x32xf32>
    %cst_113 = arith.constant 5.000000e-01 : f32
    %473 = vector.broadcast %cst_113 : f32 to vector<2x32xf32>
    %474 = arith.mulf %473, %472 : vector<2x32xf32>
    %475 = math.tanh %474 : vector<2x32xf32>
    %cst_114 = arith.constant 1.000000e+00 : f32
    %476 = vector.broadcast %cst_114 : f32 to vector<2x32xf32>
    %477 = arith.addf %475, %476 : vector<2x32xf32>
    %cst_115 = arith.constant 5.000000e-01 : f32
    %478 = vector.broadcast %cst_115 : f32 to vector<2x32xf32>
    %479 = arith.mulf %478, %477 : vector<2x32xf32>
    %480 = vector.extract_strided_slice %463 {offsets = [0, 64], sizes = [2, 32], strides = [1, 1]} : vector<2x128xf32> to vector<2x32xf32>
    %481 = vector.extract_strided_slice %463 {offsets = [0, 96], sizes = [2, 32], strides = [1, 1]} : vector<2x128xf32> to vector<2x32xf32>
    %482 = arith.mulf %471, %481 : vector<2x32xf32>
    %483 = arith.addf %480, %482 : vector<2x32xf32>
    %484 = math.tanh %483 : vector<2x32xf32>
    %cst_116 = arith.constant 1.000000e+00 : f32
    %485 = vector.broadcast %cst_116 : f32 to vector<2x32xf32>
    %486 = arith.subf %485, %479 : vector<2x32xf32>
    %487 = arith.mulf %486, %484 : vector<2x32xf32>
    %488 = arith.mulf %479, %459 : vector<2x32xf32>
    %489 = arith.addf %487, %488 : vector<2x32xf32>
    %490 = vector.extract_strided_slice %24 {offsets = [0, 71], sizes = [2, 1], strides = [1, 1]} : vector<2x128xf32> to vector<2x1xf32>
    %491 = vector.broadcast %490 : vector<2x1xf32> to vector<2x32xf32>
    %492 = arith.mulf %491, %489 : vector<2x32xf32>
    %493 = vector.extract_strided_slice %24 {offsets = [0, 72], sizes = [2, 1], strides = [1, 1]} : vector<2x128xf32> to vector<2x1xf32>
    %494 = vector.broadcast %493 : vector<2x1xf32> to vector<2x32xf32>
    %495 = arith.mulf %494, %58 : vector<2x32xf32>
    %496 = vector.extract_strided_slice %24 {offsets = [0, 73], sizes = [2, 1], strides = [1, 1]} : vector<2x128xf32> to vector<2x1xf32>
    %497 = vector.broadcast %496 : vector<2x1xf32> to vector<2x32xf32>
    %498 = arith.mulf %497, %108 : vector<2x32xf32>
    %499 = vector.extract_strided_slice %24 {offsets = [0, 74], sizes = [2, 1], strides = [1, 1]} : vector<2x128xf32> to vector<2x1xf32>
    %500 = vector.broadcast %499 : vector<2x1xf32> to vector<2x32xf32>
    %501 = arith.mulf %500, %162 : vector<2x32xf32>
    %502 = vector.extract_strided_slice %24 {offsets = [0, 75], sizes = [2, 1], strides = [1, 1]} : vector<2x128xf32> to vector<2x1xf32>
    %503 = vector.broadcast %502 : vector<2x1xf32> to vector<2x32xf32>
    %504 = arith.mulf %503, %220 : vector<2x32xf32>
    %505 = vector.extract_strided_slice %24 {offsets = [0, 76], sizes = [2, 1], strides = [1, 1]} : vector<2x128xf32> to vector<2x1xf32>
    %506 = vector.broadcast %505 : vector<2x1xf32> to vector<2x32xf32>
    %507 = arith.mulf %506, %282 : vector<2x32xf32>
    %508 = vector.extract_strided_slice %24 {offsets = [0, 77], sizes = [2, 1], strides = [1, 1]} : vector<2x128xf32> to vector<2x1xf32>
    %509 = vector.broadcast %508 : vector<2x1xf32> to vector<2x32xf32>
    %510 = arith.mulf %509, %348 : vector<2x32xf32>
    %511 = vector.extract_strided_slice %24 {offsets = [0, 78], sizes = [2, 1], strides = [1, 1]} : vector<2x128xf32> to vector<2x1xf32>
    %512 = vector.broadcast %511 : vector<2x1xf32> to vector<2x32xf32>
    %513 = arith.mulf %512, %418 : vector<2x32xf32>
    %514 = vector.extract_strided_slice %24 {offsets = [0, 79], sizes = [2, 1], strides = [1, 1]} : vector<2x128xf32> to vector<2x1xf32>
    %515 = vector.broadcast %514 : vector<2x1xf32> to vector<2x32xf32>
    %516 = arith.mulf %515, %492 : vector<2x32xf32>
    %517 = arith.addf %495, %498 : vector<2x32xf32>
    %518 = arith.addf %501, %504 : vector<2x32xf32>
    %519 = arith.addf %507, %510 : vector<2x32xf32>
    %520 = arith.addf %513, %516 : vector<2x32xf32>
    %521 = arith.addf %517, %518 : vector<2x32xf32>
    %522 = arith.addf %519, %520 : vector<2x32xf32>
    %523 = arith.addf %521, %522 : vector<2x32xf32>
    %524 = arith.truncf %523 : vector<2x32xf32> to vector<2x32xbf16>
    %cst_117 = arith.constant dense<0.000000e+00> : vector<2x16xf32>
    %525 = tpu.matmul %524, %5, %cst_117 {dimension_numbers = #tpu.dot_dimension_numbers<[1], [0], [0], [1], [0, 0, 1, 1], [], []>} : vector<2x32xbf16>, vector<32x16xbf16>, vector<2x16xf32> -> vector<2x16xf32>
    %526 = vector.broadcast %12 : vector<1x16xf32> to vector<2x16xf32>
    %527 = arith.addf %525, %526 : vector<2x16xf32>
    %528 = vector.extract_strided_slice %527 {offsets = [0, 0], sizes = [2, 8], strides = [1, 1]} : vector<2x16xf32> to vector<2x8xf32>
    %529 = vector.extract_strided_slice %527 {offsets = [0, 8], sizes = [2, 8], strides = [1, 1]} : vector<2x16xf32> to vector<2x8xf32>
    %cst_118 = arith.constant 5.000000e-01 : f32
    %530 = vector.broadcast %cst_118 : f32 to vector<2x8xf32>
    %531 = arith.mulf %530, %529 : vector<2x8xf32>
    %532 = math.exp %531 : vector<2x8xf32>
    %533 = vector.extract_strided_slice %24 {offsets = [0, 80], sizes = [2, 8], strides = [1, 1]} : vector<2x128xf32> to vector<2x8xf32>
    %cst_119 = arith.constant 0.00999999977 : f32
    %534 = vector.broadcast %cst_119 : f32 to vector<2x8xf32>
    %535 = arith.mulf %533, %534 : vector<2x8xf32>
    %536 = arith.mulf %535, %532 : vector<2x8xf32>
    %537 = arith.addf %536, %528 : vector<2x8xf32>
    %cst_120 = arith.constant 1.000000e+00 : f32
    %538 = vector.broadcast %cst_120 : f32 to vector<2x8xf32>
    %539 = arith.addf %538, %529 : vector<2x8xf32>
    %540 = arith.mulf %528, %528 : vector<2x8xf32>
    %541 = arith.subf %539, %540 : vector<2x8xf32>
    %542 = arith.mulf %532, %532 : vector<2x8xf32>
    %543 = arith.subf %541, %542 : vector<2x8xf32>
    %544 = vector.shape_cast %543 : vector<2x8xf32> to vector<1x2x8xf32>
    %cst_121 = arith.constant dense<0.000000e+00> : vector<1xf32>
    %545 = vector.multi_reduction <add>, %544, %cst_121 [1, 2] : vector<1x2x8xf32> to vector<1xf32>
    %546 = vector.shape_cast %545 : vector<1xf32> to vector<1x1x1xf32>
    %547 = vector.extract %546[0, 0, 0] : f32 from vector<1x1x1xf32>
    %548 = vector.broadcast %547 : f32 to vector<1x1xf32>
    %cst_122 = arith.constant -5.000000e-01 : f32
    %549 = vector.broadcast %cst_122 : f32 to vector<1x1xf32>
    %550 = arith.mulf %549, %548 : vector<1x1xf32>
    %c0_123 = arith.constant 0 : index
    %c0_124 = arith.constant 0 : index
    %551 = vector.load %arg6[%c0_123, %c0_124] : memref<8x32xbf16, #tpu.memory_space<vmem>>, vector<8x32xbf16>
    %552 = arith.truncf %537 : vector<2x8xf32> to vector<2x8xbf16>
    %cst_125 = arith.constant dense<0.000000e+00> : vector<2x32xf32>
    %553 = tpu.matmul %552, %551, %cst_125 {dimension_numbers = #tpu.dot_dimension_numbers<[1], [0], [0], [1], [0, 0, 1, 1], [], []>} : vector<2x8xbf16>, vector<8x32xbf16>, vector<2x32xf32> -> vector<2x32xf32>
    %554 = vector.broadcast %13 : vector<1x32xf32> to vector<2x32xf32>
    %555 = arith.addf %553, %554 : vector<2x32xf32>
    %556 = math.tanh %555 : vector<2x32xf32>
    %557 = vector.extract_strided_slice %23 {offsets = [0, 0], sizes = [2, 128], strides = [1, 1]} : vector<40x128xf32> to vector<2x128xf32>
    %558 = arith.truncf %556 : vector<2x32xf32> to vector<2x32xbf16>
    %cst_126 = arith.constant dense<0.000000e+00> : vector<2x128xf32>
    %559 = tpu.matmul %558, %3, %cst_126 {dimension_numbers = #tpu.dot_dimension_numbers<[1], [0], [0], [1], [0, 0, 1, 1], [], []>} : vector<2x32xbf16>, vector<32x128xbf16>, vector<2x128xf32> -> vector<2x128xf32>
    %560 = arith.addf %557, %559 : vector<2x128xf32>
    %561 = vector.extract_strided_slice %560 {offsets = [0, 0], sizes = [2, 32], strides = [1, 1]} : vector<2x128xf32> to vector<2x32xf32>
    %cst_127 = arith.constant 5.000000e-01 : f32
    %562 = vector.broadcast %cst_127 : f32 to vector<2x32xf32>
    %563 = arith.mulf %562, %561 : vector<2x32xf32>
    %564 = math.tanh %563 : vector<2x32xf32>
    %cst_128 = arith.constant 1.000000e+00 : f32
    %565 = vector.broadcast %cst_128 : f32 to vector<2x32xf32>
    %566 = arith.addf %564, %565 : vector<2x32xf32>
    %cst_129 = arith.constant 5.000000e-01 : f32
    %567 = vector.broadcast %cst_129 : f32 to vector<2x32xf32>
    %568 = arith.mulf %567, %566 : vector<2x32xf32>
    %569 = vector.extract_strided_slice %560 {offsets = [0, 32], sizes = [2, 32], strides = [1, 1]} : vector<2x128xf32> to vector<2x32xf32>
    %cst_130 = arith.constant 5.000000e-01 : f32
    %570 = vector.broadcast %cst_130 : f32 to vector<2x32xf32>
    %571 = arith.mulf %570, %569 : vector<2x32xf32>
    %572 = math.tanh %571 : vector<2x32xf32>
    %cst_131 = arith.constant 1.000000e+00 : f32
    %573 = vector.broadcast %cst_131 : f32 to vector<2x32xf32>
    %574 = arith.addf %572, %573 : vector<2x32xf32>
    %cst_132 = arith.constant 5.000000e-01 : f32
    %575 = vector.broadcast %cst_132 : f32 to vector<2x32xf32>
    %576 = arith.mulf %575, %574 : vector<2x32xf32>
    %577 = vector.extract_strided_slice %560 {offsets = [0, 64], sizes = [2, 32], strides = [1, 1]} : vector<2x128xf32> to vector<2x32xf32>
    %578 = vector.extract_strided_slice %560 {offsets = [0, 96], sizes = [2, 32], strides = [1, 1]} : vector<2x128xf32> to vector<2x32xf32>
    %579 = arith.mulf %568, %578 : vector<2x32xf32>
    %580 = arith.addf %577, %579 : vector<2x32xf32>
    %581 = math.tanh %580 : vector<2x32xf32>
    %cst_133 = arith.constant 1.000000e+00 : f32
    %582 = vector.broadcast %cst_133 : f32 to vector<2x32xf32>
    %583 = arith.subf %582, %576 : vector<2x32xf32>
    %584 = arith.mulf %583, %581 : vector<2x32xf32>
    %585 = arith.mulf %576, %556 : vector<2x32xf32>
    %586 = arith.addf %584, %585 : vector<2x32xf32>
    %587 = arith.truncf %586 : vector<2x32xf32> to vector<2x32xbf16>
    %cst_134 = arith.constant dense<0.000000e+00> : vector<2x64xf32>
    %588 = tpu.matmul %587, %4, %cst_134 {dimension_numbers = #tpu.dot_dimension_numbers<[1], [0], [0], [1], [0, 0, 1, 1], [], []>} : vector<2x32xbf16>, vector<32x64xbf16>, vector<2x64xf32> -> vector<2x64xf32>
    %589 = vector.broadcast %11 : vector<1x64xf32> to vector<2x64xf32>
    %590 = arith.addf %588, %589 : vector<2x64xf32>
    %591 = vector.extract_strided_slice %590 {offsets = [0, 0], sizes = [2, 32], strides = [1, 1]} : vector<2x64xf32> to vector<2x32xf32>
    %cst_135 = arith.constant 5.000000e-01 : f32
    %592 = vector.broadcast %cst_135 : f32 to vector<2x32xf32>
    %593 = arith.mulf %592, %591 : vector<2x32xf32>
    %594 = math.tanh %593 : vector<2x32xf32>
    %cst_136 = arith.constant 1.000000e+00 : f32
    %595 = vector.broadcast %cst_136 : f32 to vector<2x32xf32>
    %596 = arith.addf %594, %595 : vector<2x32xf32>
    %cst_137 = arith.constant 5.000000e-01 : f32
    %597 = vector.broadcast %cst_137 : f32 to vector<2x32xf32>
    %598 = arith.mulf %597, %596 : vector<2x32xf32>
    %599 = vector.extract_strided_slice %590 {offsets = [0, 32], sizes = [2, 32], strides = [1, 1]} : vector<2x64xf32> to vector<2x32xf32>
    %600 = arith.mulf %598, %599 : vector<2x32xf32>
    %cst_138 = arith.constant 0.000000e+00 : f32
    %601 = vector.broadcast %cst_138 : f32 to vector<1x1xf32>
    %c0_139 = arith.constant 0 : index
    %c0_140 = arith.constant 0 : index
    %c0_141 = arith.constant 0 : index
    %602 = vector.load %arg3[%c0_139, %c0_140, %c0_141] : memref<4x2x128xf32, #tpu.memory_space<vmem>>, vector<1x2x128xf32>
    %603 = vector.shape_cast %602 : vector<1x2x128xf32> to vector<2x128xf32>
    %604 = vector.extract_strided_slice %603 {offsets = [0, 0], sizes = [2, 1], strides = [1, 1]} : vector<2x128xf32> to vector<2x1xf32>
    %605 = vector.broadcast %604 : vector<2x1xf32> to vector<2x32xf32>
    %606 = arith.mulf %605, %586 : vector<2x32xf32>
    %607 = vector.extract_strided_slice %603 {offsets = [0, 8], sizes = [2, 1], strides = [1, 1]} : vector<2x128xf32> to vector<2x1xf32>
    %608 = vector.broadcast %607 : vector<2x1xf32> to vector<2x32xf32>
    %609 = arith.mulf %608, %586 : vector<2x32xf32>
    %610 = arith.truncf %606 : vector<2x32xf32> to vector<2x32xbf16>
    %cst_142 = arith.constant dense<0.000000e+00> : vector<2x128xf32>
    %611 = tpu.matmul %610, %6, %cst_142 {dimension_numbers = #tpu.dot_dimension_numbers<[1], [0], [0], [1], [0, 0, 1, 1], [], []>} : vector<2x32xbf16>, vector<32x128xbf16>, vector<2x128xf32> -> vector<2x128xf32>
    %612 = arith.truncf %609 : vector<2x32xf32> to vector<2x32xbf16>
    %cst_143 = arith.constant dense<0.000000e+00> : vector<2x128xf32>
    %613 = tpu.matmul %612, %7, %cst_143 {dimension_numbers = #tpu.dot_dimension_numbers<[1], [0], [0], [1], [0, 0, 1, 1], [], []>} : vector<2x32xbf16>, vector<32x128xbf16>, vector<2x128xf32> -> vector<2x128xf32>
    %614 = arith.addf %611, %613 : vector<2x128xf32>
    %615 = vector.broadcast %14 : vector<1x128xf32> to vector<2x128xf32>
    %616 = arith.addf %614, %615 : vector<2x128xf32>
    %cst_144 = arith.constant 0.000000e+00 : f32
    %617 = vector.broadcast %cst_144 : f32 to vector<2x128xf32>
    %618 = arith.maximumf %616, %617 : vector<2x128xf32>
    %619 = arith.truncf %618 : vector<2x128xf32> to vector<2x128xbf16>
    %cst_145 = arith.constant dense<0.000000e+00> : vector<2x4xf32>
    %620 = tpu.matmul %619, %8, %cst_145 {dimension_numbers = #tpu.dot_dimension_numbers<[1], [0], [0], [1], [0, 0, 1, 1], [], []>} : vector<2x128xbf16>, vector<128x4xbf16>, vector<2x4xf32> -> vector<2x4xf32>
    %621 = vector.broadcast %15 : vector<1x4xf32> to vector<2x4xf32>
    %622 = arith.addf %620, %621 : vector<2x4xf32>
    %cst_146 = arith.constant dense<0xFF800000> : vector<2xf32>
    %623 = vector.multi_reduction <maximumf>, %622, %cst_146 [1] : vector<2x4xf32> to vector<2xf32>
    %624 = vector.shape_cast %623 : vector<2xf32> to vector<2x1xf32>
    %625 = vector.broadcast %624 : vector<2x1xf32> to vector<2x4xf32>
    %626 = arith.subf %622, %625 : vector<2x4xf32>
    %627 = math.exp %626 : vector<2x4xf32>
    %cst_147 = arith.constant dense<0.000000e+00> : vector<2xf32>
    %628 = vector.multi_reduction <add>, %627, %cst_147 [1] : vector<2x4xf32> to vector<2xf32>
    %629 = vector.shape_cast %628 : vector<2xf32> to vector<2x1xf32>
    %630 = math.log %629 : vector<2x1xf32>
    %631 = arith.addf %624, %630 : vector<2x1xf32>
    %632 = vector.broadcast %631 : vector<2x1xf32> to vector<2x4xf32>
    %633 = arith.subf %622, %632 : vector<2x4xf32>
    %cst_148 = arith.constant 0.000000e+00 : f32
    %634 = vector.broadcast %cst_148 : f32 to vector<2x4xf32>
    %635 = arith.subf %634, %633 : vector<2x4xf32>
    %636 = vector.extract_strided_slice %603 {offsets = [0, 24], sizes = [2, 4], strides = [1, 1]} : vector<2x128xf32> to vector<2x4xf32>
    %637 = arith.mulf %635, %636 : vector<2x4xf32>
    %638 = vector.shape_cast %637 : vector<2x4xf32> to vector<1x2x4xf32>
    %cst_149 = arith.constant dense<0.000000e+00> : vector<1xf32>
    %639 = vector.multi_reduction <add>, %638, %cst_149 [1, 2] : vector<1x2x4xf32> to vector<1xf32>
    %640 = vector.shape_cast %639 : vector<1xf32> to vector<1x1x1xf32>
    %641 = vector.extract %640[0, 0, 0] : f32 from vector<1x1x1xf32>
    %642 = vector.broadcast %641 : f32 to vector<1x1xf32>
    %643 = arith.addf %601, %642 : vector<1x1xf32>
    %644 = vector.extract_strided_slice %603 {offsets = [0, 16], sizes = [2, 1], strides = [1, 1]} : vector<2x128xf32> to vector<2x1xf32>
    %645 = vector.broadcast %644 : vector<2x1xf32> to vector<2x32xf32>
    %646 = arith.mulf %645, %600 : vector<2x32xf32>
    %647 = vector.extract_strided_slice %23 {offsets = [8, 0], sizes = [2, 128], strides = [1, 1]} : vector<40x128xf32> to vector<2x128xf32>
    %648 = arith.truncf %646 : vector<2x32xf32> to vector<2x32xbf16>
    %cst_150 = arith.constant dense<0.000000e+00> : vector<2x128xf32>
    %649 = tpu.matmul %648, %3, %cst_150 {dimension_numbers = #tpu.dot_dimension_numbers<[1], [0], [0], [1], [0, 0, 1, 1], [], []>} : vector<2x32xbf16>, vector<32x128xbf16>, vector<2x128xf32> -> vector<2x128xf32>
    %650 = arith.addf %647, %649 : vector<2x128xf32>
    %651 = vector.extract_strided_slice %650 {offsets = [0, 0], sizes = [2, 32], strides = [1, 1]} : vector<2x128xf32> to vector<2x32xf32>
    %cst_151 = arith.constant 5.000000e-01 : f32
    %652 = vector.broadcast %cst_151 : f32 to vector<2x32xf32>
    %653 = arith.mulf %652, %651 : vector<2x32xf32>
    %654 = math.tanh %653 : vector<2x32xf32>
    %cst_152 = arith.constant 1.000000e+00 : f32
    %655 = vector.broadcast %cst_152 : f32 to vector<2x32xf32>
    %656 = arith.addf %654, %655 : vector<2x32xf32>
    %cst_153 = arith.constant 5.000000e-01 : f32
    %657 = vector.broadcast %cst_153 : f32 to vector<2x32xf32>
    %658 = arith.mulf %657, %656 : vector<2x32xf32>
    %659 = vector.extract_strided_slice %650 {offsets = [0, 32], sizes = [2, 32], strides = [1, 1]} : vector<2x128xf32> to vector<2x32xf32>
    %cst_154 = arith.constant 5.000000e-01 : f32
    %660 = vector.broadcast %cst_154 : f32 to vector<2x32xf32>
    %661 = arith.mulf %660, %659 : vector<2x32xf32>
    %662 = math.tanh %661 : vector<2x32xf32>
    %cst_155 = arith.constant 1.000000e+00 : f32
    %663 = vector.broadcast %cst_155 : f32 to vector<2x32xf32>
    %664 = arith.addf %662, %663 : vector<2x32xf32>
    %cst_156 = arith.constant 5.000000e-01 : f32
    %665 = vector.broadcast %cst_156 : f32 to vector<2x32xf32>
    %666 = arith.mulf %665, %664 : vector<2x32xf32>
    %667 = vector.extract_strided_slice %650 {offsets = [0, 64], sizes = [2, 32], strides = [1, 1]} : vector<2x128xf32> to vector<2x32xf32>
    %668 = vector.extract_strided_slice %650 {offsets = [0, 96], sizes = [2, 32], strides = [1, 1]} : vector<2x128xf32> to vector<2x32xf32>
    %669 = arith.mulf %658, %668 : vector<2x32xf32>
    %670 = arith.addf %667, %669 : vector<2x32xf32>
    %671 = math.tanh %670 : vector<2x32xf32>
    %cst_157 = arith.constant 1.000000e+00 : f32
    %672 = vector.broadcast %cst_157 : f32 to vector<2x32xf32>
    %673 = arith.subf %672, %666 : vector<2x32xf32>
    %674 = arith.mulf %673, %671 : vector<2x32xf32>
    %675 = arith.mulf %666, %646 : vector<2x32xf32>
    %676 = arith.addf %674, %675 : vector<2x32xf32>
    %677 = vector.extract_strided_slice %603 {offsets = [0, 32], sizes = [2, 1], strides = [1, 1]} : vector<2x128xf32> to vector<2x1xf32>
    %678 = vector.broadcast %677 : vector<2x1xf32> to vector<2x32xf32>
    %679 = arith.mulf %678, %676 : vector<2x32xf32>
    %680 = arith.truncf %679 : vector<2x32xf32> to vector<2x32xbf16>
    %cst_158 = arith.constant dense<0.000000e+00> : vector<2x64xf32>
    %681 = tpu.matmul %680, %4, %cst_158 {dimension_numbers = #tpu.dot_dimension_numbers<[1], [0], [0], [1], [0, 0, 1, 1], [], []>} : vector<2x32xbf16>, vector<32x64xbf16>, vector<2x64xf32> -> vector<2x64xf32>
    %682 = vector.broadcast %11 : vector<1x64xf32> to vector<2x64xf32>
    %683 = arith.addf %681, %682 : vector<2x64xf32>
    %684 = vector.extract_strided_slice %683 {offsets = [0, 0], sizes = [2, 32], strides = [1, 1]} : vector<2x64xf32> to vector<2x32xf32>
    %cst_159 = arith.constant 5.000000e-01 : f32
    %685 = vector.broadcast %cst_159 : f32 to vector<2x32xf32>
    %686 = arith.mulf %685, %684 : vector<2x32xf32>
    %687 = math.tanh %686 : vector<2x32xf32>
    %cst_160 = arith.constant 1.000000e+00 : f32
    %688 = vector.broadcast %cst_160 : f32 to vector<2x32xf32>
    %689 = arith.addf %687, %688 : vector<2x32xf32>
    %cst_161 = arith.constant 5.000000e-01 : f32
    %690 = vector.broadcast %cst_161 : f32 to vector<2x32xf32>
    %691 = arith.mulf %690, %689 : vector<2x32xf32>
    %692 = vector.extract_strided_slice %683 {offsets = [0, 32], sizes = [2, 32], strides = [1, 1]} : vector<2x64xf32> to vector<2x32xf32>
    %693 = arith.mulf %691, %692 : vector<2x32xf32>
    %c1_162 = arith.constant 1 : index
    %c0_163 = arith.constant 0 : index
    %c0_164 = arith.constant 0 : index
    %694 = vector.load %arg3[%c1_162, %c0_163, %c0_164] : memref<4x2x128xf32, #tpu.memory_space<vmem>>, vector<1x2x128xf32>
    %695 = vector.shape_cast %694 : vector<1x2x128xf32> to vector<2x128xf32>
    %696 = vector.extract_strided_slice %695 {offsets = [0, 0], sizes = [2, 1], strides = [1, 1]} : vector<2x128xf32> to vector<2x1xf32>
    %697 = vector.broadcast %696 : vector<2x1xf32> to vector<2x32xf32>
    %698 = arith.mulf %697, %586 : vector<2x32xf32>
    %699 = vector.extract_strided_slice %695 {offsets = [0, 1], sizes = [2, 1], strides = [1, 1]} : vector<2x128xf32> to vector<2x1xf32>
    %700 = vector.broadcast %699 : vector<2x1xf32> to vector<2x32xf32>
    %701 = arith.mulf %700, %679 : vector<2x32xf32>
    %702 = arith.addf %698, %701 : vector<2x32xf32>
    %703 = vector.extract_strided_slice %695 {offsets = [0, 8], sizes = [2, 1], strides = [1, 1]} : vector<2x128xf32> to vector<2x1xf32>
    %704 = vector.broadcast %703 : vector<2x1xf32> to vector<2x32xf32>
    %705 = arith.mulf %704, %586 : vector<2x32xf32>
    %706 = vector.extract_strided_slice %695 {offsets = [0, 9], sizes = [2, 1], strides = [1, 1]} : vector<2x128xf32> to vector<2x1xf32>
    %707 = vector.broadcast %706 : vector<2x1xf32> to vector<2x32xf32>
    %708 = arith.mulf %707, %679 : vector<2x32xf32>
    %709 = arith.addf %705, %708 : vector<2x32xf32>
    %710 = arith.truncf %702 : vector<2x32xf32> to vector<2x32xbf16>
    %cst_165 = arith.constant dense<0.000000e+00> : vector<2x128xf32>
    %711 = tpu.matmul %710, %6, %cst_165 {dimension_numbers = #tpu.dot_dimension_numbers<[1], [0], [0], [1], [0, 0, 1, 1], [], []>} : vector<2x32xbf16>, vector<32x128xbf16>, vector<2x128xf32> -> vector<2x128xf32>
    %712 = arith.truncf %709 : vector<2x32xf32> to vector<2x32xbf16>
    %cst_166 = arith.constant dense<0.000000e+00> : vector<2x128xf32>
    %713 = tpu.matmul %712, %7, %cst_166 {dimension_numbers = #tpu.dot_dimension_numbers<[1], [0], [0], [1], [0, 0, 1, 1], [], []>} : vector<2x32xbf16>, vector<32x128xbf16>, vector<2x128xf32> -> vector<2x128xf32>
    %714 = arith.addf %711, %713 : vector<2x128xf32>
    %715 = vector.broadcast %14 : vector<1x128xf32> to vector<2x128xf32>
    %716 = arith.addf %714, %715 : vector<2x128xf32>
    %cst_167 = arith.constant 0.000000e+00 : f32
    %717 = vector.broadcast %cst_167 : f32 to vector<2x128xf32>
    %718 = arith.maximumf %716, %717 : vector<2x128xf32>
    %719 = arith.truncf %718 : vector<2x128xf32> to vector<2x128xbf16>
    %cst_168 = arith.constant dense<0.000000e+00> : vector<2x4xf32>
    %720 = tpu.matmul %719, %8, %cst_168 {dimension_numbers = #tpu.dot_dimension_numbers<[1], [0], [0], [1], [0, 0, 1, 1], [], []>} : vector<2x128xbf16>, vector<128x4xbf16>, vector<2x4xf32> -> vector<2x4xf32>
    %721 = vector.broadcast %15 : vector<1x4xf32> to vector<2x4xf32>
    %722 = arith.addf %720, %721 : vector<2x4xf32>
    %cst_169 = arith.constant dense<0xFF800000> : vector<2xf32>
    %723 = vector.multi_reduction <maximumf>, %722, %cst_169 [1] : vector<2x4xf32> to vector<2xf32>
    %724 = vector.shape_cast %723 : vector<2xf32> to vector<2x1xf32>
    %725 = vector.broadcast %724 : vector<2x1xf32> to vector<2x4xf32>
    %726 = arith.subf %722, %725 : vector<2x4xf32>
    %727 = math.exp %726 : vector<2x4xf32>
    %cst_170 = arith.constant dense<0.000000e+00> : vector<2xf32>
    %728 = vector.multi_reduction <add>, %727, %cst_170 [1] : vector<2x4xf32> to vector<2xf32>
    %729 = vector.shape_cast %728 : vector<2xf32> to vector<2x1xf32>
    %730 = math.log %729 : vector<2x1xf32>
    %731 = arith.addf %724, %730 : vector<2x1xf32>
    %732 = vector.broadcast %731 : vector<2x1xf32> to vector<2x4xf32>
    %733 = arith.subf %722, %732 : vector<2x4xf32>
    %cst_171 = arith.constant 0.000000e+00 : f32
    %734 = vector.broadcast %cst_171 : f32 to vector<2x4xf32>
    %735 = arith.subf %734, %733 : vector<2x4xf32>
    %736 = vector.extract_strided_slice %695 {offsets = [0, 24], sizes = [2, 4], strides = [1, 1]} : vector<2x128xf32> to vector<2x4xf32>
    %737 = arith.mulf %735, %736 : vector<2x4xf32>
    %738 = vector.shape_cast %737 : vector<2x4xf32> to vector<1x2x4xf32>
    %cst_172 = arith.constant dense<0.000000e+00> : vector<1xf32>
    %739 = vector.multi_reduction <add>, %738, %cst_172 [1, 2] : vector<1x2x4xf32> to vector<1xf32>
    %740 = vector.shape_cast %739 : vector<1xf32> to vector<1x1x1xf32>
    %741 = vector.extract %740[0, 0, 0] : f32 from vector<1x1x1xf32>
    %742 = vector.broadcast %741 : f32 to vector<1x1xf32>
    %743 = arith.addf %643, %742 : vector<1x1xf32>
    %744 = vector.extract_strided_slice %695 {offsets = [0, 16], sizes = [2, 1], strides = [1, 1]} : vector<2x128xf32> to vector<2x1xf32>
    %745 = vector.broadcast %744 : vector<2x1xf32> to vector<2x32xf32>
    %746 = arith.mulf %745, %600 : vector<2x32xf32>
    %747 = vector.extract_strided_slice %695 {offsets = [0, 17], sizes = [2, 1], strides = [1, 1]} : vector<2x128xf32> to vector<2x1xf32>
    %748 = vector.broadcast %747 : vector<2x1xf32> to vector<2x32xf32>
    %749 = arith.mulf %748, %693 : vector<2x32xf32>
    %750 = arith.addf %746, %749 : vector<2x32xf32>
    %751 = vector.extract_strided_slice %23 {offsets = [16, 0], sizes = [2, 128], strides = [1, 1]} : vector<40x128xf32> to vector<2x128xf32>
    %752 = arith.truncf %750 : vector<2x32xf32> to vector<2x32xbf16>
    %cst_173 = arith.constant dense<0.000000e+00> : vector<2x128xf32>
    %753 = tpu.matmul %752, %3, %cst_173 {dimension_numbers = #tpu.dot_dimension_numbers<[1], [0], [0], [1], [0, 0, 1, 1], [], []>} : vector<2x32xbf16>, vector<32x128xbf16>, vector<2x128xf32> -> vector<2x128xf32>
    %754 = arith.addf %751, %753 : vector<2x128xf32>
    %755 = vector.extract_strided_slice %754 {offsets = [0, 0], sizes = [2, 32], strides = [1, 1]} : vector<2x128xf32> to vector<2x32xf32>
    %cst_174 = arith.constant 5.000000e-01 : f32
    %756 = vector.broadcast %cst_174 : f32 to vector<2x32xf32>
    %757 = arith.mulf %756, %755 : vector<2x32xf32>
    %758 = math.tanh %757 : vector<2x32xf32>
    %cst_175 = arith.constant 1.000000e+00 : f32
    %759 = vector.broadcast %cst_175 : f32 to vector<2x32xf32>
    %760 = arith.addf %758, %759 : vector<2x32xf32>
    %cst_176 = arith.constant 5.000000e-01 : f32
    %761 = vector.broadcast %cst_176 : f32 to vector<2x32xf32>
    %762 = arith.mulf %761, %760 : vector<2x32xf32>
    %763 = vector.extract_strided_slice %754 {offsets = [0, 32], sizes = [2, 32], strides = [1, 1]} : vector<2x128xf32> to vector<2x32xf32>
    %cst_177 = arith.constant 5.000000e-01 : f32
    %764 = vector.broadcast %cst_177 : f32 to vector<2x32xf32>
    %765 = arith.mulf %764, %763 : vector<2x32xf32>
    %766 = math.tanh %765 : vector<2x32xf32>
    %cst_178 = arith.constant 1.000000e+00 : f32
    %767 = vector.broadcast %cst_178 : f32 to vector<2x32xf32>
    %768 = arith.addf %766, %767 : vector<2x32xf32>
    %cst_179 = arith.constant 5.000000e-01 : f32
    %769 = vector.broadcast %cst_179 : f32 to vector<2x32xf32>
    %770 = arith.mulf %769, %768 : vector<2x32xf32>
    %771 = vector.extract_strided_slice %754 {offsets = [0, 64], sizes = [2, 32], strides = [1, 1]} : vector<2x128xf32> to vector<2x32xf32>
    %772 = vector.extract_strided_slice %754 {offsets = [0, 96], sizes = [2, 32], strides = [1, 1]} : vector<2x128xf32> to vector<2x32xf32>
    %773 = arith.mulf %762, %772 : vector<2x32xf32>
    %774 = arith.addf %771, %773 : vector<2x32xf32>
    %775 = math.tanh %774 : vector<2x32xf32>
    %cst_180 = arith.constant 1.000000e+00 : f32
    %776 = vector.broadcast %cst_180 : f32 to vector<2x32xf32>
    %777 = arith.subf %776, %770 : vector<2x32xf32>
    %778 = arith.mulf %777, %775 : vector<2x32xf32>
    %779 = arith.mulf %770, %750 : vector<2x32xf32>
    %780 = arith.addf %778, %779 : vector<2x32xf32>
    %781 = vector.extract_strided_slice %695 {offsets = [0, 32], sizes = [2, 1], strides = [1, 1]} : vector<2x128xf32> to vector<2x1xf32>
    %782 = vector.broadcast %781 : vector<2x1xf32> to vector<2x32xf32>
    %783 = arith.mulf %782, %780 : vector<2x32xf32>
    %784 = arith.truncf %783 : vector<2x32xf32> to vector<2x32xbf16>
    %cst_181 = arith.constant dense<0.000000e+00> : vector<2x64xf32>
    %785 = tpu.matmul %784, %4, %cst_181 {dimension_numbers = #tpu.dot_dimension_numbers<[1], [0], [0], [1], [0, 0, 1, 1], [], []>} : vector<2x32xbf16>, vector<32x64xbf16>, vector<2x64xf32> -> vector<2x64xf32>
    %786 = vector.broadcast %11 : vector<1x64xf32> to vector<2x64xf32>
    %787 = arith.addf %785, %786 : vector<2x64xf32>
    %788 = vector.extract_strided_slice %787 {offsets = [0, 0], sizes = [2, 32], strides = [1, 1]} : vector<2x64xf32> to vector<2x32xf32>
    %cst_182 = arith.constant 5.000000e-01 : f32
    %789 = vector.broadcast %cst_182 : f32 to vector<2x32xf32>
    %790 = arith.mulf %789, %788 : vector<2x32xf32>
    %791 = math.tanh %790 : vector<2x32xf32>
    %cst_183 = arith.constant 1.000000e+00 : f32
    %792 = vector.broadcast %cst_183 : f32 to vector<2x32xf32>
    %793 = arith.addf %791, %792 : vector<2x32xf32>
    %cst_184 = arith.constant 5.000000e-01 : f32
    %794 = vector.broadcast %cst_184 : f32 to vector<2x32xf32>
    %795 = arith.mulf %794, %793 : vector<2x32xf32>
    %796 = vector.extract_strided_slice %787 {offsets = [0, 32], sizes = [2, 32], strides = [1, 1]} : vector<2x64xf32> to vector<2x32xf32>
    %797 = arith.mulf %795, %796 : vector<2x32xf32>
    %c2_185 = arith.constant 2 : index
    %c0_186 = arith.constant 0 : index
    %c0_187 = arith.constant 0 : index
    %798 = vector.load %arg3[%c2_185, %c0_186, %c0_187] : memref<4x2x128xf32, #tpu.memory_space<vmem>>, vector<1x2x128xf32>
    %799 = vector.shape_cast %798 : vector<1x2x128xf32> to vector<2x128xf32>
    %800 = vector.extract_strided_slice %799 {offsets = [0, 0], sizes = [2, 1], strides = [1, 1]} : vector<2x128xf32> to vector<2x1xf32>
    %801 = vector.broadcast %800 : vector<2x1xf32> to vector<2x32xf32>
    %802 = arith.mulf %801, %586 : vector<2x32xf32>
    %803 = vector.extract_strided_slice %799 {offsets = [0, 1], sizes = [2, 1], strides = [1, 1]} : vector<2x128xf32> to vector<2x1xf32>
    %804 = vector.broadcast %803 : vector<2x1xf32> to vector<2x32xf32>
    %805 = arith.mulf %804, %679 : vector<2x32xf32>
    %806 = vector.extract_strided_slice %799 {offsets = [0, 2], sizes = [2, 1], strides = [1, 1]} : vector<2x128xf32> to vector<2x1xf32>
    %807 = vector.broadcast %806 : vector<2x1xf32> to vector<2x32xf32>
    %808 = arith.mulf %807, %783 : vector<2x32xf32>
    %809 = arith.addf %802, %805 : vector<2x32xf32>
    %810 = arith.addf %809, %808 : vector<2x32xf32>
    %811 = vector.extract_strided_slice %799 {offsets = [0, 8], sizes = [2, 1], strides = [1, 1]} : vector<2x128xf32> to vector<2x1xf32>
    %812 = vector.broadcast %811 : vector<2x1xf32> to vector<2x32xf32>
    %813 = arith.mulf %812, %586 : vector<2x32xf32>
    %814 = vector.extract_strided_slice %799 {offsets = [0, 9], sizes = [2, 1], strides = [1, 1]} : vector<2x128xf32> to vector<2x1xf32>
    %815 = vector.broadcast %814 : vector<2x1xf32> to vector<2x32xf32>
    %816 = arith.mulf %815, %679 : vector<2x32xf32>
    %817 = vector.extract_strided_slice %799 {offsets = [0, 10], sizes = [2, 1], strides = [1, 1]} : vector<2x128xf32> to vector<2x1xf32>
    %818 = vector.broadcast %817 : vector<2x1xf32> to vector<2x32xf32>
    %819 = arith.mulf %818, %783 : vector<2x32xf32>
    %820 = arith.addf %813, %816 : vector<2x32xf32>
    %821 = arith.addf %820, %819 : vector<2x32xf32>
    %822 = arith.truncf %810 : vector<2x32xf32> to vector<2x32xbf16>
    %cst_188 = arith.constant dense<0.000000e+00> : vector<2x128xf32>
    %823 = tpu.matmul %822, %6, %cst_188 {dimension_numbers = #tpu.dot_dimension_numbers<[1], [0], [0], [1], [0, 0, 1, 1], [], []>} : vector<2x32xbf16>, vector<32x128xbf16>, vector<2x128xf32> -> vector<2x128xf32>
    %824 = arith.truncf %821 : vector<2x32xf32> to vector<2x32xbf16>
    %cst_189 = arith.constant dense<0.000000e+00> : vector<2x128xf32>
    %825 = tpu.matmul %824, %7, %cst_189 {dimension_numbers = #tpu.dot_dimension_numbers<[1], [0], [0], [1], [0, 0, 1, 1], [], []>} : vector<2x32xbf16>, vector<32x128xbf16>, vector<2x128xf32> -> vector<2x128xf32>
    %826 = arith.addf %823, %825 : vector<2x128xf32>
    %827 = vector.broadcast %14 : vector<1x128xf32> to vector<2x128xf32>
    %828 = arith.addf %826, %827 : vector<2x128xf32>
    %cst_190 = arith.constant 0.000000e+00 : f32
    %829 = vector.broadcast %cst_190 : f32 to vector<2x128xf32>
    %830 = arith.maximumf %828, %829 : vector<2x128xf32>
    %831 = arith.truncf %830 : vector<2x128xf32> to vector<2x128xbf16>
    %cst_191 = arith.constant dense<0.000000e+00> : vector<2x4xf32>
    %832 = tpu.matmul %831, %8, %cst_191 {dimension_numbers = #tpu.dot_dimension_numbers<[1], [0], [0], [1], [0, 0, 1, 1], [], []>} : vector<2x128xbf16>, vector<128x4xbf16>, vector<2x4xf32> -> vector<2x4xf32>
    %833 = vector.broadcast %15 : vector<1x4xf32> to vector<2x4xf32>
    %834 = arith.addf %832, %833 : vector<2x4xf32>
    %cst_192 = arith.constant dense<0xFF800000> : vector<2xf32>
    %835 = vector.multi_reduction <maximumf>, %834, %cst_192 [1] : vector<2x4xf32> to vector<2xf32>
    %836 = vector.shape_cast %835 : vector<2xf32> to vector<2x1xf32>
    %837 = vector.broadcast %836 : vector<2x1xf32> to vector<2x4xf32>
    %838 = arith.subf %834, %837 : vector<2x4xf32>
    %839 = math.exp %838 : vector<2x4xf32>
    %cst_193 = arith.constant dense<0.000000e+00> : vector<2xf32>
    %840 = vector.multi_reduction <add>, %839, %cst_193 [1] : vector<2x4xf32> to vector<2xf32>
    %841 = vector.shape_cast %840 : vector<2xf32> to vector<2x1xf32>
    %842 = math.log %841 : vector<2x1xf32>
    %843 = arith.addf %836, %842 : vector<2x1xf32>
    %844 = vector.broadcast %843 : vector<2x1xf32> to vector<2x4xf32>
    %845 = arith.subf %834, %844 : vector<2x4xf32>
    %cst_194 = arith.constant 0.000000e+00 : f32
    %846 = vector.broadcast %cst_194 : f32 to vector<2x4xf32>
    %847 = arith.subf %846, %845 : vector<2x4xf32>
    %848 = vector.extract_strided_slice %799 {offsets = [0, 24], sizes = [2, 4], strides = [1, 1]} : vector<2x128xf32> to vector<2x4xf32>
    %849 = arith.mulf %847, %848 : vector<2x4xf32>
    %850 = vector.shape_cast %849 : vector<2x4xf32> to vector<1x2x4xf32>
    %cst_195 = arith.constant dense<0.000000e+00> : vector<1xf32>
    %851 = vector.multi_reduction <add>, %850, %cst_195 [1, 2] : vector<1x2x4xf32> to vector<1xf32>
    %852 = vector.shape_cast %851 : vector<1xf32> to vector<1x1x1xf32>
    %853 = vector.extract %852[0, 0, 0] : f32 from vector<1x1x1xf32>
    %854 = vector.broadcast %853 : f32 to vector<1x1xf32>
    %855 = arith.addf %743, %854 : vector<1x1xf32>
    %856 = vector.extract_strided_slice %799 {offsets = [0, 16], sizes = [2, 1], strides = [1, 1]} : vector<2x128xf32> to vector<2x1xf32>
    %857 = vector.broadcast %856 : vector<2x1xf32> to vector<2x32xf32>
    %858 = arith.mulf %857, %600 : vector<2x32xf32>
    %859 = vector.extract_strided_slice %799 {offsets = [0, 17], sizes = [2, 1], strides = [1, 1]} : vector<2x128xf32> to vector<2x1xf32>
    %860 = vector.broadcast %859 : vector<2x1xf32> to vector<2x32xf32>
    %861 = arith.mulf %860, %693 : vector<2x32xf32>
    %862 = vector.extract_strided_slice %799 {offsets = [0, 18], sizes = [2, 1], strides = [1, 1]} : vector<2x128xf32> to vector<2x1xf32>
    %863 = vector.broadcast %862 : vector<2x1xf32> to vector<2x32xf32>
    %864 = arith.mulf %863, %797 : vector<2x32xf32>
    %865 = arith.addf %858, %861 : vector<2x32xf32>
    %866 = arith.addf %865, %864 : vector<2x32xf32>
    %867 = vector.extract_strided_slice %23 {offsets = [24, 0], sizes = [2, 128], strides = [1, 1]} : vector<40x128xf32> to vector<2x128xf32>
    %868 = arith.truncf %866 : vector<2x32xf32> to vector<2x32xbf16>
    %cst_196 = arith.constant dense<0.000000e+00> : vector<2x128xf32>
    %869 = tpu.matmul %868, %3, %cst_196 {dimension_numbers = #tpu.dot_dimension_numbers<[1], [0], [0], [1], [0, 0, 1, 1], [], []>} : vector<2x32xbf16>, vector<32x128xbf16>, vector<2x128xf32> -> vector<2x128xf32>
    %870 = arith.addf %867, %869 : vector<2x128xf32>
    %871 = vector.extract_strided_slice %870 {offsets = [0, 0], sizes = [2, 32], strides = [1, 1]} : vector<2x128xf32> to vector<2x32xf32>
    %cst_197 = arith.constant 5.000000e-01 : f32
    %872 = vector.broadcast %cst_197 : f32 to vector<2x32xf32>
    %873 = arith.mulf %872, %871 : vector<2x32xf32>
    %874 = math.tanh %873 : vector<2x32xf32>
    %cst_198 = arith.constant 1.000000e+00 : f32
    %875 = vector.broadcast %cst_198 : f32 to vector<2x32xf32>
    %876 = arith.addf %874, %875 : vector<2x32xf32>
    %cst_199 = arith.constant 5.000000e-01 : f32
    %877 = vector.broadcast %cst_199 : f32 to vector<2x32xf32>
    %878 = arith.mulf %877, %876 : vector<2x32xf32>
    %879 = vector.extract_strided_slice %870 {offsets = [0, 32], sizes = [2, 32], strides = [1, 1]} : vector<2x128xf32> to vector<2x32xf32>
    %cst_200 = arith.constant 5.000000e-01 : f32
    %880 = vector.broadcast %cst_200 : f32 to vector<2x32xf32>
    %881 = arith.mulf %880, %879 : vector<2x32xf32>
    %882 = math.tanh %881 : vector<2x32xf32>
    %cst_201 = arith.constant 1.000000e+00 : f32
    %883 = vector.broadcast %cst_201 : f32 to vector<2x32xf32>
    %884 = arith.addf %882, %883 : vector<2x32xf32>
    %cst_202 = arith.constant 5.000000e-01 : f32
    %885 = vector.broadcast %cst_202 : f32 to vector<2x32xf32>
    %886 = arith.mulf %885, %884 : vector<2x32xf32>
    %887 = vector.extract_strided_slice %870 {offsets = [0, 64], sizes = [2, 32], strides = [1, 1]} : vector<2x128xf32> to vector<2x32xf32>
    %888 = vector.extract_strided_slice %870 {offsets = [0, 96], sizes = [2, 32], strides = [1, 1]} : vector<2x128xf32> to vector<2x32xf32>
    %889 = arith.mulf %878, %888 : vector<2x32xf32>
    %890 = arith.addf %887, %889 : vector<2x32xf32>
    %891 = math.tanh %890 : vector<2x32xf32>
    %cst_203 = arith.constant 1.000000e+00 : f32
    %892 = vector.broadcast %cst_203 : f32 to vector<2x32xf32>
    %893 = arith.subf %892, %886 : vector<2x32xf32>
    %894 = arith.mulf %893, %891 : vector<2x32xf32>
    %895 = arith.mulf %886, %866 : vector<2x32xf32>
    %896 = arith.addf %894, %895 : vector<2x32xf32>
    %897 = vector.extract_strided_slice %799 {offsets = [0, 32], sizes = [2, 1], strides = [1, 1]} : vector<2x128xf32> to vector<2x1xf32>
    %898 = vector.broadcast %897 : vector<2x1xf32> to vector<2x32xf32>
    %899 = arith.mulf %898, %896 : vector<2x32xf32>
    %c3_204 = arith.constant 3 : index
    %c0_205 = arith.constant 0 : index
    %c0_206 = arith.constant 0 : index
    %900 = vector.load %arg3[%c3_204, %c0_205, %c0_206] : memref<4x2x128xf32, #tpu.memory_space<vmem>>, vector<1x2x128xf32>
    %901 = vector.shape_cast %900 : vector<1x2x128xf32> to vector<2x128xf32>
    %902 = vector.extract_strided_slice %901 {offsets = [0, 0], sizes = [2, 1], strides = [1, 1]} : vector<2x128xf32> to vector<2x1xf32>
    %903 = vector.broadcast %902 : vector<2x1xf32> to vector<2x32xf32>
    %904 = arith.mulf %903, %586 : vector<2x32xf32>
    %905 = vector.extract_strided_slice %901 {offsets = [0, 1], sizes = [2, 1], strides = [1, 1]} : vector<2x128xf32> to vector<2x1xf32>
    %906 = vector.broadcast %905 : vector<2x1xf32> to vector<2x32xf32>
    %907 = arith.mulf %906, %679 : vector<2x32xf32>
    %908 = vector.extract_strided_slice %901 {offsets = [0, 2], sizes = [2, 1], strides = [1, 1]} : vector<2x128xf32> to vector<2x1xf32>
    %909 = vector.broadcast %908 : vector<2x1xf32> to vector<2x32xf32>
    %910 = arith.mulf %909, %783 : vector<2x32xf32>
    %911 = vector.extract_strided_slice %901 {offsets = [0, 3], sizes = [2, 1], strides = [1, 1]} : vector<2x128xf32> to vector<2x1xf32>
    %912 = vector.broadcast %911 : vector<2x1xf32> to vector<2x32xf32>
    %913 = arith.mulf %912, %899 : vector<2x32xf32>
    %914 = arith.addf %904, %907 : vector<2x32xf32>
    %915 = arith.addf %910, %913 : vector<2x32xf32>
    %916 = arith.addf %914, %915 : vector<2x32xf32>
    %917 = vector.extract_strided_slice %901 {offsets = [0, 8], sizes = [2, 1], strides = [1, 1]} : vector<2x128xf32> to vector<2x1xf32>
    %918 = vector.broadcast %917 : vector<2x1xf32> to vector<2x32xf32>
    %919 = arith.mulf %918, %586 : vector<2x32xf32>
    %920 = vector.extract_strided_slice %901 {offsets = [0, 9], sizes = [2, 1], strides = [1, 1]} : vector<2x128xf32> to vector<2x1xf32>
    %921 = vector.broadcast %920 : vector<2x1xf32> to vector<2x32xf32>
    %922 = arith.mulf %921, %679 : vector<2x32xf32>
    %923 = vector.extract_strided_slice %901 {offsets = [0, 10], sizes = [2, 1], strides = [1, 1]} : vector<2x128xf32> to vector<2x1xf32>
    %924 = vector.broadcast %923 : vector<2x1xf32> to vector<2x32xf32>
    %925 = arith.mulf %924, %783 : vector<2x32xf32>
    %926 = vector.extract_strided_slice %901 {offsets = [0, 11], sizes = [2, 1], strides = [1, 1]} : vector<2x128xf32> to vector<2x1xf32>
    %927 = vector.broadcast %926 : vector<2x1xf32> to vector<2x32xf32>
    %928 = arith.mulf %927, %899 : vector<2x32xf32>
    %929 = arith.addf %919, %922 : vector<2x32xf32>
    %930 = arith.addf %925, %928 : vector<2x32xf32>
    %931 = arith.addf %929, %930 : vector<2x32xf32>
    %932 = arith.truncf %916 : vector<2x32xf32> to vector<2x32xbf16>
    %cst_207 = arith.constant dense<0.000000e+00> : vector<2x128xf32>
    %933 = tpu.matmul %932, %6, %cst_207 {dimension_numbers = #tpu.dot_dimension_numbers<[1], [0], [0], [1], [0, 0, 1, 1], [], []>} : vector<2x32xbf16>, vector<32x128xbf16>, vector<2x128xf32> -> vector<2x128xf32>
    %934 = arith.truncf %931 : vector<2x32xf32> to vector<2x32xbf16>
    %cst_208 = arith.constant dense<0.000000e+00> : vector<2x128xf32>
    %935 = tpu.matmul %934, %7, %cst_208 {dimension_numbers = #tpu.dot_dimension_numbers<[1], [0], [0], [1], [0, 0, 1, 1], [], []>} : vector<2x32xbf16>, vector<32x128xbf16>, vector<2x128xf32> -> vector<2x128xf32>
    %936 = arith.addf %933, %935 : vector<2x128xf32>
    %937 = vector.broadcast %14 : vector<1x128xf32> to vector<2x128xf32>
    %938 = arith.addf %936, %937 : vector<2x128xf32>
    %cst_209 = arith.constant 0.000000e+00 : f32
    %939 = vector.broadcast %cst_209 : f32 to vector<2x128xf32>
    %940 = arith.maximumf %938, %939 : vector<2x128xf32>
    %941 = arith.truncf %940 : vector<2x128xf32> to vector<2x128xbf16>
    %cst_210 = arith.constant dense<0.000000e+00> : vector<2x4xf32>
    %942 = tpu.matmul %941, %8, %cst_210 {dimension_numbers = #tpu.dot_dimension_numbers<[1], [0], [0], [1], [0, 0, 1, 1], [], []>} : vector<2x128xbf16>, vector<128x4xbf16>, vector<2x4xf32> -> vector<2x4xf32>
    %943 = vector.broadcast %15 : vector<1x4xf32> to vector<2x4xf32>
    %944 = arith.addf %942, %943 : vector<2x4xf32>
    %cst_211 = arith.constant dense<0xFF800000> : vector<2xf32>
    %945 = vector.multi_reduction <maximumf>, %944, %cst_211 [1] : vector<2x4xf32> to vector<2xf32>
    %946 = vector.shape_cast %945 : vector<2xf32> to vector<2x1xf32>
    %947 = vector.broadcast %946 : vector<2x1xf32> to vector<2x4xf32>
    %948 = arith.subf %944, %947 : vector<2x4xf32>
    %949 = math.exp %948 : vector<2x4xf32>
    %cst_212 = arith.constant dense<0.000000e+00> : vector<2xf32>
    %950 = vector.multi_reduction <add>, %949, %cst_212 [1] : vector<2x4xf32> to vector<2xf32>
    %951 = vector.shape_cast %950 : vector<2xf32> to vector<2x1xf32>
    %952 = math.log %951 : vector<2x1xf32>
    %953 = arith.addf %946, %952 : vector<2x1xf32>
    %954 = vector.broadcast %953 : vector<2x1xf32> to vector<2x4xf32>
    %955 = arith.subf %944, %954 : vector<2x4xf32>
    %cst_213 = arith.constant 0.000000e+00 : f32
    %956 = vector.broadcast %cst_213 : f32 to vector<2x4xf32>
    %957 = arith.subf %956, %955 : vector<2x4xf32>
    %958 = vector.extract_strided_slice %901 {offsets = [0, 24], sizes = [2, 4], strides = [1, 1]} : vector<2x128xf32> to vector<2x4xf32>
    %959 = arith.mulf %957, %958 : vector<2x4xf32>
    %960 = vector.shape_cast %959 : vector<2x4xf32> to vector<1x2x4xf32>
    %cst_214 = arith.constant dense<0.000000e+00> : vector<1xf32>
    %961 = vector.multi_reduction <add>, %960, %cst_214 [1, 2] : vector<1x2x4xf32> to vector<1xf32>
    %962 = vector.shape_cast %961 : vector<1xf32> to vector<1x1x1xf32>
    %963 = vector.extract %962[0, 0, 0] : f32 from vector<1x1x1xf32>
    %964 = vector.broadcast %963 : f32 to vector<1x1xf32>
    %965 = arith.addf %855, %964 : vector<1x1xf32>
    %cst_215 = arith.constant 1.000000e-03 : f32
    %966 = vector.broadcast %cst_215 : f32 to vector<1x1xf32>
    %967 = arith.mulf %966, %550 : vector<1x1xf32>
    %968 = arith.addf %965, %967 : vector<1x1xf32>
    %cst_216 = arith.constant 0.000000e+00 : f32
    %969 = vector.broadcast %cst_216 : f32 to vector<8x128xf32>
    %970 = vector.broadcast %968 : vector<1x1xf32> to vector<8x128xf32>
    %971 = arith.addf %969, %970 : vector<8x128xf32>
    %c0_217 = arith.constant 0 : index
    %c0_218 = arith.constant 0 : index
    %972 = vector.load %arg7[%c0_217, %c0_218] : memref<8x128xf32, #tpu.memory_space<vmem>>, vector<8x128xf32>
    tpu.vector_store %arg7[%c0_217, %c0_218], %971 {strides = array<i32>} : memref<8x128xf32, #tpu.memory_space<vmem>>, vector<8x128xf32>,
    return
  }
}

</mosaic_0001>

<bundles_post_ra>
// kernel: tpu_custom_call.1
= control target key start
LH: loop header
LB: loop body
LE: loop exit
PB: predicated region body
PF: predicated region fallthrough
CT: control target
= control target key end

     0   :  { %12 = vsyncpa [#allocation3], 0  ;;  %s4976_s0 = inlined_call_operand.vmem [shape: bf16[64,16], index: 0, kind: input, shape index: {}]   ;;  %s4977_s1 = inlined_call_operand.vmem [shape: bf16[40,16], index: 1, kind: input, shape index: {}]   ;;  %s4978_s2 = inlined_call_operand.vmem [shape: f32[2,128], index: 2, kind: input, shape index: {}]   ;;  %s4979_s3 = inlined_call_operand.vmem [shape: f32[4,2,128], index: 3, kind: input, shape index: {}]   ;;  %s4980_s4 = inlined_call_operand.hbm [shape: bf16[352,128], index: 4, kind: input, shape index: {}]   ;;  %s4981_s5 = inlined_call_operand.vmem [shape: f32[8,128], index: 5, kind: input, shape index: {}]   ;;  %s4982_s6 = inlined_call_operand.vmem [shape: bf16[8,32], index: 6, kind: input, shape index: {}]   ;;  %s4983_s7 = inlined_call_operand.hbm [shape: f32[8,128], index: 7, kind: output, shape index: {}]  }
   0x1   :  { %13 = vsyncpa [#allocation4], 0  ;;  %s4011_s24 = smov [#allocation2]   ;;  %s3963_s28 = scalar_lea.hbm %s4980_s4, 2816 }
   0x2   :  { %s27_s25 = sshll.u32 %s4011_s24, 4  ;;  %p3964_p0 = scmp.ne.s32.totalorder %s4980_s4, %s3963_s28  ;;  %s28_s25 = int_to_ptr.vmem [resolvable:$true] %s27_s25 }
   0x3   :  { %p3967_p1 = scmp.lt.u32.totalorder %s3963_s28, %s4980_s4 }
   0x5   :  { %p3969_p2 = pnand %p3967_p1, %p3964_p0 }
   0x7   :  { %3972 = shalt.err (!%p3969_p2)
}
   0x8   :  { %s3973_s10 = scalar_lea.vmem %s28_s25, 2816  ;;  %p3978_p4 = scmp.lt.s32.totalorder %s28_s25, %s28_s25 }
   0x9   :  { %p3974_p3 = scmp.ne.s32.totalorder %s28_s25, %s3973_s10  ;;  %p3979_p5 = scmp.lt.s32.totalorder %s3973_s10, %s3973_s10 }
   0xb   :  { %p3980_p6 = por %p3979_p5, %p3978_p4 }
   0xd   :  { %p3981_p7 = pnand %p3980_p6, %p3974_p3 }
   0xf   :  { %3984 = shalt.err (!%p3981_p7)
}
  0x10   :  { %s4012_s11 = smov 64   ;;  %s4013_s12 = smov 4  }
  0x11   :  { %33 = dma.hbm_to_vmem [thread:$0]  %s4980_s4, 2816, %s28_s25, [#allocation3], %s4012_s11, %s4012_s11, %s4013_s12  }
  0x12   :  { %4007 = dma.done.wait [#allocation3], 2816  }
  0x13   :  { %4008 = vsyncadd [#allocation3], 4294964480  ;;  %v4014_v0 = vmov 0.0   ;;  %vm4015_vm0 = vmmov 0   ;;  %v3838_v1 = vld [vmem:[#allocation2] sm:$0xff]   ;;  %vm131_vm1 = vcmask 130048  }
  0x14   :  { %3686 = vmatprep.subr.bf16.mxu1 %v4014_v0  ;;  %3348 = vmatprep.mubr.msk.bf16.mxu1 %vm4015_vm0, %v4014_v0  ;;  %v3839_v2 = vld [vmem:[%s4976_s0] sm:$0xff]   ;;  %v3840_v3 = vld [vmem:[%s4976_s0 + $0x8] sm:$0xff]   ;;  %v3841_v4 = vld [vmem:[#allocation2 + $0x18] sm:$0xff]   ;;  %v4016_v11 = vmov 0   ;;  %v4017_v38 = vmov 64   ;;  %s4018_s8 = smov 32  }
  0x15   :  { %3328 = vmatprep.subr.bf16.mxu0 %v3838_v1  ;;  %3330 = vmatprep.mubr.msk.bf16.mxu0 %vm131_vm1, %v3839_v2  ;;  %v3842_v5 = vld [vmem:[%s4976_s0 + $0x10] sm:$0xff]   ;;  %v3843_v6 = vld [vmem:[%s4976_s0 + $0x18] sm:$0xff]   ;;  %v3844_v7 = vld [vmem:[%s4977_s1] sm:$0xff]   ;;  %s4019_s9 = smov 96   ;;  %v4020_v60 = vmov 8   ;;  %vm314_vm2 = vcmask 261120  }
  0x16   :  { %3329 = vmatpush3.bf16.msra.mxu0 %v3838_v1  ;;  %3687 = vmatpush3.bf16.msra.mxu1 %v3841_v4  ;;  %v4158_v8 = vld [vmem:[#allocation2 + $0x8] sm:$0xff]   ;;  %v4164_v9 = vld [vmem:[#allocation2 + $0x10] sm:$0xff]   ;;  %v3111_v12 = vld [vmem:[%s4981_s5] ss:$0 sm:$0xff]  ;;  %s4063_s17 = smov 80   ;;  %vm1659_vm3 = vcmask 1043456  }
  0x17   :  { %3338 = vmatprep.subr.bf16.mxu0 %v4014_v0  ;;  %3368 = vmatprep.subr.bf16.mxu1 %v4014_v0  ;;  %v3846_v10 = vld [vmem:[%s4977_s1 + $0x8] sm:$0xff]   ;;  %v3121_v30 = vld [vmem:[%s4981_s5 + $0x1] ss:$0 sm:$0xff]  ;;  %v4214_v56 = vld [vmem:[#allocation2 + $0x30] sm:$0xff]   ;;  %s4064_s19 = smov 72   ;;  %s4065_s20 = smov 48  }
  0x18   :  { %v4205_v35 = vld [vmem:[%s4978_s2] sm:$0x3]  ;;  %3764 = vset.pattern.permute.xlu1 %v4017_v38  ;;  %v4217_v57 = vld [vmem:[#allocation2 + $0x38] sm:$0xff]   ;;  %vm1655_vm4 = vcmask 64512   ;;  %vm2073_vm5 = vcmask 25600   ;;  %s4074_s15 = smov 104  }
  0x19   :  { %3331 = vmatmul.mubr.msk.bf16.vlgmr.msra.gmra.mrb[0].mxu0 %vm131_vm1, %v3840_v3  ;;  %384 = vperm.xlu1 %3764, %v4205_v35   ;;  %vm1633_vm6 = vcmask 58368  }
  0x1a   :  { %3339 = vmatpush3.bf16.msra.mxu0 %v3841_v4  ;;  %3334 = vmatprep.mubr.msk.bf16.mxu0 %vm131_vm1, %v3842_v5 }
  0x1b   :  { %3352 = vmatprep.subr.bf16.mxu0 %v4014_v0 }
  0x1d   :  { %3765 = vset.pattern.permute.xlu1 %v4020_v60 }
  0x21   :  { %3335 = vmatmul.mubr.msk.bf16.gmra.mrb[4].mxu0 %vm131_vm1, %v3843_v6  ;;  %v3850_v6 = vld [vmem:[%s4977_s1 + $0x10] ss:$0 sps:$4 sm:$0xff]  }
  0x22   :  { %3340 = vmatprep.mubr.msk.bf16.mxu0 %vm4015_vm0, %v4014_v0  ;;  %3349 = vmatmul.mubr.msk.bf16.vlgmr.msra.gmra.mrb[0].mxu1 %vm131_vm1, %v3850_v6 }
  0x23   :  { %3369 = vmatpush3.bf16.msra.mxu1 %v4158_v8  ;;  %3372 = vmatprep.mubr.msk.bf16.mxu1 %vm4015_vm0, %v4014_v0 }
  0x24   :  { %3370 = vmatprep.subr.bf16.mxu1 %v4014_v0 }
  0x27   :  { %3371 = vmatpush3.bf16.msra.mxu1 %v4164_v9 }
  0x28   :  { %3384 = vmatprep.subr.bf16.mxu1 %v4014_v0 }
  0x29   :  { %3341 = vmatmul.mubr.msk.bf16.vlgmr.msra.gmra.mrb[8].mxu0 %vm131_vm1, %v3844_v7  ;;  %v4250_v7 = vld [vmem:[%s4981_s5 + $0x2] ss:$0 sm:$0xff] }
  0x2a   :  { %3353 = vmatpush3.bf16.msra.mxu0 %v4158_v8  ;;  %3344 = vmatprep.mubr.msk.bf16.mxu0 %vm4015_vm0, %v4014_v0 }
  0x2b   :  { %3354 = vmatprep.subr.bf16.mxu0 %v4014_v0 }
  0x2e   :  { %3355 = vmatpush3.bf16.msra.mxu0 %v4164_v9 }
  0x2f   :  { %3360 = vmatprep.subr.bf16.mxu0 %v4014_v0 }
  0x31   :  { %3345 = vmatmul.mubr.msk.bf16.gmra.mrb[12].mxu0 %vm131_vm1, %v3846_v10 }
  0x32   :  { %3356 = vmatprep.mubr.msk.bf16.mxu0 %vm4015_vm0, %v4014_v0 }
  0x39   :  { %3357 = vmatmul.mubr.bf16.vlgmr.msra.gmra.mrb[16].mxu0 %v4016_v11 }
  0x3a   :  { %3364 = vmatprep.mubr.msk.bf16.mxu0 %vm4015_vm0, %v4014_v0  ;;  %3361 = vmatpush3.bf16.msra.mxu0 %v4214_v56 }
  0x3b   :  { %3362 = vmatprep.subr.bf16.mxu0 %v4014_v0 }
  0x3e   :  { %3363 = vmatpush3.bf16.msra.mxu0 %v4217_v57 }
  0x3f   :  { %3376 = vmatprep.subr.bf16.mxu0 %v4014_v0 }
  0x98   :  { %v385_v59 = vpop.permute.xlu1 %384 }
  0xec   :  { %v3332_v13 = vpop.f32.mrb[0].mxu0 }
  0xed   :  { %v4181_v14 = vadd.f32 %v3332_v13, %v3111_v12  ;;  %v178_v15 = vpop.f32.mrb[1].mxu0 }
  0xee   :  { %v3333_v16 = vpop.f32.mrb[2].mxu0  ;;  %v179_v42 = vadd.f32 %v3111_v12, %v178_v15 }
  0xef   :  { %v4183_v17 = vadd.f32 %v3333_v16, %v3111_v12  ;;  %v181_v18 = vpop.f32.mrb[3].mxu0 }
  0xf0   :  { %v4185_v19 = vadd.f32 %v3111_v12, %v181_v18 }
  0xf4   :  { %v3336_v20 = vpop.f32.mrb[4].mxu0 }
  0xf5   :  { %v4187_v21 = vadd.f32 %v3336_v20, %v3111_v12  ;;  %v194_v22 = vpop.f32.mrb[5].mxu0  ;;  %v296_v18 = vpop.f32.mrb[0].mxu1 }
  0xf6   :  { %v4189_v23 = vadd.f32 %v3111_v12, %v194_v22  ;;  %v3337_v24 = vpop.f32.mrb[6].mxu0  ;;  %v3350_v20 = vpop.f32.mrb[1].mxu1 }
  0xf7   :  { %v4191_v25 = vadd.f32 %v3337_v24, %v3111_v12  ;;  %v197_v26 = vpop.f32.mrb[7].mxu0  ;;  %v298_v22 = vpop.f32.mrb[2].mxu1 }
  0xf8   :  { %v4193_v27 = vadd.f32 %v3111_v12, %v197_v26  ;;  %v3351_v24 = vpop.f32.mrb[3].mxu1 }
  0xfc   :  { %v4195_v28 = vpop.f32.mrb[8].mxu0 }
  0xfd   :  { %v3342_v29 = vpop.f32.mrb[9].mxu0 }
  0xfe   :  { %v283_v31 = vpop.f32.mrb[10].mxu0 }
  0xff   :  { %v4200_v32 = vadd.f32 %v3121_v30, %v283_v31  ;;  %v3343_v33 = vpop.f32.mrb[11].mxu0 }
 0x104   :  { %v288_v34 = vpop.f32.mrb[12].mxu0 }
 0x105   :  { %v4207_v36 = vadd.f32 %v3121_v30, %v288_v34  ;;  %v3346_v37 = vpop.f32.mrb[13].mxu0 }
 0x106   :  { %v291_v39 = vpop.f32.mrb[14].mxu0 }
 0x107   :  { %v4210_v40 = vadd.f32 %v3121_v30, %v291_v39  ;;  %v3347_v41 = vpop.f32.mrb[15].mxu0 }
 0x108   :  { %v4021_v41 = vmov 65  }
 0x10c   :  { %v352_v43 = vpop.f32.mrb[16].mxu0 }
 0x10d   :  { %v358_v44 = vadd.f32 %v352_v43, %v179_v42  ;;  %v3358_v45 = vpop.f32.mrb[17].mxu0 }
 0x10e   :  { %v355_v46 = vpop.f32.mrb[18].mxu0 }
 0x10f   :  { %v3359_v47 = vpop.f32.mrb[19].mxu0  ;;  %364 = vrot.lane.b32.xlu0 %v358_v44, %s4018_s8  ;;  %v359_v48 = vmul.f32 0.5, %v358_v44 }
 0x110   :  { %v4022_v47 = vmov 16  }
 0x111   :  { %3867 = vtanh.f32 %v359_v48 }
 0x11b   :  { %v3868_v49 = vpop.eup %3867 }
 0x11c   :  { %v361_v50 = vadd.f32 1.0, %v3868_v49 }
 0x11e   :  { %v362_v51 = vmul.f32 0.5, %v361_v50 }
 0x120   :  { %v374_v61 = vsub.f32 1.0, %v362_v51  ;;  %v380_v63 = vmul.f32 0.0, %v362_v51 }
 0x181   :  { %v365_v52 = vpop.permute.xlu0 %364 }
 0x182   :  { %v367_v53 = vmul.f32 %v365_v52, %v362_v51 }
 0x184   :  { %369 = vrot.lane.b32.xlu0 %v367_v53, %s4012_s11 }
 0x1f6   :  { %v370_v54 = vpop.permute.xlu0 %369 }
 0x1f7   :  { %v372_v55 = vadd.f32 %v370_v54, %v358_v44 }
 0x1f9   :  { %3869 = vtanh.f32 %v372_v55 }
 0x203   :  { %v3870_v58 = vpop.eup %3869 }
 0x204   :  { %376 = vrot.lane.b32.xlu1 %v3870_v58, %s4019_s9 }
 0x208   :  { %461 = vperm.xlu1 %3765, %v4205_v35  }
 0x20c   :  { %3766 = vset.pattern.permute.xlu1 %v4021_v41 }
 0x276   :  { %v377_v62 = vpop.permute.xlu1 %376 }
 0x277   :  { %v379_v1 = vmul.f32 %v377_v62, %v374_v61 }
 0x279   :  { %v381_v2 = vadd.f32 %v380_v63, %v379_v1 }
 0x27b   :  { %v4225_v3 = vmul.f32 %v385_v59, %v381_v2  ;;  %v4023_v59 = vmov 17  }
 0x27c   :  { %3768 = vset.pattern.permute.xlu0 %v4023_v59 }
 0x27d   :  { %v388_v4 = vpack.c.bf16 %v4225_v3, %v4225_v3 }
 0x27f   :  { %394 = vrot.lane.b32.xlu0 %v388_v4, %s4019_s9 }
 0x287   :  { %v462_v34 = vpop.permute.xlu1 %461 }
 0x2f1   :  { %v395_v5 = vpop.permute.xlu0 %394 }
 0x2f2   :  { %3365 = vmatmul.mubr.msk.bf16.vlgmr.msra.gmra.mrb[20].mxu0 %vm314_vm2, %v395_v5 }
 0x2f3   :  { %3377 = vmatpush3.bf16.msra.mxu0 %v4214_v56  ;;  %3380 = vmatprep.mubr.msk.bf16.mxu0 %vm4015_vm0, %v4014_v0 }
 0x2f4   :  { %3378 = vmatprep.subr.bf16.mxu0 %v4014_v0 }
 0x2f7   :  { %3379 = vmatpush3.bf16.msra.mxu0 %v4217_v57 }
 0x2f8   :  { %3392 = vmatprep.subr.bf16.mxu0 %v4014_v0 }
 0x3c5   :  { %v445_v10 = vpop.f32.mrb[20].mxu0 }
 0x3c6   :  { %v446_v12 = vadd.f32 %v4250_v7, %v445_v10  ;;  %v3366_v13 = vpop.f32.mrb[21].mxu0 }
 0x3c7   :  { %v448_v15 = vpop.f32.mrb[22].mxu0 }
 0x3c8   :  { %456 = vrot.lane.b32.xlu0 %v446_v12, %s4019_s9  ;;  %v3367_v16 = vpop.f32.mrb[23].mxu0  ;;  %v451_v26 = vmul.f32 0.5, %v446_v12 }
 0x3ca   :  { %3871 = vtanh.f32 %v451_v26 }
 0x3d4   :  { %v3872_v29 = vpop.eup %3871 }
 0x3d5   :  { %v453_v30 = vadd.f32 1.0, %v3872_v29 }
 0x3d7   :  { %v454_v31 = vmul.f32 0.5, %v453_v30 }
 0x43a   :  { %v457_v33 = vpop.permute.xlu0 %456 }
 0x43b   :  { %v4254_v37 = vmul.f32 %v457_v33, %v454_v31 }
 0x43d   :  { %v464_v38 = vmul.f32 %v462_v34, %v4254_v37 }
 0x43f   :  { %v465_v39 = vpack.c.bf16 %v464_v38, %v464_v38 }
 0x441   :  { %3373 = vmatmul.mubr.msk.bf16.vlgmr.msra.gmra.mrb[4].mxu1 %vm314_vm2, %v465_v39 }
 0x442   :  { %3385 = vmatpush3.bf16.msra.mxu1 %v4158_v8  ;;  %3388 = vmatprep.mubr.msk.bf16.mxu1 %vm4015_vm0, %v4014_v0 }
 0x443   :  { %3386 = vmatprep.subr.bf16.mxu1 %v4014_v0 }
 0x446   :  { %3387 = vmatpush3.bf16.msra.mxu1 %v4164_v9 }
 0x447   :  { %3400 = vmatprep.subr.bf16.mxu1 %v4014_v0 }
 0x514   :  { %v503_v42 = vpop.f32.mrb[4].mxu1 }
 0x515   :  { %v509_v43 = vadd.f32 %v503_v42, %v4185_v19  ;;  %v3374_v44 = vpop.f32.mrb[5].mxu1  ;;  %v4024_v42 = vmov 66  }
 0x516   :  { %v506_v45 = vpop.f32.mrb[6].mxu1 }
 0x517   :  { %515 = vrot.lane.b32.xlu1 %v509_v43, %s4018_s8  ;;  %v3375_v46 = vpop.f32.mrb[7].mxu1  ;;  %v510_v48 = vmul.f32 0.5, %v509_v43 }
 0x519   :  { %3873 = vtanh.f32 %v510_v48 }
 0x51b   :  { %538 = vperm.xlu1 %3766, %v4205_v35  }
 0x51f   :  { %532 = vrot.lane.b32.xlu1 %v464_v38, %s4018_s8 }
 0x520   :  { %3767 = vset.pattern.permute.xlu1 %v4022_v47 }
 0x523   :  { %599 = vperm.xlu1 %3767, %v4205_v35   ;;  %v3874_v49 = vpop.eup %3873 }
 0x524   :  { %v512_v50 = vadd.f32 1.0, %v3874_v49  ;;  %v4025_v49 = vmov 24  }
 0x526   :  { %v513_v51 = vmul.f32 0.5, %v512_v50 }
 0x527   :  { %3769 = vset.pattern.permute.xlu1 %v4024_v42 }
 0x528   :  { %v525_v62 = vsub.f32 1.0, %v513_v51 }
 0x589   :  { %v516_v19 = vpop.permute.xlu1 %515 }
 0x58a   :  { %v518_v52 = vmul.f32 %v516_v19, %v513_v51 }
 0x58c   :  { %520 = vrot.lane.b32.xlu0 %v518_v52, %s4012_s11 }
 0x59a   :  { %v539_v58 = vpop.permute.xlu1 %538 }
 0x59e   :  { %v533_v61 = vpop.permute.xlu1 %532 }
 0x59f   :  { %v535_v1 = vmul.f32 %v533_v61, %v513_v51 }
 0x5a2   :  { %v600_v26 = vpop.permute.xlu1 %599 }
 0x5a3   :  { %v602_v34 = vmul.f32 %v600_v26, %v4254_v37 }
 0x5fe   :  { %v521_v53 = vpop.permute.xlu0 %520 }
 0x5ff   :  { %v523_v54 = vadd.f32 %v521_v53, %v509_v43 }
 0x601   :  { %3875 = vtanh.f32 %v523_v54 }
 0x60b   :  { %v3876_v55 = vpop.eup %3875 }
 0x60c   :  { %527 = vrot.lane.b32.xlu0 %v3876_v55, %s4019_s9 }
 0x67e   :  { %v528_v63 = vpop.permute.xlu0 %527 }
 0x67f   :  { %v530_v2 = vmul.f32 %v528_v63, %v525_v62 }
 0x681   :  { %v536_v4 = vadd.f32 %v535_v1, %v530_v2 }
 0x683   :  { %v4273_v5 = vmul.f32 %v539_v58, %v536_v4  ;;  %v4026_v58 = vmov 25  }
 0x685   :  { %v542_v6 = vpack.c.bf16 %v4273_v5, %v4273_v5 }
 0x687   :  { %544 = vrot.lane.b32.xlu0 %v542_v6, %s4019_s9 }
 0x68b   :  { %604 = vperm.xlu0 %3768, %v4205_v35  }
 0x68f   :  { %3771 = vset.pattern.permute.xlu0 %v4026_v58  ;;  %v4028_v58 = vmov 67  }
 0x6f9   :  { %v545_v10 = vpop.permute.xlu0 %544 }
 0x6fa   :  { %3381 = vmatmul.mubr.msk.bf16.vlgmr.msra.gmra.mrb[24].mxu0 %vm314_vm2, %v545_v10 }
 0x6fb   :  { %3393 = vmatpush3.bf16.msra.mxu0 %v4214_v56  ;;  %3396 = vmatprep.mubr.msk.bf16.mxu0 %vm4015_vm0, %v4014_v0 }
 0x6fc   :  { %3394 = vmatprep.subr.bf16.mxu0 %v4014_v0 }
 0x6ff   :  { %3395 = vmatpush3.bf16.msra.mxu0 %v4217_v57 }
 0x700   :  { %3408 = vmatprep.subr.bf16.mxu0 %v4014_v0 }
 0x70a   :  { %v605_v31 = vpop.permute.xlu0 %604 }
 0x7cd   :  { %v583_v12 = vpop.f32.mrb[24].mxu0 }
 0x7ce   :  { %v584_v13 = vadd.f32 %v4250_v7, %v583_v12  ;;  %v3382_v15 = vpop.f32.mrb[25].mxu0 }
 0x7cf   :  { %v586_v16 = vpop.f32.mrb[26].mxu0  ;;  %v4027_v15 = vmov 26  }
 0x7d0   :  { %594 = vrot.lane.b32.xlu1 %v584_v13, %s4019_s9  ;;  %v3383_v18 = vpop.f32.mrb[27].mxu0  ;;  %v589_v20 = vmul.f32 0.5, %v584_v13 }
 0x7d2   :  { %3877 = vtanh.f32 %v589_v20 }
 0x7dc   :  { %v3878_v22 = vpop.eup %3877 }
 0x7dd   :  { %v591_v24 = vadd.f32 1.0, %v3878_v22 }
 0x7df   :  { %v592_v29 = vmul.f32 0.5, %v591_v24 }
 0x842   :  { %v595_v30 = vpop.permute.xlu1 %594 }
 0x843   :  { %v4288_v33 = vmul.f32 %v595_v30, %v592_v29 }
 0x845   :  { %v607_v38 = vmul.f32 %v605_v31, %v4288_v33 }
 0x847   :  { %v608_v39 = vadd.f32 %v607_v38, %v602_v34 }
 0x849   :  { %v609_v41 = vpack.c.bf16 %v608_v39, %v608_v39 }
 0x84b   :  { %3389 = vmatmul.mubr.msk.bf16.vlgmr.msra.gmra.mrb[8].mxu1 %vm314_vm2, %v609_v41 }
 0x84c   :  { %3401 = vmatpush3.bf16.msra.mxu1 %v4158_v8  ;;  %3404 = vmatprep.mubr.msk.bf16.mxu1 %vm4015_vm0, %v4014_v0 }
 0x84d   :  { %3402 = vmatprep.subr.bf16.mxu1 %v4014_v0 }
 0x850   :  { %3403 = vmatpush3.bf16.msra.mxu1 %v4164_v9 }
 0x851   :  { %3416 = vmatprep.subr.bf16.mxu1 %v4014_v0 }
 0x91e   :  { %v647_v43 = vpop.f32.mrb[8].mxu1 }
 0x91f   :  { %v653_v44 = vadd.f32 %v647_v43, %v4181_v14  ;;  %v3390_v45 = vpop.f32.mrb[9].mxu1 }
 0x920   :  { %v650_v46 = vpop.f32.mrb[10].mxu1 }
 0x921   :  { %659 = vrot.lane.b32.xlu1 %v653_v44, %s4018_s8  ;;  %v3391_v48 = vpop.f32.mrb[11].mxu1  ;;  %v654_v50 = vmul.f32 0.5, %v653_v44 }
 0x923   :  { %3879 = vtanh.f32 %v654_v50 }
 0x925   :  { %682 = vperm.xlu1 %3769, %v4205_v35  }
 0x929   :  { %676 = vrot.lane.b32.xlu1 %v608_v39, %s4018_s8 }
 0x92a   :  { %3770 = vset.pattern.permute.xlu1 %v4025_v49 }
 0x92d   :  { %743 = vperm.xlu1 %3770, %v4205_v35   ;;  %v3880_v51 = vpop.eup %3879 }
 0x92e   :  { %v656_v19 = vadd.f32 1.0, %v3880_v51 }
 0x930   :  { %v657_v52 = vmul.f32 0.5, %v656_v19 }
 0x931   :  { %3772 = vset.pattern.permute.xlu1 %v4027_v15 }
 0x932   :  { %v669_v1 = vsub.f32 1.0, %v657_v52  ;;  %753 = vperm.xlu1 %3772, %v4205_v35  }
 0x993   :  { %v660_v53 = vpop.permute.xlu1 %659 }
 0x994   :  { %v662_v14 = vmul.f32 %v660_v53, %v657_v52 }
 0x996   :  { %664 = vrot.lane.b32.xlu0 %v662_v14, %s4012_s11 }
 0x9a4   :  { %v683_v62 = vpop.permute.xlu1 %682 }
 0x9a8   :  { %v677_v63 = vpop.permute.xlu1 %676 }
 0x9a9   :  { %v679_v4 = vmul.f32 %v677_v63, %v657_v52 }
 0x9ac   :  { %v744_v30 = vpop.permute.xlu1 %743 }
 0x9b1   :  { %v754_v34 = vpop.permute.xlu1 %753 }
 0xa08   :  { %v665_v54 = vpop.permute.xlu0 %664 }
 0xa09   :  { %v667_v55 = vadd.f32 %v665_v54, %v653_v44  ;;  %v746_v44 = vmul.f32 %v744_v30, %v4254_v37 }
 0xa0b   :  { %3881 = vtanh.f32 %v667_v55 }
 0xa15   :  { %v3882_v61 = vpop.eup %3881 }
 0xa16   :  { %671 = vrot.lane.b32.xlu0 %v3882_v61, %s4019_s9 }
 0xa88   :  { %v672_v2 = vpop.permute.xlu0 %671 }
 0xa89   :  { %v674_v6 = vmul.f32 %v672_v2, %v669_v1  ;;  %v4029_v2 = vmov 32  }
 0xa8a   :  { %3774 = vset.pattern.permute.xlu1 %v4029_v2 }
 0xa8b   :  { %v680_v10 = vadd.f32 %v679_v4, %v674_v6 }
 0xa8d   :  { %v4306_v12 = vmul.f32 %v683_v62, %v680_v10  ;;  %v4030_v10 = vmov 33  }
 0xa8f   :  { %v686_v13 = vpack.c.bf16 %v4306_v12, %v4306_v12 }
 0xa91   :  { %688 = vrot.lane.b32.xlu0 %v686_v13, %s4019_s9  ;;  %v4031_v13 = vmov 34  }
 0xa95   :  { %748 = vperm.xlu0 %3771, %v4205_v35  }
 0xa99   :  { %3773 = vset.pattern.permute.xlu0 %v4028_v58 }
 0xb03   :  { %v689_v16 = vpop.permute.xlu0 %688 }
 0xb04   :  { %3397 = vmatmul.mubr.msk.bf16.vlgmr.msra.gmra.mrb[28].mxu0 %vm314_vm2, %v689_v16 }
 0xb05   :  { %3409 = vmatpush3.bf16.msra.mxu0 %v4214_v56  ;;  %3412 = vmatprep.mubr.msk.bf16.mxu0 %vm4015_vm0, %v4014_v0 }
 0xb06   :  { %3410 = vmatprep.subr.bf16.mxu0 %v4014_v0 }
 0xb09   :  { %3411 = vmatpush3.bf16.msra.mxu0 %v4217_v57 }
 0xb0a   :  { %3424 = vmatprep.subr.bf16.mxu0 %v4014_v0 }
 0xb14   :  { %v749_v39 = vpop.permute.xlu0 %748 }
 0xb15   :  { %v751_v41 = vmul.f32 %v749_v39, %v4288_v33 }
 0xb17   :  { %v757_v46 = vadd.f32 %v751_v41, %v746_v44 }
 0xbd7   :  { %v727_v18 = vpop.f32.mrb[28].mxu0 }
 0xbd8   :  { %v728_v20 = vadd.f32 %v4250_v7, %v727_v18  ;;  %v3398_v22 = vpop.f32.mrb[29].mxu0 }
 0xbd9   :  { %v730_v24 = vpop.f32.mrb[30].mxu0 }
 0xbda   :  { %738 = vrot.lane.b32.xlu1 %v728_v20, %s4019_s9  ;;  %v3399_v26 = vpop.f32.mrb[31].mxu0  ;;  %v733_v29 = vmul.f32 0.5, %v728_v20 }
 0xbdc   :  { %3883 = vtanh.f32 %v733_v29 }
 0xbe6   :  { %v3884_v31 = vpop.eup %3883 }
 0xbe7   :  { %v735_v38 = vadd.f32 1.0, %v3884_v31  ;;  %v4032_v31 = vmov 35  }
 0xbe9   :  { %v736_v42 = vmul.f32 0.5, %v735_v38 }
 0xc4c   :  { %v739_v43 = vpop.permute.xlu1 %738 }
 0xc4d   :  { %v4324_v45 = vmul.f32 %v739_v43, %v736_v42 }
 0xc4f   :  { %v756_v48 = vmul.f32 %v754_v34, %v4324_v45 }
 0xc51   :  { %v758_v49 = vadd.f32 %v757_v46, %v756_v48 }
 0xc53   :  { %v759_v50 = vpack.c.bf16 %v758_v49, %v758_v49 }
 0xc55   :  { %3405 = vmatmul.mubr.msk.bf16.vlgmr.msra.gmra.mrb[12].mxu1 %vm314_vm2, %v759_v50 }
 0xc56   :  { %3417 = vmatpush3.bf16.msra.mxu1 %v4158_v8  ;;  %3420 = vmatprep.mubr.msk.bf16.mxu1 %vm4015_vm0, %v4014_v0 }
 0xc57   :  { %3418 = vmatprep.subr.bf16.mxu1 %v4014_v0 }
 0xc5a   :  { %3419 = vmatpush3.bf16.msra.mxu1 %v4164_v9 }
 0xc5b   :  { %3432 = vmatprep.subr.bf16.mxu1 %v4014_v0 }
 0xd28   :  { %v797_v51 = vpop.f32.mrb[12].mxu1 }
 0xd29   :  { %v803_v19 = vadd.f32 %v797_v51, %v4183_v17  ;;  %v3406_v52 = vpop.f32.mrb[13].mxu1 }
 0xd2a   :  { %v800_v53 = vpop.f32.mrb[14].mxu1 }
 0xd2b   :  { %809 = vrot.lane.b32.xlu0 %v803_v19, %s4018_s8  ;;  %v3407_v14 = vpop.f32.mrb[15].mxu1  ;;  %v804_v54 = vmul.f32 0.5, %v803_v19 }
 0xd2d   :  { %3885 = vtanh.f32 %v804_v54 }
 0xd2f   :  { %832 = vperm.xlu0 %3773, %v4205_v35  }
 0xd33   :  { %3775 = vset.pattern.permute.xlu0 %v4030_v10 }
 0xd37   :  { %v3886_v55 = vpop.eup %3885 }
 0xd38   :  { %v806_v61 = vadd.f32 1.0, %v3886_v55 }
 0xd3a   :  { %v807_v62 = vmul.f32 0.5, %v806_v61 }
 0xd3c   :  { %v819_v16 = vsub.f32 1.0, %v807_v62 }
 0xd9d   :  { %v810_v63 = vpop.permute.xlu0 %809 }
 0xd9e   :  { %v812_v1 = vmul.f32 %v810_v63, %v807_v62 }
 0xda0   :  { %814 = vrot.lane.b32.xlu1 %v812_v1, %s4012_s11 }
 0xdae   :  { %v833_v24 = vpop.permute.xlu0 %832 }
 0xe12   :  { %v815_v17 = vpop.permute.xlu1 %814 }
 0xe13   :  { %v817_v4 = vadd.f32 %v815_v17, %v803_v19 }
 0xe15   :  { %3887 = vtanh.f32 %v817_v4  ;;  %v4033_v4 = vmov 68  }
 0xe1f   :  { %v3888_v6 = vpop.eup %3887 }
 0xe20   :  { %821 = vrot.lane.b32.xlu1 %v3888_v6, %s4019_s9 }
 0xe24   :  { %826 = vrot.lane.b32.xlu1 %v758_v49, %s4018_s8 }
 0xe28   :  { %893 = vperm.xlu1 %3774, %v4205_v35  }
 0xe2c   :  { %3776 = vset.pattern.permute.xlu1 %v4031_v13 }
 0xe2d   :  { %903 = vperm.xlu1 %3776, %v4205_v35  }
 0xe31   :  { %3777 = vset.pattern.permute.xlu1 %v4032_v31 }
 0xe32   :  { %908 = vperm.xlu1 %3777, %v4205_v35  }
 0xe36   :  { %3778 = vset.pattern.permute.xlu1 %v4033_v4 }
 0xe92   :  { %v822_v15 = vpop.permute.xlu1 %821 }
 0xe93   :  { %v824_v20 = vmul.f32 %v822_v15, %v819_v16 }
 0xe96   :  { %v827_v18 = vpop.permute.xlu1 %826 }
 0xe97   :  { %v829_v22 = vmul.f32 %v827_v18, %v807_v62  ;;  %v4034_v18 = vmov 40  }
 0xe99   :  { %v830_v26 = vadd.f32 %v829_v22, %v824_v20  ;;  %v4035_v20 = vmov 42   ;;  %v4036_v22 = vmov 43  }
 0xe9b   :  { %v4343_v29 = vmul.f32 %v833_v24, %v830_v26 }
 0xe9d   :  { %v836_v30 = vpack.c.bf16 %v4343_v29, %v4343_v29 }
 0xe9f   :  { %838 = vrot.lane.b32.xlu0 %v836_v30, %s4019_s9 }
 0xea3   :  { %898 = vperm.xlu0 %3775, %v4205_v35  }
 0xea7   :  { %v894_v46 = vpop.permute.xlu1 %893 }
 0xea8   :  { %v896_v55 = vmul.f32 %v894_v46, %v4254_v37 }
 0xeac   :  { %v904_v50 = vpop.permute.xlu1 %903 }
 0xead   :  { %v906_v58 = vmul.f32 %v904_v50, %v4324_v45 }
 0xeb1   :  { %v909_v53 = vpop.permute.xlu1 %908 }
 0xf11   :  { %v839_v34 = vpop.permute.xlu0 %838 }
 0xf12   :  { %3413 = vmatmul.mubr.msk.bf16.vlgmr.msra.gmra.mrb[32].mxu0 %vm314_vm2, %v839_v34 }
 0xf13   :  { %3425 = vmatpush3.bf16.msra.mxu0 %v4214_v56  ;;  %3428 = vmatprep.mubr.msk.bf16.mxu0 %vm4015_vm0, %v4014_v0 }
 0xf14   :  { %3426 = vmatprep.subr.bf16.mxu0 %v4014_v0 }
 0xf17   :  { %3427 = vmatpush3.bf16.msra.mxu0 %v4217_v57 }
 0xf18   :  { %3440 = vmatprep.subr.bf16.mxu0 %v4014_v0 }
 0xf22   :  { %v899_v51 = vpop.permute.xlu0 %898 }
 0xf23   :  { %v901_v14 = vmul.f32 %v899_v51, %v4288_v33 }
 0xf25   :  { %v912_v62 = vadd.f32 %v901_v14, %v896_v55 }
 0xfe5   :  { %v877_v38 = vpop.f32.mrb[32].mxu0 }
 0xfe6   :  { %v878_v39 = vadd.f32 %v4250_v7, %v877_v38  ;;  %v3414_v41 = vpop.f32.mrb[33].mxu0 }
 0xfe7   :  { %v880_v42 = vpop.f32.mrb[34].mxu0  ;;  %v4037_v41 = vmov 41  }
 0xfe8   :  { %888 = vrot.lane.b32.xlu0 %v878_v39, %s4019_s9  ;;  %v3415_v43 = vpop.f32.mrb[35].mxu0  ;;  %v883_v44 = vmul.f32 0.5, %v878_v39 }
 0xfe9   :  { %3780 = vset.pattern.permute.xlu0 %v4037_v41 }
 0xfea   :  { %3889 = vtanh.f32 %v883_v44 }
 0xff4   :  { %v3890_v48 = vpop.eup %3889 }
 0xff5   :  { %v885_v49 = vadd.f32 1.0, %v3890_v48 }
 0xff7   :  { %v886_v19 = vmul.f32 0.5, %v885_v49 }
0x105a   :  { %v889_v52 = vpop.permute.xlu0 %888 }
0x105b   :  { %v4360_v54 = vmul.f32 %v889_v52, %v886_v19 }
0x105d   :  { %v911_v61 = vmul.f32 %v909_v53, %v4360_v54  ;;  %v4038_v53 = vmov 44  }
0x105f   :  { %v913_v63 = vadd.f32 %v911_v61, %v906_v58 }
0x1061   :  { %v914_v1 = vadd.f32 %v913_v63, %v912_v62 }
0x1063   :  { %v915_v17 = vpack.c.bf16 %v914_v1, %v914_v1 }
0x1065   :  { %3421 = vmatmul.mubr.msk.bf16.vlgmr.msra.gmra.mrb[16].mxu1 %vm314_vm2, %v915_v17 }
0x1066   :  { %3433 = vmatpush3.bf16.msra.mxu1 %v4158_v8  ;;  %3436 = vmatprep.mubr.msk.bf16.mxu1 %vm4015_vm0, %v4014_v0 }
0x1067   :  { %3434 = vmatprep.subr.bf16.mxu1 %v4014_v0 }
0x106a   :  { %3435 = vmatpush3.bf16.msra.mxu1 %v4164_v9 }
0x106b   :  { %3448 = vmatprep.subr.bf16.mxu1 %v4014_v0 }
0x1138   :  { %v953_v6 = vpop.f32.mrb[16].mxu1 }
0x1139   :  { %v959_v10 = vadd.f32 %v953_v6, %v4189_v23  ;;  %v3422_v13 = vpop.f32.mrb[17].mxu1 }
0x113a   :  { %v956_v15 = vpop.f32.mrb[18].mxu1 }
0x113b   :  { %965 = vrot.lane.b32.xlu1 %v959_v10, %s4018_s8  ;;  %v3423_v16 = vpop.f32.mrb[19].mxu1  ;;  %v960_v23 = vmul.f32 0.5, %v959_v10 }
0x113d   :  { %3891 = vtanh.f32 %v960_v23 }
0x113f   :  { %988 = vperm.xlu1 %3778, %v4205_v35  }
0x1143   :  { %982 = vrot.lane.b32.xlu1 %v914_v1, %s4018_s8 }
0x1144   :  { %3779 = vset.pattern.permute.xlu1 %v4034_v18 }
0x1147   :  { %1049 = vperm.xlu1 %3779, %v4205_v35   ;;  %v3892_v24 = vpop.eup %3891 }
0x1148   :  { %v962_v26 = vadd.f32 1.0, %v3892_v24 }
0x114a   :  { %v963_v30 = vmul.f32 0.5, %v962_v26 }
0x114b   :  { %3781 = vset.pattern.permute.xlu1 %v4035_v20 }
0x114c   :  { %1059 = vperm.xlu1 %3781, %v4205_v35   ;;  %v975_v46 = vsub.f32 1.0, %v963_v30 }
0x1150   :  { %3782 = vset.pattern.permute.xlu1 %v4036_v22 }
0x1151   :  { %1064 = vperm.xlu1 %3782, %v4205_v35  }
0x11ad   :  { %v966_v31 = vpop.permute.xlu1 %965 }
0x11ae   :  { %v968_v34 = vmul.f32 %v966_v31, %v963_v30 }
0x11b0   :  { %970 = vrot.lane.b32.xlu0 %v968_v34, %s4012_s11 }
0x11be   :  { %v989_v43 = vpop.permute.xlu1 %988 }
0x11c2   :  { %v983_v44 = vpop.permute.xlu1 %982 }
0x11c3   :  { %v985_v49 = vmul.f32 %v983_v44, %v963_v30 }
0x11c6   :  { %v1050_v17 = vpop.permute.xlu1 %1049 }
0x11c7   :  { %v1052_v18 = vmul.f32 %v1050_v17, %v4254_v37 }
0x11cb   :  { %v1060_v4 = vpop.permute.xlu1 %1059 }
0x11cc   :  { %v1062_v22 = vmul.f32 %v1060_v4, %v4324_v45 }
0x11d0   :  { %v1065_v13 = vpop.permute.xlu1 %1064 }
0x11d1   :  { %v1067_v20 = vmul.f32 %v1065_v13, %v4360_v54 }
0x11d3   :  { %v1074_v31 = vadd.f32 %v1067_v20, %v1062_v22  ;;  %v4044_v22 = vmov 52  }
0x1222   :  { %v971_v38 = vpop.permute.xlu0 %970 }
0x1223   :  { %v973_v39 = vadd.f32 %v971_v38, %v959_v10 }
0x1225   :  { %3893 = vtanh.f32 %v973_v39 }
0x122f   :  { %v3894_v42 = vpop.eup %3893 }
0x1230   :  { %977 = vrot.lane.b32.xlu0 %v3894_v42, %s4019_s9 }
0x12a2   :  { %v978_v48 = vpop.permute.xlu0 %977 }
0x12a3   :  { %v980_v50 = vmul.f32 %v978_v48, %v975_v46 }
0x12a5   :  { %v986_v51 = vadd.f32 %v985_v49, %v980_v50 }
0x12a7   :  { %v4381_v19 = vmul.f32 %v989_v43, %v986_v51  ;;  %v4039_v43 = vmov 69   ;;  %v4042_v51 = vmov 51  }
0x12a8   :  { %3784 = vset.pattern.permute.xlu1 %v4039_v43 }
0x12a9   :  { %v992_v52 = vpack.c.bf16 %v4381_v19, %v4381_v19 }
0x12ab   :  { %994 = vrot.lane.b32.xlu0 %v992_v52, %s4019_s9 }
0x12af   :  { %1054 = vperm.xlu0 %3780, %v4205_v35  }
0x12b3   :  { %3783 = vset.pattern.permute.xlu0 %v4038_v53 }
0x12b4   :  { %1069 = vperm.xlu0 %3783, %v4205_v35  }
0x131d   :  { %v995_v14 = vpop.permute.xlu0 %994 }
0x131e   :  { %3429 = vmatmul.mubr.msk.bf16.vlgmr.msra.gmra.mrb[36].mxu0 %vm314_vm2, %v995_v14 }
0x131f   :  { %3441 = vmatpush3.bf16.msra.mxu0 %v4214_v56  ;;  %3444 = vmatprep.mubr.msk.bf16.mxu0 %vm4015_vm0, %v4014_v0 }
0x1320   :  { %3442 = vmatprep.subr.bf16.mxu0 %v4014_v0 }
0x1323   :  { %3443 = vmatpush3.bf16.msra.mxu0 %v4217_v57 }
0x1324   :  { %3456 = vmatprep.subr.bf16.mxu0 %v4014_v0 }
0x132e   :  { %v1055_v10 = vpop.permute.xlu0 %1054 }
0x132f   :  { %v1057_v15 = vmul.f32 %v1055_v10, %v4288_v33 }
0x1331   :  { %v1073_v23 = vadd.f32 %v1057_v15, %v1052_v18 }
0x1333   :  { %v1070_v30 = vpop.permute.xlu0 %1069  ;;  %v1075_v38 = vadd.f32 %v1074_v31, %v1073_v23  ;;  %v4045_v23 = vmov 53  }
0x13f1   :  { %v1033_v55 = vpop.f32.mrb[36].mxu0 }
0x13f2   :  { %v1034_v58 = vadd.f32 %v4250_v7, %v1033_v55  ;;  %v3430_v61 = vpop.f32.mrb[37].mxu0 }
0x13f3   :  { %v1036_v62 = vpop.f32.mrb[38].mxu0 }
0x13f4   :  { %1044 = vrot.lane.b32.xlu1 %v1034_v58, %s4019_s9  ;;  %v3431_v63 = vpop.f32.mrb[39].mxu0  ;;  %v1039_v1 = vmul.f32 0.5, %v1034_v58 }
0x13f5   :  { %v4043_v63 = vmov 49  }
0x13f6   :  { %3895 = vtanh.f32 %v1039_v1  ;;  %3786 = vset.pattern.permute.xlu0 %v4043_v63 }
0x1400   :  { %v3896_v6 = vpop.eup %3895 }
0x1401   :  { %v1041_v16 = vadd.f32 1.0, %v3896_v6 }
0x1403   :  { %v1042_v24 = vmul.f32 0.5, %v1041_v16 }
0x1466   :  { %v1045_v26 = vpop.permute.xlu1 %1044 }
0x1467   :  { %v4401_v34 = vmul.f32 %v1045_v26, %v1042_v24 }
0x1469   :  { %v1072_v39 = vmul.f32 %v1070_v30, %v4401_v34 }
0x146b   :  { %v1076_v41 = vadd.f32 %v1075_v38, %v1072_v39 }
0x146d   :  { %v1077_v42 = vpack.c.bf16 %v1076_v41, %v1076_v41 }
0x146f   :  { %3437 = vmatmul.mubr.msk.bf16.vlgmr.msra.gmra.mrb[20].mxu1 %vm314_vm2, %v1077_v42 }
0x1470   :  { %3449 = vmatpush3.bf16.msra.mxu1 %v4158_v8  ;;  %3452 = vmatprep.mubr.msk.bf16.mxu1 %vm4015_vm0, %v4014_v0  ;;  %v4040_v8 = vmov 48  }
0x1471   :  { %3450 = vmatprep.subr.bf16.mxu1 %v4014_v0 }
0x1474   :  { %3451 = vmatpush3.bf16.msra.mxu1 %v4164_v9  ;;  %v4041_v9 = vmov 50  }
0x1475   :  { %3464 = vmatprep.subr.bf16.mxu1 %v4014_v0 }
0x1542   :  { %v1115_v44 = vpop.f32.mrb[20].mxu1 }
0x1543   :  { %v1121_v46 = vadd.f32 %v1115_v44, %v4193_v27  ;;  %v3438_v48 = vpop.f32.mrb[21].mxu1 }
0x1544   :  { %v1118_v49 = vpop.f32.mrb[22].mxu1 }
0x1545   :  { %1127 = vrot.lane.b32.xlu1 %v1121_v46, %s4018_s8  ;;  %v3439_v50 = vpop.f32.mrb[23].mxu1  ;;  %v1122_v27 = vmul.f32 0.5, %v1121_v46 }
0x1547   :  { %3897 = vtanh.f32 %v1122_v27 }
0x1549   :  { %1150 = vperm.xlu1 %3784, %v4205_v35  }
0x154d   :  { %1144 = vrot.lane.b32.xlu1 %v1076_v41, %s4018_s8 }
0x154e   :  { %3785 = vset.pattern.permute.xlu1 %v4040_v8 }
0x1551   :  { %1211 = vperm.xlu1 %3785, %v4205_v35   ;;  %v3898_v52 = vpop.eup %3897 }
0x1552   :  { %v1124_v53 = vadd.f32 1.0, %v3898_v52 }
0x1554   :  { %v1125_v14 = vmul.f32 0.5, %v1124_v53 }
0x1555   :  { %3787 = vset.pattern.permute.xlu1 %v4041_v9 }
0x1556   :  { %1221 = vperm.xlu1 %3787, %v4205_v35   ;;  %v1137_v6 = vsub.f32 1.0, %v1125_v14 }
0x155a   :  { %3788 = vset.pattern.permute.xlu1 %v4042_v51 }
0x155b   :  { %1226 = vperm.xlu1 %3788, %v4205_v35  }
0x155f   :  { %3790 = vset.pattern.permute.xlu1 %v4045_v23  ;;  %v4046_v23 = vmov 70  }
0x1560   :  { %1236 = vperm.xlu1 %3790, %v4205_v35  }
0x15b7   :  { %v1128_v55 = vpop.permute.xlu1 %1127 }
0x15b8   :  { %v1130_v58 = vmul.f32 %v1128_v55, %v1125_v14 }
0x15ba   :  { %1132 = vrot.lane.b32.xlu0 %v1130_v58, %s4012_s11 }
0x15c8   :  { %v1151_v17 = vpop.permute.xlu1 %1150 }
0x15cc   :  { %v1145_v4 = vpop.permute.xlu1 %1144 }
0x15cd   :  { %v1147_v13 = vmul.f32 %v1145_v4, %v1125_v14  ;;  %v3956_v4 = vld [vmem:[#allocation2 + $0x10] sm:$0xff]  }
0x15d0   :  { %v1212_v39 = vpop.permute.xlu1 %1211 }
0x15d1   :  { %v1214_v49 = vmul.f32 %v1212_v39, %v4254_v37 }
0x162c   :  { %v1133_v61 = vpop.permute.xlu0 %1132 }
0x162d   :  { %v1135_v62 = vadd.f32 %v1133_v61, %v1121_v46 }
0x162f   :  { %3899 = vtanh.f32 %v1135_v62 }
0x1639   :  { %v3900_v1 = vpop.eup %3899 }
0x163a   :  { %1139 = vrot.lane.b32.xlu0 %v3900_v1, %s4019_s9 }
0x16ac   :  { %v1140_v10 = vpop.permute.xlu0 %1139 }
0x16ad   :  { %v1142_v15 = vmul.f32 %v1140_v10, %v1137_v6 }
0x16af   :  { %v1148_v16 = vadd.f32 %v1147_v13, %v1142_v15 }
0x16b1   :  { %v4420_v18 = vmul.f32 %v1151_v17, %v1148_v16  ;;  %v3955_v17 = vld [vmem:[#allocation2 + $0x8] sm:$0xff]  }
0x16b3   :  { %v1154_v20 = vpack.c.bf16 %v4420_v18, %v4420_v18 }
0x16b5   :  { %1156 = vrot.lane.b32.xlu0 %v1154_v20, %s4019_s9 }
0x16b9   :  { %1216 = vperm.xlu0 %3786, %v4205_v35  }
0x16bd   :  { %3789 = vset.pattern.permute.xlu0 %v4044_v22 }
0x16be   :  { %1231 = vperm.xlu0 %3789, %v4205_v35  }
0x16c2   :  { %3791 = vset.pattern.permute.xlu0 %v4046_v23 }
0x1727   :  { %v1157_v24 = vpop.permute.xlu0 %1156 }
0x1728   :  { %3445 = vmatmul.mubr.msk.bf16.vlgmr.msra.gmra.mrb[40].mxu0 %vm314_vm2, %v1157_v24  ;;  %v4455_v24 = vld [vmem:[%s4978_s2] sm:$0x3] }
0x1729   :  { %3457 = vmatpush3.bf16.msra.mxu0 %v4214_v56  ;;  %3460 = vmatprep.mubr.msk.bf16.mxu0 %vm4015_vm0, %v4014_v0  ;;  %v1222_v56 = vpop.permute.xlu1 %1221 }
0x172a   :  { %3458 = vmatprep.subr.bf16.mxu0 %v4014_v0  ;;  %v1224_v27 = vmul.f32 %v1222_v56, %v4324_v45  ;;  %v4048_v56 = vmov 57  }
0x172d   :  { %3459 = vmatpush3.bf16.msra.mxu0 %v4217_v57  ;;  %v1227_v42 = vpop.permute.xlu1 %1226 }
0x172e   :  { %3472 = vmatprep.subr.bf16.mxu0 %v4014_v0  ;;  %v1229_v50 = vmul.f32 %v1227_v42, %v4360_v54  ;;  %v4049_v42 = vmov 58  }
0x1730   :  { %v1241_v14 = vadd.f32 %v1229_v50, %v1224_v27 }
0x1731   :  { %v1237_v46 = vpop.permute.xlu1 %1236 }
0x1738   :  { %v1217_v44 = vpop.permute.xlu0 %1216 }
0x1739   :  { %v1219_v57 = vmul.f32 %v1217_v44, %v4288_v33  ;;  %v4051_v44 = vmov 61  }
0x173b   :  { %v1240_v52 = vadd.f32 %v1219_v57, %v1214_v49 }
0x173d   :  { %v1232_v9 = vpop.permute.xlu0 %1231  ;;  %v1243_v61 = vadd.f32 %v1241_v14, %v1240_v52  ;;  %v4052_v52 = vmov 60   ;;  %v4053_v14 = vmov 62  }
0x173e   :  { %v1234_v55 = vmul.f32 %v1232_v9, %v4401_v34 }
0x17fb   :  { %v1195_v26 = vpop.f32.mrb[40].mxu0 }
0x17fc   :  { %v1196_v30 = vadd.f32 %v4250_v7, %v1195_v26  ;;  %v3446_v31 = vpop.f32.mrb[41].mxu0 }
0x17fd   :  { %v1198_v38 = vpop.f32.mrb[42].mxu0 }
0x17fe   :  { %1206 = vrot.lane.b32.xlu1 %v1196_v30, %s4019_s9  ;;  %v3447_v35 = vpop.f32.mrb[43].mxu0  ;;  %v1201_v41 = vmul.f32 0.5, %v1196_v30  ;;  %v4047_v38 = vmov 56  }
0x17ff   :  { %3792 = vset.pattern.permute.xlu1 %v4047_v38 }
0x1800   :  { %3901 = vtanh.f32 %v1201_v41 }
0x180a   :  { %v3902_v43 = vpop.eup %3901 }
0x180b   :  { %v1203_v48 = vadd.f32 1.0, %v3902_v43  ;;  %v4050_v43 = vmov 59  }
0x180d   :  { %v1204_v8 = vmul.f32 0.5, %v1203_v48 }
0x1870   :  { %v1207_v51 = vpop.permute.xlu1 %1206 }
0x1871   :  { %v4441_v53 = vmul.f32 %v1207_v51, %v1204_v8 }
0x1873   :  { %v1239_v58 = vmul.f32 %v1237_v46, %v4441_v53 }
0x1875   :  { %v1242_v62 = vadd.f32 %v1239_v58, %v1234_v55 }
0x1877   :  { %v1244_v63 = vadd.f32 %v1243_v61, %v1242_v62 }
0x1879   :  { %v1245_v1 = vpack.c.bf16 %v1244_v63, %v1244_v63 }
0x187b   :  { %3453 = vmatmul.mubr.msk.bf16.vlgmr.msra.gmra.mrb[24].mxu1 %vm314_vm2, %v1245_v1 }
0x187c   :  { %3465 = vmatpush3.bf16.msra.mxu1 %v3955_v17  ;;  %3468 = vmatprep.mubr.msk.bf16.mxu1 %vm4015_vm0, %v4014_v0 }
0x187d   :  { %3466 = vmatprep.subr.bf16.mxu1 %v4014_v0 }
0x1880   :  { %3467 = vmatpush3.bf16.msra.mxu1 %v3956_v4 }
0x1881   :  { %3480 = vmatprep.subr.bf16.mxu1 %v4014_v0 }
0x194e   :  { %v1283_v6 = vpop.f32.mrb[24].mxu1 }
0x194f   :  { %v1289_v10 = vadd.f32 %v1283_v6, %v4187_v21  ;;  %v3454_v13 = vpop.f32.mrb[25].mxu1 }
0x1950   :  { %v1286_v15 = vpop.f32.mrb[26].mxu1 }
0x1951   :  { %1295 = vrot.lane.b32.xlu0 %v1289_v10, %s4018_s8  ;;  %v3455_v16 = vpop.f32.mrb[27].mxu1  ;;  %v1290_v20 = vmul.f32 0.5, %v1289_v10 }
0x1953   :  { %3903 = vtanh.f32 %v1290_v20 }
0x1955   :  { %1318 = vperm.xlu0 %3791, %v4455_v24  }
0x1959   :  { %3793 = vset.pattern.permute.xlu0 %v4048_v56 }
0x195d   :  { %v3904_v22 = vpop.eup %3903 }
0x195e   :  { %v1292_v26 = vadd.f32 1.0, %v3904_v22 }
0x1960   :  { %v1293_v30 = vmul.f32 0.5, %v1292_v26 }
0x1962   :  { %v1305_v48 = vsub.f32 1.0, %v1293_v30 }
0x19c3   :  { %v1296_v21 = vpop.permute.xlu0 %1295 }
0x19c4   :  { %v1298_v31 = vmul.f32 %v1296_v21, %v1293_v30 }
0x19c6   :  { %1300 = vrot.lane.b32.xlu1 %v1298_v31, %s4012_s11 }
0x19d4   :  { %v1319_v8 = vpop.permute.xlu0 %1318 }
0x1a38   :  { %v1301_v35 = vpop.permute.xlu1 %1300 }
0x1a39   :  { %v1303_v39 = vadd.f32 %v1301_v35, %v1289_v10 }
0x1a3b   :  { %3905 = vtanh.f32 %v1303_v39 }
0x1a45   :  { %v3906_v41 = vpop.eup %3905 }
0x1a46   :  { %1307 = vrot.lane.b32.xlu1 %v3906_v41, %s4019_s9 }
0x1a4a   :  { %1312 = vrot.lane.b32.xlu1 %v1244_v63, %s4018_s8 }
0x1a4e   :  { %1379 = vperm.xlu1 %3792, %v4455_v24  }
0x1a52   :  { %3794 = vset.pattern.permute.xlu1 %v4049_v42 }
0x1a53   :  { %1389 = vperm.xlu1 %3794, %v4455_v24  }
0x1a57   :  { %3795 = vset.pattern.permute.xlu1 %v4050_v43 }
0x1a58   :  { %1394 = vperm.xlu1 %3795, %v4455_v24  }
0x1a5c   :  { %3797 = vset.pattern.permute.xlu1 %v4051_v44 }
0x1a5d   :  { %1404 = vperm.xlu1 %3797, %v4455_v24  }
0x1a61   :  { %3798 = vset.pattern.permute.xlu1 %v4053_v14 }
0x1a62   :  { %1409 = vperm.xlu1 %3798, %v4455_v24  }
0x1ab8   :  { %v1308_v46 = vpop.permute.xlu1 %1307 }
0x1ab9   :  { %v1310_v49 = vmul.f32 %v1308_v46, %v1305_v48 }
0x1abc   :  { %v1313_v57 = vpop.permute.xlu1 %1312 }
0x1abd   :  { %v1315_v50 = vmul.f32 %v1313_v57, %v1293_v30 }
0x1abf   :  { %v1316_v9 = vadd.f32 %v1315_v50, %v1310_v49 }
0x1ac1   :  { %v4465_v51 = vmul.f32 %v1319_v8, %v1316_v9  ;;  %v4056_v8 = vmov 73   ;;  %v4057_v9 = vmov 74  }
0x1ac3   :  { %v1322_v27 = vpack.c.bf16 %v4465_v51, %v4465_v51 }
0x1ac5   :  { %1324 = vrot.lane.b32.xlu0 %v1322_v27, %s4019_s9  ;;  %v4058_v27 = vmov 76  }
0x1ac9   :  { %1384 = vperm.xlu0 %3793, %v4455_v24  }
0x1acd   :  { %3796 = vset.pattern.permute.xlu0 %v4052_v52  ;;  %v1380_v17 = vpop.permute.xlu1 %1379  ;;  %v4060_v52 = vmov 79  }
0x1ace   :  { %1399 = vperm.xlu0 %3796, %v4455_v24   ;;  %v1382_v26 = vmul.f32 %v1380_v17, %v4254_v37  ;;  %v4062_v17 = vmov 78  }
0x1ad2   :  { %v1390_v6 = vpop.permute.xlu1 %1389 }
0x1ad3   :  { %v1392_v35 = vmul.f32 %v1390_v6, %v4324_v45 }
0x1ad7   :  { %v1395_v10 = vpop.permute.xlu1 %1394 }
0x1adc   :  { %v1405_v20 = vpop.permute.xlu1 %1404 }
0x1add   :  { %v1407_v39 = vmul.f32 %v1405_v20, %v4441_v53 }
0x1ae1   :  { %v1410_v38 = vpop.permute.xlu1 %1409 }
0x1b37   :  { %v1325_v55 = vpop.permute.xlu0 %1324 }
0x1b38   :  { %3461 = vmatmul.mubr.msk.bf16.vlgmr.msra.gmra.mrb[44].mxu0 %vm314_vm2, %v1325_v55 }
0x1b39   :  { %3476 = vmatprep.mubr.msk.bf16.mxu0 %vm4015_vm0, %v4014_v0 }
0x1b48   :  { %v1385_v13 = vpop.permute.xlu0 %1384 }
0x1b49   :  { %v1387_v23 = vmul.f32 %v1385_v13, %v4288_v33  ;;  %v3851_v13 = vld [vmem:[#allocation2 + $0x40] sm:$0xff]  }
0x1b4a   :  { %3473 = vmatpush3.bf16.msra.mxu0 %v3851_v13  ;;  %v4531_v13 = vld [vmem:[#allocation2 + $0x30] sm:$0xff]  }
0x1b4b   :  { %v1413_v41 = vadd.f32 %v1387_v23, %v1382_v26  ;;  %3474 = vmatprep.subr.bf16.mxu0 %v4014_v0 }
0x1b4d   :  { %v1400_v22 = vpop.permute.xlu0 %1399 }
0x1b4e   :  { %v1402_v30 = vmul.f32 %v1400_v22, %v4401_v34  ;;  %v4055_v34 = vmov 72  }
0x1b4f   :  { %3800 = vset.pattern.permute.xlu0 %v4055_v34 }
0x1b50   :  { %v1415_v43 = vadd.f32 %v1407_v39, %v1402_v30 }
0x1c0b   :  { %v1363_v58 = vpop.f32.mrb[44].mxu0 }
0x1c0c   :  { %v1364_v61 = vadd.f32 %v4250_v7, %v1363_v58  ;;  %v3462_v62 = vpop.f32.mrb[45].mxu0  ;;  %v1397_v7 = vmul.f32 %v1395_v10, %v4360_v54  ;;  %v4054_v54 = vmov 71  }
0x1c0d   :  { %v1366_v63 = vpop.f32.mrb[46].mxu0  ;;  %3799 = vset.pattern.permute.xlu1 %v4054_v54 }
0x1c0e   :  { %1374 = vrot.lane.b32.xlu0 %v1364_v61, %s4019_s9  ;;  %v3463_v1 = vpop.f32.mrb[47].mxu0  ;;  %v1369_v4 = vmul.f32 0.5, %v1364_v61  ;;  %v1414_v42 = vadd.f32 %v1397_v7, %v1392_v35 }
0x1c0f   :  { %v4061_v1 = vmov 75  }
0x1c10   :  { %3907 = vtanh.f32 %v1369_v4  ;;  %v1416_v46 = vadd.f32 %v1414_v42, %v1413_v41 }
0x1c1a   :  { %v3908_v15 = vpop.eup %3907 }
0x1c1b   :  { %v1371_v16 = vadd.f32 1.0, %v3908_v15  ;;  %v3852_v15 = vld [vmem:[#allocation2 + $0x48] sm:$0xff]  }
0x1c1c   :  { %3475 = vmatpush3.bf16.msra.mxu0 %v3852_v15  ;;  %v4541_v15 = vld [vmem:[#allocation2 + $0x20] sm:$0xff]  }
0x1c1d   :  { %v1372_v21 = vmul.f32 0.5, %v1371_v16  ;;  %3486 = vmatprep.subr.bf16.mxu0 %v4014_v0 }
0x1c80   :  { %v1375_v31 = vpop.permute.xlu0 %1374 }
0x1c81   :  { %v1377_v56 = vmul.f32 %v1375_v31, %v1372_v21 }
0x1c83   :  { %v1412_v44 = vmul.f32 %v1410_v38, %v1377_v56 }
0x1c85   :  { %v1417_v33 = vadd.f32 %v1415_v43, %v1412_v44 }
0x1c87   :  { %v1418_v48 = vadd.f32 %v1417_v33, %v1416_v46 }
0x1c89   :  { %v1419_v37 = vpack.c.bf16 %v1418_v48, %v1418_v48 }
0x1c8b   :  { %3469 = vmatmul.mubr.msk.bf16.vlgmr.msra.gmra.mrb[28].mxu1 %vm314_vm2, %v1419_v37 }
0x1c8c   :  { %3482 = vmatprep.mubr.msk.bf16.mxu1 %vm4015_vm0, %v4014_v0 }
0x1d5e   :  { %v1457_v45 = vpop.f32.mrb[28].mxu1 }
0x1d5f   :  { %v1463_v53 = vadd.f32 %v1457_v45, %v4191_v25  ;;  %v3470_v57 = vpop.f32.mrb[29].mxu1  ;;  %v4059_v25 = vmov 77  }
0x1d60   :  { %v1460_v49 = vpop.f32.mrb[30].mxu1 }
0x1d61   :  { %1469 = vrot.lane.b32.xlu1 %v1463_v53, %s4018_s8  ;;  %v3471_v50 = vpop.f32.mrb[31].mxu1  ;;  %v1464_v14 = vmul.f32 0.5, %v1463_v53 }
0x1d63   :  { %3909 = vtanh.f32 %v1464_v14 }
0x1d65   :  { %1492 = vperm.xlu1 %3799, %v4455_v24  }
0x1d69   :  { %3801 = vset.pattern.permute.xlu1 %v4056_v8 }
0x1d6a   :  { %1502 = vperm.xlu1 %3801, %v4455_v24  }
0x1d6d   :  { %v3910_v55 = vpop.eup %3909 }
0x1d6e   :  { %3802 = vset.pattern.permute.xlu1 %v4057_v9  ;;  %v1466_v58 = vadd.f32 1.0, %v3910_v55  ;;  %v1646_v55 = vld [vmem:[%s4982_s6] sm:$0xf] }
0x1d6f   :  { %1507 = vperm.xlu1 %3802, %v4455_v24  }
0x1d70   :  { %v1467_v61 = vmul.f32 0.5, %v1466_v58  ;;  %v1661_v58 = vsel %vm1659_vm3, %v1646_v55, 0 }
0x1d71   :  { %3481 = vmatpush3.bf16.msra.mxu1 %v1661_v58  ;;  %v4599_v58 = vld [vmem:[%s4981_s5 + $0x2] ss:$0 sm:$0xff] }
0x1d72   :  { %v1479_v35 = vsub.f32 1.0, %v1467_v61  ;;  %3494 = vmatprep.subr.bf16.mxu1 %v4014_v0 }
0x1d73   :  { %3804 = vset.pattern.permute.xlu1 %v4058_v27 }
0x1d74   :  { %1517 = vperm.xlu1 %3804, %v4455_v24  }
0x1d78   :  { %3805 = vset.pattern.permute.xlu1 %v4059_v25 }
0x1d79   :  { %1522 = vperm.xlu1 %3805, %v4455_v24  }
0x1d7d   :  { %3807 = vset.pattern.permute.xlu1 %v4060_v52 }
0x1d7e   :  { %1532 = vperm.xlu1 %3807, %v4455_v24  }
0x1d82   :  { %3809 = vset.pattern.permute.xlu1 %v4022_v47 }
0x1dd3   :  { %v1470_v62 = vpop.permute.xlu1 %1469 }
0x1dd4   :  { %v1472_v63 = vmul.f32 %v1470_v62, %v1467_v61  ;;  %v1609_v62 = vmul.f32 0.01, %v4455_v24 }
0x1dd6   :  { %1474 = vrot.lane.b32.xlu0 %v1472_v63, %s4012_s11 }
0x1dda   :  { %1497 = vperm.xlu0 %3800, %v4455_v24  }
0x1dde   :  { %3803 = vset.pattern.permute.xlu0 %v4061_v1 }
0x1ddf   :  { %1512 = vperm.xlu0 %3803, %v4455_v24  }
0x1de3   :  { %3806 = vset.pattern.permute.xlu0 %v4062_v17 }
0x1de4   :  { %1527 = vperm.xlu0 %3806, %v4455_v24   ;;  %v1493_v16 = vpop.permute.xlu1 %1492  ;;  %v4537_v24 = vld [vmem:[#allocation2 + $0x38] sm:$0xff]  }
0x1de8   :  { %1486 = vrot.lane.b32.xlu0 %v1418_v48, %s4018_s8 }
0x1de9   :  { %3808 = vset.pattern.permute.xlu0 %v4016_v11  ;;  %v1503_v20 = vpop.permute.xlu1 %1502 }
0x1dea   :  { %v1505_v37 = vmul.f32 %v1503_v20, %v4273_v5  ;;  %v3152_v20 = vld [vmem:[%s4981_s5 + $0x4] ss:$0 sm:$0xff] }
0x1dee   :  { %v1508_v22 = vpop.permute.xlu1 %1507 }
0x1def   :  { %v1510_v44 = vmul.f32 %v1508_v22, %v4306_v12 }
0x1df3   :  { %v1518_v26 = vpop.permute.xlu1 %1517 }
0x1df4   :  { %v1520_v54 = vmul.f32 %v1518_v26, %v4381_v19 }
0x1df8   :  { %v1523_v30 = vpop.permute.xlu1 %1522 }
0x1df9   :  { %v1525_v46 = vmul.f32 %v1523_v30, %v4420_v18 }
0x1dfb   :  { %v1538_v57 = vadd.f32 %v1525_v46, %v1520_v54 }
0x1dfd   :  { %v1533_v31 = vpop.permute.xlu1 %1532 }
0x1e48   :  { %v1475_v4 = vpop.permute.xlu0 %1474 }
0x1e49   :  { %v1477_v6 = vadd.f32 %v1475_v4, %v1463_v53 }
0x1e4b   :  { %3911 = vtanh.f32 %v1477_v6 }
0x1e55   :  { %v3912_v10 = vpop.eup %3911 }
0x1e56   :  { %1481 = vrot.lane.b32.xlu1 %v3912_v10, %s4019_s9 }
0x1e59   :  { %v1498_v23 = vpop.permute.xlu0 %1497 }
0x1e5a   :  { %v1500_v33 = vmul.f32 %v1498_v23, %v4225_v3  ;;  %v3148_v3 = vld [vmem:[%s4981_s5 + $0x3] ss:$0 sm:$0xff] }
0x1e5c   :  { %v1536_v49 = vadd.f32 %v1505_v37, %v1500_v33 }
0x1e5e   :  { %v1513_v7 = vpop.permute.xlu0 %1512 }
0x1e5f   :  { %v1515_v42 = vmul.f32 %v1513_v7, %v4343_v29 }
0x1e61   :  { %v1537_v34 = vadd.f32 %v1515_v42, %v1510_v44 }
0x1e63   :  { %v1528_v21 = vpop.permute.xlu0 %1527  ;;  %v1540_v29 = vadd.f32 %v1537_v34, %v1536_v49 }
0x1e64   :  { %v1530_v45 = vmul.f32 %v1528_v21, %v4465_v51 }
0x1e67   :  { %v1487_v38 = vpop.permute.xlu0 %1486 }
0x1e68   :  { %v1489_v41 = vmul.f32 %v1487_v38, %v1467_v61  ;;  %v3960_v38 = vld [vmem:[%s4981_s5 + $0x1] ss:$0 sm:$0xff] }
0x1ec8   :  { %v1482_v39 = vpop.permute.xlu1 %1481 }
0x1ec9   :  { %v1484_v56 = vmul.f32 %v1482_v39, %v1479_v35  ;;  %v281_v35 = vadd.f32 %v3960_v38, %v4195_v28  ;;  %v4565_v28 = vld [vmem:[%s4979_s3] sm:$0x3] }
0x1ecb   :  { %v1490_v43 = vadd.f32 %v1489_v41, %v1484_v56 }
0x1ecd   :  { %v1495_v48 = vmul.f32 %v1493_v16, %v1490_v43  ;;  %v4544_v16 = vld [vmem:[#allocation2 + $0x28] sm:$0xff]  }
0x1ecf   :  { %v1535_v53 = vmul.f32 %v1533_v31, %v1495_v48 }
0x1ed1   :  { %v1539_v50 = vadd.f32 %v1535_v53, %v1530_v45 }
0x1ed3   :  { %v1541_v8 = vadd.f32 %v1539_v50, %v1538_v57 }
0x1ed5   :  { %v1542_v9 = vadd.f32 %v1541_v8, %v1540_v29 }
0x1ed7   :  { %v1543_v12 = vpack.c.bf16 %v1542_v9, %v1542_v9 }
0x1ed9   :  { %1549 = vrot.lane.b32.xlu1 %v1543_v12, %s4019_s9 }
0x1f4b   :  { %v1550_v18 = vpop.permute.xlu1 %1549 }
0x1f4c   :  { %3477 = vmatmul.mubr.msk.bf16.vlgmr.msra.gmra.mrb[48].mxu0 %vm314_vm2, %v1550_v18 }
0x1f4d   :  { %3490 = vmatprep.mubr.msk.bf16.mxu0 %vm4015_vm0, %v4014_v0  ;;  %3487 = vmatpush3.bf16.msra.mxu0 %v4541_v15 }
0x1f4e   :  { %3488 = vmatprep.subr.bf16.mxu0 %v4014_v0 }
0x1f51   :  { %3489 = vmatpush3.bf16.msra.mxu0 %v4544_v16 }
0x1f52   :  { %3502 = vmatprep.subr.bf16.mxu0 %v4014_v0 }
0x201f   :  { %v1600_v5 = vpop.f32.mrb[48].mxu0 }
0x2020   :  { %v4519_v19 = vadd.f32 %v3148_v3, %v1600_v5  ;;  %v3478_v51 = vpop.f32.mrb[49].mxu0 }
0x2021   :  { %v1603_v27 = vpop.f32.mrb[50].mxu0  ;;  %v4578_v51 = vld [vmem:[#allocation2 + $0x50] sm:$0xff]  }
0x2022   :  { %v1606_v25 = vmul.f32 0.5, %v4519_v19  ;;  %1616 = vrot.lane.b32.xlu1 %v4519_v19, %s4063_s17  ;;  %v3479_v52 = vpop.f32.mrb[51].mxu0 }
0x2024   :  { %v1607_v14 = vmul.f32 1.442695, %v1606_v25  ;;  %v4582_v25 = vld [vmem:[#allocation2 + $0x58] sm:$0xff]  }
0x2026   :  { %3913 = vpow2.f32 %v1607_v14 }
0x2030   :  { %v4527_v61 = vpop.eup %3913 }
0x2031   :  { %1611 = vrot.lane.b32.xlu0 %v4527_v61, %s4064_s19  ;;  %s4076_s19 = smov [#allocation5]  }
0x2094   :  { %v1617_v17 = vpop.permute.xlu1 %1616 }
0x20a3   :  { %v1612_v63 = vpop.permute.xlu0 %1611 }
0x20a4   :  { %v1614_v1 = vmul.f32 %v1612_v63, %v1609_v62 }
0x20a6   :  { %v1619_v4 = vadd.f32 %v1617_v17, %v1614_v1 }
0x20a8   :  { %v1647_v6 = vpack.c.bf16 %v1619_v4, %v1619_v4 }
0x20aa   :  { %1653 = vrot.lane.b32.xlu0 %v1647_v6, %s4065_s20  ;;  %s3102_s20 = sshll.u32 %s4076_s19, 4  ;;  %s3103_s20 = int_to_ptr.vmem [resolvable:$true] %s3102_s20 }
0x20ab   :  { %s3985_s6 = scalar_lea.vmem %s3103_s20, 128  ;;  %p3990_p9 = scmp.lt.s32.totalorder %s3103_s20, %s3103_s20 }
0x20ac   :  { %p3986_p8 = scmp.ne.s32.totalorder %s3103_s20, %s3985_s6  ;;  %p3991_p10 = scmp.lt.s32.totalorder %s3985_s6, %s3985_s6 }
0x20ae   :  { %p3992_p11 = por %p3991_p10, %p3990_p9 }
0x20b0   :  { %p3993_p12 = pnand %p3992_p11, %p3986_p8 }
0x211c   :  { %v1654_v10 = vpop.permute.xlu0 %1653 }
0x211d   :  { %3483 = vmatmul.mubr.msk.bf16.vlgmr.msra.gmra.mrb[32].mxu1 %vm1655_vm4, %v1654_v10 }
0x211e   :  { %3495 = vmatpush3.bf16.msra.mxu1 %v4531_v13  ;;  %3498 = vmatprep.mubr.msk.bf16.mxu1 %vm4015_vm0, %v4014_v0 }
0x211f   :  { %3496 = vmatprep.subr.bf16.mxu1 %v4014_v0 }
0x2122   :  { %3497 = vmatpush3.bf16.msra.mxu1 %v4537_v24 }
0x2123   :  { %3510 = vmatprep.subr.bf16.mxu1 %v4014_v0 }
0x21f0   :  { %v1697_v22 = vpop.f32.mrb[32].mxu1 }
0x21f1   :  { %v1698_v23 = vadd.f32 %v3152_v20, %v1697_v22  ;;  %v3484_v26 = vpop.f32.mrb[33].mxu1 }
0x21f2   :  { %v1700_v7 = vpop.f32.mrb[34].mxu1 }
0x21f3   :  { %3915 = vtanh.f32 %v1698_v23  ;;  %v3485_v30 = vpop.f32.mrb[35].mxu1 }
0x21fd   :  { %v3916_v21 = vpop.eup %3915 }
0x21fe   :  { %v1704_v31 = vpack.c.bf16 %v3916_v21, %v3916_v21 }
0x2200   :  { %3491 = vmatmul.mubr.msk.bf16.vlgmr.msra.gmra.mrb[52].mxu0 %vm314_vm2, %v1704_v31 }
0x2201   :  { %3506 = vmatprep.mubr.msk.bf16.mxu0 %vm4015_vm0, %v4014_v0 }
0x22d3   :  { %v1754_v39 = vpop.f32.mrb[52].mxu0 }
0x22d4   :  { %v1760_v41 = vadd.f32 %v1754_v39, %v281_v35  ;;  %v3492_v56 = vpop.f32.mrb[53].mxu0 }
0x22d5   :  { %v1757_v42 = vpop.f32.mrb[54].mxu0 }
0x22d6   :  { %1766 = vrot.lane.b32.xlu1 %v1760_v41, %s4018_s8  ;;  %v3493_v43 = vpop.f32.mrb[55].mxu0  ;;  %v1761_v44 = vmul.f32 0.5, %v1760_v41 }
0x22d7   :  { %v4623_v43 = vld [vmem:[%s4979_s3 + $0x2] sm:$0x3] }
0x22d8   :  { %3917 = vtanh.f32 %v1761_v44 }
0x22e2   :  { %v3918_v46 = vpop.eup %3917 }
0x22e3   :  { %v1763_v33 = vadd.f32 1.0, %v3918_v46 }
0x22e5   :  { %v1764_v48 = vmul.f32 0.5, %v1763_v33 }
0x22e7   :  { %v1776_v49 = vsub.f32 1.0, %v1764_v48 }
0x2348   :  { %v1767_v37 = vpop.permute.xlu1 %1766 }
0x2349   :  { %v1769_v54 = vmul.f32 %v1767_v37, %v1764_v48 }
0x234b   :  { %1771 = vrot.lane.b32.xlu0 %v1769_v54, %s4012_s11 }
0x234f   :  { %1783 = vrot.lane.b32.xlu0 %v3916_v21, %s4018_s8 }
0x2353   :  { %1847 = vperm.xlu0 %3808, %v4565_v28  }
0x23bd   :  { %v1772_v34 = vpop.permute.xlu0 %1771 }
0x23be   :  { %v1774_v45 = vadd.f32 %v1772_v34, %v1760_v41 }
0x23c0   :  { %3919 = vtanh.f32 %v1774_v45 }
0x23c1   :  { %v1784_v57 = vpop.permute.xlu0 %1783 }
0x23c2   :  { %v1786_v29 = vmul.f32 %v1784_v57, %v1764_v48 }
0x23ca   :  { %v3920_v53 = vpop.eup %3919 }
0x23cb   :  { %1778 = vrot.lane.b32.xlu1 %v3920_v53, %s4019_s9  ;;  %v4067_v53 = vmov 9  }
0x23cc   :  { %3812 = vset.pattern.permute.xlu0 %v4067_v53 }
0x23d2   :  { %v1848_v18 = vpop.permute.xlu0 %1847 }
0x243d   :  { %v1779_v50 = vpop.permute.xlu1 %1778 }
0x243e   :  { %v1781_v8 = vmul.f32 %v1779_v50, %v1776_v49 }
0x2440   :  { %v4569_v9 = vadd.f32 %v1786_v29, %v1781_v8 }
0x2442   :  { %v1788_v12 = vpack.c.bf16 %v4569_v9, %v4569_v9  ;;  %v1850_v3 = vmul.f32 %v1848_v18, %v4569_v9 }
0x2444   :  { %1790 = vrot.lane.b32.xlu1 %v1788_v12, %s4019_s9  ;;  %v1856_v5 = vpack.c.bf16 %v1850_v3, %v1850_v3 }
0x2448   :  { %2105 = vperm.xlu1 %3809, %v4565_v28  }
0x244c   :  { %1917 = vrot.lane.b32.xlu1 %v1856_v5, %s4019_s9 }
0x244d   :  { %3810 = vset.pattern.permute.xlu1 %v4029_v2 }
0x24b6   :  { %v1791_v27 = vpop.permute.xlu1 %1790 }
0x24b7   :  { %3499 = vmatmul.mubr.msk.bf16.vlgmr.msra.gmra.mrb[36].mxu1 %vm314_vm2, %v1791_v27 }
0x24b8   :  { %3511 = vmatpush3.bf16.msra.mxu1 %v4578_v51  ;;  %3514 = vmatprep.mubr.msk.bf16.mxu1 %vm4015_vm0, %v4014_v0 }
0x24b9   :  { %3512 = vmatprep.subr.bf16.mxu1 %v4014_v0 }
0x24bc   :  { %3513 = vmatpush3.bf16.msra.mxu1 %v4582_v25 }
0x24bd   :  { %3538 = vmatprep.subr.bf16.mxu1 %v4014_v0 }
0x24c7   :  { %v2106_v52 = vpop.permute.xlu1 %2105 }
0x24cb   :  { %v1918_v14 = vpop.permute.xlu1 %1917 }
0x24cc   :  { %3515 = vmatmul.mubr.msk.bf16.vlgmr.msra.gmra.mrb[40].mxu1 %vm314_vm2, %v1918_v14  ;;  %v4647_v14 = vld [vmem:[#allocation2 + $0x68] sm:$0xff]  }
0x24cd   :  { %3539 = vmatpush3.bf16.msra.mxu1 %v4541_v15  ;;  %3542 = vmatprep.mubr.msk.bf16.mxu1 %vm4015_vm0, %v4014_v0 }
0x24ce   :  { %3540 = vmatprep.subr.bf16.mxu1 %v4014_v0 }
0x24d1   :  { %3541 = vmatpush3.bf16.msra.mxu1 %v4544_v16 }
0x24d2   :  { %3546 = vmatprep.subr.bf16.mxu1 %v4014_v0 }
0x258a   :  { %v1829_v55 = vpop.f32.mrb[36].mxu1 }
0x258b   :  { %v1830_v62 = vadd.f32 %v4599_v58, %v1829_v55  ;;  %v3500_v63 = vpop.f32.mrb[37].mxu1 }
0x258c   :  { %v1832_v1 = vpop.f32.mrb[38].mxu1 }
0x258d   :  { %1840 = vrot.lane.b32.xlu0 %v1830_v62, %s4019_s9  ;;  %v3501_v17 = vpop.f32.mrb[39].mxu1  ;;  %v1835_v22 = vmul.f32 0.5, %v1830_v62 }
0x258f   :  { %3921 = vtanh.f32 %v1835_v22 }
0x2599   :  { %v3922_v23 = vpop.eup %3921 }
0x259a   :  { %v1837_v26 = vadd.f32 1.0, %v3922_v23 }
0x259c   :  { %v1838_v7 = vmul.f32 0.5, %v1837_v26 }
0x259f   :  { %v4603_v4 = vpop.f32.mrb[40].mxu1 }
0x25a0   :  { %v3516_v6 = vpop.f32.mrb[41].mxu1 }
0x25a1   :  { %v1971_v10 = vpop.f32.mrb[42].mxu1 }
0x25a2   :  { %v3517_v20 = vpop.f32.mrb[43].mxu1 }
0x25ff   :  { %v1841_v30 = vpop.permute.xlu0 %1840 }
0x2600   :  { %v4605_v21 = vmul.f32 %v1841_v30, %v1838_v7 }
0x2602   :  { %v2108_v31 = vmul.f32 %v2106_v52, %v4605_v21  ;;  %v4643_v52 = vld [vmem:[#allocation2 + $0x60] sm:$0xff]  }
0x2603   :  { %3503 = vmatpush3.bf16.msra.mxu0 %v4643_v52 }
0x2604   :  { %v2109_v38 = vpack.c.bf16 %v2108_v31, %v2108_v31  ;;  %3504 = vmatprep.subr.bf16.mxu0 %v4014_v0 }
0x2606   :  { %3543 = vmatmul.mubr.msk.bf16.vlgmr.msra.gmra.mrb[44].mxu1 %vm314_vm2, %v2109_v38 }
0x2607   :  { %3547 = vmatpush3.bf16.msra.mxu1 %v4531_v13  ;;  %3550 = vmatprep.mubr.msk.bf16.mxu1 %vm4015_vm0, %v4014_v0 }
0x2608   :  { %3548 = vmatprep.subr.bf16.mxu1 %v4014_v0  ;;  %3505 = vmatpush3.bf16.msra.mxu0 %v4647_v14 }
0x2609   :  { %3518 = vmatprep.subr.bf16.mxu0 %v4014_v0 }
0x260b   :  { %3549 = vmatpush3.bf16.msra.mxu1 %v4537_v24 }
0x260c   :  { %3554 = vmatprep.subr.bf16.mxu1 %v4014_v0 }
0x26d9   :  { %v2147_v35 = vpop.f32.mrb[44].mxu1 }
0x26da   :  { %v2153_v39 = vadd.f32 %v2147_v35, %v4200_v32  ;;  %v3544_v41 = vpop.f32.mrb[45].mxu1  ;;  %v4066_v32 = vmov 1  }
0x26db   :  { %v2150_v56 = vpop.f32.mrb[46].mxu1 }
0x26dc   :  { %2159 = vrot.lane.b32.xlu1 %v2153_v39, %s4018_s8  ;;  %v3545_v42 = vpop.f32.mrb[47].mxu1  ;;  %v2154_v44 = vmul.f32 0.5, %v2153_v39 }
0x26de   :  { %3923 = vtanh.f32 %v2154_v44 }
0x26e0   :  { %2182 = vperm.xlu1 %3810, %v4565_v28  }
0x26e4   :  { %2176 = vrot.lane.b32.xlu1 %v2108_v31, %s4018_s8 }
0x26e5   :  { %3811 = vset.pattern.permute.xlu1 %v4020_v60 }
0x26e8   :  { %2257 = vperm.xlu1 %3811, %v4623_v43   ;;  %v3924_v46 = vpop.eup %3923 }
0x26e9   :  { %v2156_v33 = vadd.f32 1.0, %v3924_v46 }
0x26eb   :  { %v2157_v48 = vmul.f32 0.5, %v2156_v33 }
0x26ec   :  { %3813 = vset.pattern.permute.xlu1 %v4016_v11 }
0x26ed   :  { %2246 = vperm.xlu1 %3813, %v4623_v43   ;;  %v2169_v29 = vsub.f32 1.0, %v2157_v48 }
0x26f1   :  { %3814 = vset.pattern.permute.xlu1 %v4066_v32 }
0x26f2   :  { %2251 = vperm.xlu1 %3814, %v4623_v43  }
0x26f6   :  { %3815 = vset.pattern.permute.xlu1 %v4022_v47 }
0x26f7   :  { %2435 = vperm.xlu1 %3815, %v4623_v43  }
0x26fb   :  { %3818 = vset.pattern.permute.xlu1 %v4020_v60 }
0x274e   :  { %v2160_v37 = vpop.permute.xlu1 %2159 }
0x274f   :  { %v2162_v54 = vmul.f32 %v2160_v37, %v2157_v48 }
0x2751   :  { %2164 = vrot.lane.b32.xlu0 %v2162_v54, %s4012_s11 }
0x275f   :  { %v2183_v49 = vpop.permute.xlu1 %2182 }
0x2763   :  { %v2177_v50 = vpop.permute.xlu1 %2176 }
0x2764   :  { %v2179_v12 = vmul.f32 %v2177_v50, %v2157_v48 }
0x2767   :  { %v2258_v62 = vpop.permute.xlu1 %2257 }
0x2768   :  { %v2260_v1 = vmul.f32 %v2258_v62, %v4569_v9 }
0x276c   :  { %v2247_v22 = vpop.permute.xlu1 %2246 }
0x276d   :  { %v2249_v7 = vmul.f32 %v2247_v22, %v4569_v9 }
0x2771   :  { %v2252_v23 = vpop.permute.xlu1 %2251 }
0x2776   :  { %v2436_v33 = vpop.permute.xlu1 %2435 }
0x27c3   :  { %v2165_v34 = vpop.permute.xlu0 %2164 }
0x27c4   :  { %v2167_v45 = vadd.f32 %v2165_v34, %v2153_v39 }
0x27c6   :  { %3925 = vtanh.f32 %v2167_v45 }
0x27d0   :  { %v3926_v57 = vpop.eup %3925 }
0x27d1   :  { %2171 = vrot.lane.b32.xlu0 %v3926_v57, %s4019_s9 }
0x2843   :  { %v2172_v8 = vpop.permute.xlu0 %2171 }
0x2844   :  { %v2174_v18 = vmul.f32 %v2172_v8, %v2169_v29 }
0x2846   :  { %v2180_v3 = vadd.f32 %v2179_v12, %v2174_v18 }
0x2848   :  { %v4636_v5 = vmul.f32 %v2183_v49, %v2180_v3  ;;  %v2438_v49 = vmul.f32 %v2436_v33, %v4605_v21 }
0x284a   :  { %v2186_v27 = vpack.c.bf16 %v4636_v5, %v4636_v5  ;;  %v2254_v26 = vmul.f32 %v2252_v23, %v4636_v5 }
0x284c   :  { %2188 = vrot.lane.b32.xlu0 %v2186_v27, %s4019_s9  ;;  %v2255_v35 = vadd.f32 %v2254_v26, %v2249_v7 }
0x284e   :  { %v2267_v56 = vpack.c.bf16 %v2255_v35, %v2255_v35  ;;  %v4705_v35 = vld [vmem:[%s4979_s3 + $0x4] sm:$0x3] }
0x2850   :  { %2262 = vperm.xlu0 %3812, %v4623_v43  }
0x2854   :  { %3816 = vset.pattern.permute.xlu0 %v4023_v59 }
0x28be   :  { %v2189_v55 = vpop.permute.xlu0 %2188 }
0x28bf   :  { %3551 = vmatmul.mubr.msk.bf16.vlgmr.msra.gmra.mrb[48].mxu1 %vm314_vm2, %v2189_v55 }
0x28c0   :  { %3555 = vmatpush3.bf16.msra.mxu1 %v4643_v52  ;;  %3558 = vmatprep.mubr.msk.bf16.mxu1 %vm4015_vm0, %v4014_v0 }
0x28c1   :  { %3556 = vmatprep.subr.bf16.mxu1 %v4014_v0 }
0x28c4   :  { %3557 = vmatpush3.bf16.msra.mxu1 %v4647_v14 }
0x28c5   :  { %3562 = vmatprep.subr.bf16.mxu1 %v4014_v0 }
0x28cf   :  { %v2263_v63 = vpop.permute.xlu0 %2262 }
0x28d0   :  { %v2265_v17 = vmul.f32 %v2263_v63, %v4636_v5 }
0x28d2   :  { %v2266_v6 = vadd.f32 %v2265_v17, %v2260_v1 }
0x28d4   :  { %v2268_v10 = vpack.c.bf16 %v2266_v6, %v2266_v6 }
0x28d6   :  { %2270 = vrot.lane.b32.xlu0 %v2268_v10, %s4019_s9 }
0x28da   :  { %2440 = vperm.xlu0 %3816, %v4623_v43  }
0x28de   :  { %3817 = vset.pattern.permute.xlu0 %v4029_v2 }
0x2948   :  { %v2271_v20 = vpop.permute.xlu0 %2270 }
0x2949   :  { %3559 = vmatmul.mubr.msk.bf16.vlgmr.msra.gmra.mrb[52].mxu1 %vm314_vm2, %v2271_v20 }
0x294a   :  { %3563 = vmatpush3.bf16.msra.mxu1 %v4578_v51  ;;  %3566 = vmatprep.mubr.msk.bf16.mxu1 %vm4015_vm0, %v4014_v0 }
0x294b   :  { %3564 = vmatprep.subr.bf16.mxu1 %v4014_v0 }
0x294e   :  { %3565 = vmatpush3.bf16.msra.mxu1 %v4582_v25 }
0x294f   :  { %3590 = vmatprep.subr.bf16.mxu1 %v4014_v0 }
0x2959   :  { %v2441_v54 = vpop.permute.xlu0 %2440 }
0x2992   :  { %v2227_v30 = vpop.f32.mrb[48].mxu1 }
0x2993   :  { %v2228_v31 = vadd.f32 %v4599_v58, %v2227_v30  ;;  %v3552_v38 = vpop.f32.mrb[49].mxu1 }
0x2994   :  { %v2230_v39 = vpop.f32.mrb[50].mxu1 }
0x2995   :  { %2238 = vrot.lane.b32.xlu1 %v2228_v31, %s4019_s9  ;;  %v3553_v41 = vpop.f32.mrb[51].mxu1  ;;  %v2233_v42 = vmul.f32 0.5, %v2228_v31  ;;  %v4068_v39 = vmov 10  }
0x2996   :  { %v4069_v41 = vmov 2  }
0x2997   :  { %3927 = vtanh.f32 %v2233_v42 }
0x2999   :  { %2316 = vrot.lane.b32.xlu1 %v2267_v56, %s4019_s9 }
0x29a1   :  { %v3928_v44 = vpop.eup %3927 }
0x29a2   :  { %v2235_v46 = vadd.f32 1.0, %v3928_v44 }
0x29a4   :  { %v2236_v48 = vmul.f32 0.5, %v2235_v46 }
0x2a07   :  { %v2239_v37 = vpop.permute.xlu1 %2238 }
0x2a08   :  { %v4675_v34 = vmul.f32 %v2239_v37, %v2236_v48 }
0x2a0a   :  { %v2443_v45 = vmul.f32 %v2441_v54, %v4675_v34 }
0x2a0b   :  { %v2317_v57 = vpop.permute.xlu1 %2316 }
0x2a0c   :  { %3567 = vmatmul.mubr.msk.bf16.vlgmr.msra.gmra.mrb[56].mxu1 %vm314_vm2, %v2317_v57  ;;  %v2444_v50 = vadd.f32 %v2443_v45, %v2438_v49 }
0x2a0d   :  { %3591 = vmatpush3.bf16.msra.mxu1 %v4541_v15  ;;  %3594 = vmatprep.mubr.msk.bf16.mxu1 %vm4015_vm0, %v4014_v0 }
0x2a0e   :  { %3592 = vmatprep.subr.bf16.mxu1 %v4014_v0  ;;  %v2445_v29 = vpack.c.bf16 %v2444_v50, %v2444_v50 }
0x2a11   :  { %3593 = vmatpush3.bf16.msra.mxu1 %v4544_v16 }
0x2a12   :  { %3598 = vmatprep.subr.bf16.mxu1 %v4014_v0 }
0x2a14   :  { %3595 = vmatmul.mubr.msk.bf16.vlgmr.msra.gmra.mrb[60].mxu1 %vm314_vm2, %v2445_v29 }
0x2a15   :  { %3599 = vmatpush3.bf16.msra.mxu1 %v4531_v13  ;;  %3602 = vmatprep.mubr.msk.bf16.mxu1 %vm4015_vm0, %v4014_v0 }
0x2a16   :  { %3600 = vmatprep.subr.bf16.mxu1 %v4014_v0 }
0x2a19   :  { %3601 = vmatpush3.bf16.msra.mxu1 %v4537_v24 }
0x2a1a   :  { %3606 = vmatprep.subr.bf16.mxu1 %v4014_v0 }
0x2a1c   :  { %v2309_v8 = vpop.f32.mrb[52].mxu1 }
0x2a1d   :  { %v3560_v12 = vpop.f32.mrb[53].mxu1 }
0x2a1e   :  { %v2312_v18 = vpop.f32.mrb[54].mxu1 }
0x2a1f   :  { %v3561_v3 = vpop.f32.mrb[55].mxu1 }
0x2adf   :  { %v2355_v27 = vpop.f32.mrb[56].mxu1 }
0x2ae0   :  { %v4693_v55 = vadd.f32 %v2355_v27, %v2309_v8  ;;  %v3568_v62 = vpop.f32.mrb[57].mxu1 }
0x2ae1   :  { %v2358_v63 = vpop.f32.mrb[58].mxu1 }
0x2ae2   :  { %v3569_v1 = vpop.f32.mrb[59].mxu1 }
0x2ae7   :  { %v2483_v13 = vpop.f32.mrb[60].mxu1 }
0x2ae8   :  { %v2489_v17 = vadd.f32 %v2483_v13, %v4207_v36  ;;  %v3596_v6 = vpop.f32.mrb[61].mxu1 }
0x2ae9   :  { %v2486_v10 = vpop.f32.mrb[62].mxu1 }
0x2aea   :  { %2495 = vrot.lane.b32.xlu0 %v2489_v17, %s4018_s8  ;;  %v3597_v24 = vpop.f32.mrb[63].mxu1  ;;  %v2490_v20 = vmul.f32 0.5, %v2489_v17 }
0x2aec   :  { %3929 = vtanh.f32 %v2490_v20 }
0x2aee   :  { %2518 = vperm.xlu0 %3817, %v4623_v43  }
0x2af2   :  { %3819 = vset.pattern.permute.xlu0 %v4067_v53 }
0x2af6   :  { %v3930_v22 = vpop.eup %3929 }
0x2af7   :  { %v2492_v23 = vadd.f32 1.0, %v3930_v22 }
0x2af9   :  { %v2493_v26 = vmul.f32 0.5, %v2492_v23 }
0x2afb   :  { %v2505_v42 = vsub.f32 1.0, %v2493_v26 }
0x2b5c   :  { %v2496_v7 = vpop.permute.xlu0 %2495 }
0x2b5d   :  { %v2498_v30 = vmul.f32 %v2496_v7, %v2493_v26 }
0x2b5f   :  { %2500 = vrot.lane.b32.xlu1 %v2498_v30, %s4012_s11 }
0x2b6d   :  { %v2519_v48 = vpop.permute.xlu0 %2518 }
0x2bd1   :  { %v2501_v31 = vpop.permute.xlu1 %2500 }
0x2bd2   :  { %v2503_v36 = vadd.f32 %v2501_v31, %v2489_v17 }
0x2bd4   :  { %3931 = vtanh.f32 %v2503_v36 }
0x2bde   :  { %v3932_v38 = vpop.eup %3931 }
0x2bdf   :  { %2507 = vrot.lane.b32.xlu1 %v3932_v38, %s4019_s9 }
0x2be3   :  { %2512 = vrot.lane.b32.xlu1 %v2444_v50, %s4018_s8 }
0x2be7   :  { %2599 = vperm.xlu1 %3818, %v4705_v35  }
0x2beb   :  { %3820 = vset.pattern.permute.xlu1 %v4068_v39 }
0x2bec   :  { %2609 = vperm.xlu1 %3820, %v4705_v35  }
0x2bf0   :  { %3821 = vset.pattern.permute.xlu1 %v4016_v11 }
0x2bf1   :  { %2582 = vperm.xlu1 %3821, %v4705_v35  }
0x2bf5   :  { %3823 = vset.pattern.permute.xlu1 %v4069_v41 }
0x2bf6   :  { %2592 = vperm.xlu1 %3823, %v4705_v35  }
0x2bfa   :  { %3825 = vset.pattern.permute.xlu1 %v4023_v59  ;;  %v4070_v59 = vmov 18  }
0x2bfb   :  { %2788 = vperm.xlu1 %3825, %v4705_v35  }
0x2bff   :  { %3826 = vset.pattern.permute.xlu1 %v4070_v59 }
0x2c51   :  { %v2508_v56 = vpop.permute.xlu1 %2507 }
0x2c52   :  { %v2510_v46 = vmul.f32 %v2508_v56, %v2505_v42 }
0x2c55   :  { %v2513_v44 = vpop.permute.xlu1 %2512 }
0x2c56   :  { %v2515_v33 = vmul.f32 %v2513_v44, %v2493_v26 }
0x2c58   :  { %v2516_v37 = vadd.f32 %v2515_v33, %v2510_v46 }
0x2c5a   :  { %v4716_v54 = vmul.f32 %v2519_v48, %v2516_v37 }
0x2c5c   :  { %v2522_v45 = vpack.c.bf16 %v4716_v54, %v4716_v54 }
0x2c5e   :  { %2524 = vrot.lane.b32.xlu0 %v2522_v45, %s4019_s9 }
0x2c62   :  { %2604 = vperm.xlu0 %3819, %v4705_v35  }
0x2c66   :  { %3822 = vset.pattern.permute.xlu0 %v4066_v32  ;;  %v2600_v49 = vpop.permute.xlu1 %2599 }
0x2c67   :  { %2587 = vperm.xlu0 %3822, %v4705_v35   ;;  %v2602_v8 = vmul.f32 %v2600_v49, %v4569_v9 }
0x2c6b   :  { %3824 = vset.pattern.permute.xlu0 %v4022_v47  ;;  %v2610_v47 = vpop.permute.xlu1 %2609 }
0x2c6c   :  { %2783 = vperm.xlu0 %3824, %v4705_v35   ;;  %v2612_v18 = vmul.f32 %v2610_v47, %v4716_v54 }
0x2c70   :  { %3827 = vset.pattern.permute.xlu0 %v4020_v60  ;;  %v2583_v50 = vpop.permute.xlu1 %2582 }
0x2c71   :  { %v2585_v63 = vmul.f32 %v2583_v50, %v4569_v9 }
0x2c75   :  { %v2593_v1 = vpop.permute.xlu1 %2592 }
0x2c76   :  { %v2595_v10 = vmul.f32 %v2593_v1, %v4716_v54 }
0x2c7a   :  { %v2789_v22 = vpop.permute.xlu1 %2788 }
0x2cd0   :  { %v2525_v57 = vpop.permute.xlu0 %2524 }
0x2cd1   :  { %3603 = vmatmul.mubr.msk.bf16.vlgmr.msra.gmra.mrb[64].mxu1 %vm314_vm2, %v2525_v57 }
0x2cd2   :  { %3607 = vmatpush3.bf16.msra.mxu1 %v4643_v52  ;;  %3610 = vmatprep.mubr.msk.bf16.mxu1 %vm4015_vm0, %v4014_v0 }
0x2cd3   :  { %3608 = vmatprep.subr.bf16.mxu1 %v4014_v0 }
0x2cd6   :  { %3609 = vmatpush3.bf16.msra.mxu1 %v4647_v14 }
0x2cd7   :  { %3614 = vmatprep.subr.bf16.mxu1 %v4014_v0 }
0x2ce1   :  { %v2605_v29 = vpop.permute.xlu0 %2604 }
0x2ce2   :  { %v2607_v12 = vmul.f32 %v2605_v29, %v4636_v5 }
0x2ce4   :  { %v2613_v3 = vadd.f32 %v2607_v12, %v2602_v8 }
0x2ce6   :  { %v2614_v27 = vadd.f32 %v2613_v3, %v2612_v18  ;;  %v2588_v62 = vpop.permute.xlu0 %2587 }
0x2ce7   :  { %v2590_v13 = vmul.f32 %v2588_v62, %v4636_v5 }
0x2ce8   :  { %v2616_v17 = vpack.c.bf16 %v2614_v27, %v2614_v27 }
0x2ce9   :  { %v2596_v6 = vadd.f32 %v2590_v13, %v2585_v63  ;;  %v4777_v63 = vld [vmem:[%s4979_s3 + $0x6] sm:$0x3] }
0x2cea   :  { %2618 = vrot.lane.b32.xlu1 %v2616_v17, %s4019_s9 }
0x2ceb   :  { %v2597_v24 = vadd.f32 %v2596_v6, %v2595_v10  ;;  %v2784_v44 = vpop.permute.xlu0 %2783 }
0x2cec   :  { %v2786_v46 = vmul.f32 %v2784_v44, %v4605_v21 }
0x2ced   :  { %v2615_v20 = vpack.c.bf16 %v2597_v24, %v2597_v24 }
0x2cee   :  { %2793 = vperm.xlu1 %3826, %v4705_v35  }
0x2cf2   :  { %2664 = vrot.lane.b32.xlu1 %v2615_v20, %s4019_s9 }
0x2cf3   :  { %3828 = vset.pattern.permute.xlu1 %v4029_v2 }
0x2d5c   :  { %v2619_v23 = vpop.permute.xlu1 %2618 }
0x2d5d   :  { %3611 = vmatmul.mubr.msk.bf16.vlgmr.msra.gmra.mrb[68].mxu1 %vm314_vm2, %v2619_v23 }
0x2d5e   :  { %3615 = vmatpush3.bf16.msra.mxu1 %v4578_v51  ;;  %3618 = vmatprep.mubr.msk.bf16.mxu1 %vm4015_vm0, %v4014_v0 }
0x2d5f   :  { %3616 = vmatprep.subr.bf16.mxu1 %v4014_v0 }
0x2d62   :  { %3617 = vmatpush3.bf16.msra.mxu1 %v4582_v25 }
0x2d63   :  { %3642 = vmatprep.subr.bf16.mxu1 %v4014_v0 }
0x2d6d   :  { %v2794_v26 = vpop.permute.xlu1 %2793 }
0x2d71   :  { %v2665_v7 = vpop.permute.xlu1 %2664 }
0x2d72   :  { %3619 = vmatmul.mubr.msk.bf16.vlgmr.msra.gmra.mrb[72].mxu1 %vm314_vm2, %v2665_v7 }
0x2d73   :  { %3643 = vmatpush3.bf16.msra.mxu1 %v4541_v15  ;;  %3646 = vmatprep.mubr.msk.bf16.mxu1 %vm4015_vm0, %v4014_v0 }
0x2d74   :  { %3644 = vmatprep.subr.bf16.mxu1 %v4014_v0 }
0x2d77   :  { %3645 = vmatpush3.bf16.msra.mxu1 %v4544_v16  ;;  %v2791_v16 = vmul.f32 %v2789_v22, %v4675_v34 }
0x2d78   :  { %3650 = vmatprep.subr.bf16.mxu1 %v4014_v0 }
0x2d79   :  { %v2797_v45 = vadd.f32 %v2791_v16, %v2786_v46 }
0x2da4   :  { %v2563_v2 = vpop.f32.mrb[64].mxu1 }
0x2da5   :  { %v2564_v30 = vadd.f32 %v4599_v58, %v2563_v2  ;;  %v3604_v31 = vpop.f32.mrb[65].mxu1 }
0x2da6   :  { %v2566_v36 = vpop.f32.mrb[66].mxu1  ;;  %v4799_v31 = vld [vmem:[#allocation2 + $0x70] sm:$0xff]  }
0x2da7   :  { %2574 = vrot.lane.b32.xlu0 %v2564_v30, %s4019_s9  ;;  %v3605_v38 = vpop.f32.mrb[67].mxu1  ;;  %v2569_v56 = vmul.f32 0.5, %v2564_v30 }
0x2da8   :  { %v4803_v38 = vld [vmem:[#allocation2 + $0x78] sm:$0xff]  }
0x2da9   :  { %3933 = vtanh.f32 %v2569_v56  ;;  %v4809_v56 = vld [vmem:[#allocation2 + $0x80] sm:$0xff]  }
0x2db3   :  { %v3934_v15 = vpop.eup %3933 }
0x2db4   :  { %v2571_v42 = vadd.f32 1.0, %v3934_v15  ;;  %v4813_v15 = vld [vmem:[#allocation2 + $0x88] sm:$0xff]  }
0x2db6   :  { %v2572_v33 = vmul.f32 0.5, %v2571_v42  ;;  %v4817_v42 = vld [vmem:[#allocation2 + $0x90] sm:$0xff]  }
0x2e19   :  { %v2575_v48 = vpop.permute.xlu0 %2574 }
0x2e1a   :  { %v2577_v37 = vmul.f32 %v2575_v48, %v2572_v33  ;;  %v4822_v48 = vld [vmem:[#allocation2 + $0x98] sm:$0xff]  }
0x2e1c   :  { %v2796_v59 = vmul.f32 %v2794_v26, %v2577_v37 }
0x2e1e   :  { %v2798_v58 = vadd.f32 %v2797_v45, %v2796_v59  ;;  %v4826_v59 = vld [vmem:[#allocation2 + $0xa0] sm:$0xff]  }
0x2e20   :  { %v2799_v57 = vpack.c.bf16 %v2798_v58, %v2798_v58 }
0x2e22   :  { %3647 = vmatmul.mubr.msk.bf16.vlgmr.msra.gmra.mrb[76].mxu1 %vm314_vm2, %v2799_v57 }
0x2e23   :  { %3651 = vmatpush3.bf16.msra.mxu1 %v4643_v52  ;;  %3654 = vmatprep.mubr.msk.bf16.mxu1 %vm4015_vm0, %v4014_v0 }
0x2e24   :  { %3652 = vmatprep.subr.bf16.mxu1 %v4014_v0 }
0x2e27   :  { %3653 = vmatpush3.bf16.msra.mxu1 %v4647_v14 }
0x2e28   :  { %3658 = vmatprep.subr.bf16.mxu1 %v4014_v0 }
0x2e30   :  { %v2657_v21 = vpop.f32.mrb[68].mxu1 }
0x2e31   :  { %v3612_v34 = vpop.f32.mrb[69].mxu1 }
0x2e32   :  { %v2660_v49 = vpop.f32.mrb[70].mxu1 }
0x2e33   :  { %v3613_v47 = vpop.f32.mrb[71].mxu1 }
0x2e34   :  { %v4833_v47 = vld [vmem:[#allocation2 + $0xa8] sm:$0xff]  }
0x2e45   :  { %v2703_v50 = vpop.f32.mrb[72].mxu1 }
0x2e46   :  { %v4769_v29 = vadd.f32 %v2703_v50, %v2657_v21  ;;  %v3620_v8 = vpop.f32.mrb[73].mxu1 }
0x2e47   :  { %v2706_v12 = vpop.f32.mrb[74].mxu1 }
0x2e48   :  { %v3621_v18 = vpop.f32.mrb[75].mxu1 }
0x2ef5   :  { %v2837_v52 = vpop.f32.mrb[76].mxu1 }
0x2ef6   :  { %v2843_v3 = vadd.f32 %v2837_v52, %v4210_v40  ;;  %v3648_v27 = vpop.f32.mrb[77].mxu1 }
0x2ef7   :  { %v2840_v62 = vpop.f32.mrb[78].mxu1 }
0x2ef8   :  { %2849 = vrot.lane.b32.xlu0 %v2843_v3, %s4018_s8  ;;  %v3649_v14 = vpop.f32.mrb[79].mxu1  ;;  %v2844_v1 = vmul.f32 0.5, %v2843_v3 }
0x2efa   :  { %3935 = vtanh.f32 %v2844_v1 }
0x2efc   :  { %1852 = vperm.xlu0 %3827, %v4565_v28  }
0x2f00   :  { %3830 = vset.pattern.permute.xlu0 %v4067_v53 }
0x2f01   :  { %2908 = vperm.xlu0 %3830, %v4777_v63  }
0x2f04   :  { %v3936_v40 = vpop.eup %3935 }
0x2f05   :  { %3833 = vset.pattern.permute.xlu0 %v4016_v11  ;;  %v2846_v13 = vadd.f32 1.0, %v3936_v40  ;;  %v4071_v11 = vmov 11  }
0x2f07   :  { %v2847_v17 = vmul.f32 0.5, %v2846_v13 }
0x2f09   :  { %v2859_v46 = vsub.f32 1.0, %v2847_v17 }
0x2f6a   :  { %v2850_v6 = vpop.permute.xlu0 %2849 }
0x2f6b   :  { %v2852_v10 = vmul.f32 %v2850_v6, %v2847_v17 }
0x2f6d   :  { %2854 = vrot.lane.b32.xlu1 %v2852_v10, %s4012_s11 }
0x2f71   :  { %2872 = vperm.xlu1 %3828, %v4705_v35  }
0x2f75   :  { %3829 = vset.pattern.permute.xlu1 %v4020_v60 }
0x2f76   :  { %2903 = vperm.xlu1 %3829, %v4777_v63  }
0x2f7a   :  { %3831 = vset.pattern.permute.xlu1 %v4068_v39 }
0x2f7b   :  { %2913 = vperm.xlu1 %3831, %v4777_v63   ;;  %v1853_v28 = vpop.permute.xlu0 %1852 }
0x2f7c   :  { %v1855_v53 = vmul.f32 %v1853_v28, %v4569_v9 }
0x2f7e   :  { %v1857_v60 = vpack.c.bf16 %v1855_v53, %v1855_v53 }
0x2f7f   :  { %3832 = vset.pattern.permute.xlu1 %v4071_v11 }
0x2f80   :  { %2918 = vperm.xlu1 %3832, %v4777_v63   ;;  %v2909_v44 = vpop.permute.xlu0 %2908 }
0x2f81   :  { %v2911_v21 = vmul.f32 %v2909_v44, %v4636_v5 }
0x2f84   :  { %2866 = vrot.lane.b32.xlu1 %v2798_v58, %s4018_s8 }
0x2f85   :  { %3834 = vset.pattern.permute.xlu1 %v4066_v32  ;;  %v4072_v32 = vmov 3  }
0x2f88   :  { %2885 = vperm.xlu1 %3834, %v4777_v63  }
0x2f8c   :  { %3835 = vset.pattern.permute.xlu1 %v4069_v41 }
0x2f8d   :  { %2890 = vperm.xlu1 %3835, %v4777_v63  }
0x2f91   :  { %1859 = vrot.lane.b32.xlu1 %v1857_v60, %s4019_s9 }
0x2fdf   :  { %v2855_v39 = vpop.permute.xlu1 %2854 }
0x2fe0   :  { %v2857_v24 = vadd.f32 %v2855_v39, %v2843_v3 }
0x2fe2   :  { %3937 = vtanh.f32 %v2857_v24 }
0x2fec   :  { %v3938_v20 = vpop.eup %3937 }
0x2fed   :  { %2861 = vrot.lane.b32.xlu0 %v3938_v20, %s4019_s9 }
0x2ff0   :  { %v2873_v22 = vpop.permute.xlu1 %2872 }
0x2ff1   :  { %2880 = vperm.xlu0 %3833, %v4777_v63  }
0x2ff5   :  { %3836 = vset.pattern.permute.xlu0 %v4072_v32  ;;  %v2904_v23 = vpop.permute.xlu1 %2903 }
0x2ff6   :  { %2895 = vperm.xlu0 %3836, %v4777_v63   ;;  %v2906_v58 = vmul.f32 %v2904_v23, %v4569_v9 }
0x2ff8   :  { %v2922_v50 = vadd.f32 %v2911_v21, %v2906_v58 }
0x2ffa   :  { %v2914_v41 = vpop.permute.xlu1 %2913  ;;  %3837 = vset.pattern.permute.xlu0 %v4071_v11  ;;  %v4851_v11 = vld [vmem:[%s4981_s5 + $0x5] ss:$0 sm:$0xff] }
0x2ffb   :  { %v2916_v34 = vmul.f32 %v2914_v41, %v4716_v54 }
0x2fff   :  { %v2919_v26 = vpop.permute.xlu1 %2918 }
0x3003   :  { %v2867_v7 = vpop.permute.xlu1 %2866 }
0x3004   :  { %v2869_v16 = vmul.f32 %v2867_v7, %v2847_v17 }
0x3007   :  { %v2886_v2 = vpop.permute.xlu1 %2885 }
0x3008   :  { %v2888_v62 = vmul.f32 %v2886_v2, %v4636_v5  ;;  %v3165_v2 = vld [vmem:[%s4981_s5 + $0x6] ss:$0 sm:$0xff]  ;;  %s4073_s5 = smov 8  }
0x300c   :  { %v2891_v30 = vpop.permute.xlu1 %2890 }
0x300d   :  { %v2893_v14 = vmul.f32 %v2891_v30, %v4716_v54 }
0x3010   :  { %v1860_v36 = vpop.permute.xlu1 %1859 }
0x3011   :  { %3507 = vmatmul.mubr.msk.bf16.vlgmr.msra.gmra.mrb[56].mxu0 %vm314_vm2, %v1860_v36 }
0x3012   :  { %3519 = vmatpush3.bf16.msra.mxu0 %v4799_v31  ;;  %3534 = vmatprep.mubr.msk.bf16.mxu0 %vm4015_vm0, %v4014_v0 }
0x3013   :  { %3520 = vmatprep.subr.bf16.mxu0 %v4014_v0 }
0x3016   :  { %3521 = vmatpush3.bf16.msra.mxu0 %v4803_v38 }
0x3017   :  { %3522 = vmatprep.subr.bf16.mxu0 %v4014_v0 }
0x301a   :  { %3523 = vmatpush3.bf16.msra.mxu0 %v4809_v56 }
0x301b   :  { %3524 = vmatprep.subr.bf16.mxu0 %v4014_v0 }
0x301e   :  { %3525 = vmatpush3.bf16.msra.mxu0 %v4813_v15 }
0x301f   :  { %3526 = vmatprep.subr.bf16.mxu0 %v4014_v0 }
0x3022   :  { %3527 = vmatpush3.bf16.msra.mxu0 %v4817_v42 }
0x3023   :  { %3528 = vmatprep.subr.bf16.mxu0 %v4014_v0 }
0x3026   :  { %3529 = vmatpush3.bf16.msra.mxu0 %v4822_v48 }
0x3027   :  { %3530 = vmatprep.subr.bf16.mxu0 %v4014_v0 }
0x302a   :  { %3531 = vmatpush3.bf16.msra.mxu0 %v4826_v59 }
0x302b   :  { %3532 = vmatprep.subr.bf16.mxu0 %v4014_v0 }
0x302e   :  { %3533 = vmatpush3.bf16.msra.mxu0 %v4833_v47 }
0x302f   :  { %3570 = vmatprep.subr.bf16.mxu0 %v4014_v0 }
0x305f   :  { %v2862_v33 = vpop.permute.xlu0 %2861 }
0x3060   :  { %v2864_v37 = vmul.f32 %v2862_v33, %v2859_v46 }
0x3062   :  { %v2870_v45 = vadd.f32 %v2869_v16, %v2864_v37 }
0x3064   :  { %v2875_v57 = vmul.f32 %v2873_v22, %v2870_v45 }
0x3066   :  { %v2921_v49 = vmul.f32 %v2919_v26, %v2875_v57 }
0x3068   :  { %v2923_v8 = vadd.f32 %v2921_v49, %v2916_v34 }
0x306a   :  { %v2924_v12 = vadd.f32 %v2923_v8, %v2922_v50 }
0x306c   :  { %v2926_v18 = vpack.c.bf16 %v2924_v12, %v2924_v12 }
0x306e   :  { %2928 = vrot.lane.b32.xlu1 %v2926_v18, %s4019_s9  ;;  %v1621_v18 = vmul.f32 %v4519_v19, %v4519_v19 }
0x3070   :  { %v2881_v52 = vpop.permute.xlu0 %2880 }
0x3071   :  { %v2883_v3 = vmul.f32 %v2881_v52, %v4569_v9  ;;  %v3962_v52 = vld [vmem:[%s4979_s3] sm:$0x3]  ;;  %s4075_s3 = smov 120  }
0x3073   :  { %v2899_v40 = vadd.f32 %v2888_v62, %v2883_v3 }
0x3075   :  { %v2896_v27 = vpop.permute.xlu0 %2895 }
0x3076   :  { %v2898_v1 = vmul.f32 %v2896_v27, %v2875_v57 }
0x3078   :  { %v2900_v13 = vadd.f32 %v2898_v1, %v2893_v14  ;;  %v1620_v1 = vadd.f32 1.0, %v4519_v19 }
0x307a   :  { %v2901_v17 = vadd.f32 %v2900_v13, %v2899_v40 }
0x307c   :  { %v2925_v6 = vpack.c.bf16 %v2901_v17, %v2901_v17 }
0x307e   :  { %2974 = vrot.lane.b32.xlu0 %v2925_v6, %s4019_s9  ;;  %v1627_v6 = vmul.f32 %v4527_v61, %v4527_v61 }
0x30e0   :  { %v2929_v10 = vpop.permute.xlu1 %2928 }
0x30e1   :  { %3655 = vmatmul.mubr.msk.bf16.vlgmr.msra.gmra.mrb[80].mxu1 %vm314_vm2, %v2929_v10 }
0x30e2   :  { %3659 = vmatpush3.bf16.msra.mxu1 %v4578_v51  ;;  %3662 = vmatprep.mubr.msk.bf16.mxu1 %vm4015_vm0, %v4014_v0 }
0x30e3   :  { %3660 = vmatprep.subr.bf16.mxu1 %v4014_v0 }
0x30e4   :  { %v1910_v9 = vpop.f32.mrb[56].mxu0 }
0x30e5   :  { %v1969_v5 = vadd.f32 %v4603_v4, %v1910_v9  ;;  %v3508_v54 = vpop.f32.mrb[57].mxu0 }
0x30e6   :  { %v1913_v28 = vpop.f32.mrb[58].mxu0  ;;  %3661 = vmatpush3.bf16.msra.mxu1 %v4582_v25  ;;  %v2361_v25 = vadd.f32 %v4851_v11, %v4693_v55  ;;  %v2709_v55 = vadd.f32 %v4851_v11, %v4769_v29 }
0x30e7   :  { %v1978_v53 = vadd.f32 %v4851_v11, %v1969_v5  ;;  %v3509_v51 = vpop.f32.mrb[59].mxu0  ;;  %3666 = vmatprep.subr.bf16.mxu1 %v4014_v0 }
0x30e8   :  { %v2362_v24 = vmax.f32 %v2361_v25, 0.0  ;;  %v2710_v22 = vmax.f32 %v2709_v55, 0.0 }
0x30e9   :  { %v1979_v60 = vmax.f32 %v1978_v53, 0.0 }
0x30ea   :  { %v2363_v20 = vpack.c.bf16 %v2362_v24, %v2362_v24  ;;  %v2711_v32 = vpack.c.bf16 %v2710_v22, %v2710_v22 }
0x30eb   :  { %v1980_v39 = vpack.c.bf16 %v1979_v60, %v1979_v60 }
0x30ed   :  { %3535 = vmatmul.mubr.bf16.vlgmr.msra.gmra.mrb[60].mxu0 %v1980_v39 }
0x30ee   :  { %3571 = vmatpush3.bf16.msra.mxu0 %v4799_v31  ;;  %3586 = vmatprep.mubr.msk.bf16.mxu0 %vm4015_vm0, %v4014_v0 }
0x30ef   :  { %3572 = vmatprep.subr.bf16.mxu0 %v4014_v0 }
0x30f0   :  { %v2975_v4 = vpop.permute.xlu0 %2974 }
0x30f1   :  { %3663 = vmatmul.mubr.msk.bf16.vlgmr.msra.gmra.mrb[84].mxu1 %vm314_vm2, %v2975_v4 }
0x30f2   :  { %3573 = vmatpush3.bf16.msra.mxu0 %v4803_v38  ;;  %3667 = vmatpush3.bf16.msra.mxu1 %v4799_v31 }
0x30f3   :  { %3574 = vmatprep.subr.bf16.mxu0 %v4014_v0  ;;  %3668 = vmatprep.subr.bf16.mxu1 %v4014_v0 }
0x30f4   :  { %3682 = vmatprep.mubr.msk.bf16.mxu1 %vm4015_vm0, %v4014_v0 }
0x30f6   :  { %3575 = vmatpush3.bf16.msra.mxu0 %v4809_v56  ;;  %3669 = vmatpush3.bf16.msra.mxu1 %v4803_v38 }
0x30f7   :  { %3576 = vmatprep.subr.bf16.mxu0 %v4014_v0  ;;  %3670 = vmatprep.subr.bf16.mxu1 %v4014_v0 }
0x30fa   :  { %3577 = vmatpush3.bf16.msra.mxu0 %v4813_v15  ;;  %3671 = vmatpush3.bf16.msra.mxu1 %v4809_v56 }
0x30fb   :  { %3578 = vmatprep.subr.bf16.mxu0 %v4014_v0  ;;  %3672 = vmatprep.subr.bf16.mxu1 %v4014_v0 }
0x30fe   :  { %3579 = vmatpush3.bf16.msra.mxu0 %v4817_v42  ;;  %3673 = vmatpush3.bf16.msra.mxu1 %v4813_v15 }
0x30ff   :  { %3580 = vmatprep.subr.bf16.mxu0 %v4014_v0  ;;  %3674 = vmatprep.subr.bf16.mxu1 %v4014_v0 }
0x3102   :  { %3581 = vmatpush3.bf16.msra.mxu0 %v4822_v48  ;;  %3675 = vmatpush3.bf16.msra.mxu1 %v4817_v42 }
0x3103   :  { %3582 = vmatprep.subr.bf16.mxu0 %v4014_v0  ;;  %3676 = vmatprep.subr.bf16.mxu1 %v4014_v0 }
0x3106   :  { %3583 = vmatpush3.bf16.msra.mxu0 %v4826_v59  ;;  %3677 = vmatpush3.bf16.msra.mxu1 %v4822_v48 }
0x3107   :  { %3584 = vmatprep.subr.bf16.mxu0 %v4014_v0  ;;  %3678 = vmatprep.subr.bf16.mxu1 %v4014_v0 }
0x310a   :  { %3585 = vmatpush3.bf16.msra.mxu0 %v4833_v47  ;;  %3679 = vmatpush3.bf16.msra.mxu1 %v4826_v59 }
0x310b   :  { %3622 = vmatprep.subr.bf16.mxu0 %v4014_v0  ;;  %3680 = vmatprep.subr.bf16.mxu1 %v4014_v0 }
0x310d   :  { %3587 = vmatmul.mubr.bf16.vlgmr.msra.gmra.mrb[64].mxu0 %v2363_v20 }
0x310e   :  { %3623 = vmatpush3.bf16.msra.mxu0 %v4799_v31  ;;  %3638 = vmatprep.mubr.msk.bf16.mxu0 %vm4015_vm0, %v4014_v0 }
0x310f   :  { %3624 = vmatprep.subr.bf16.mxu0 %v4014_v0  ;;  %3681 = vmatpush3.bf16.msra.mxu1 %v4833_v47 }
0x3112   :  { %3625 = vmatpush3.bf16.msra.mxu0 %v4803_v38 }
0x3113   :  { %3626 = vmatprep.subr.bf16.mxu0 %v4014_v0 }
0x3116   :  { %3627 = vmatpush3.bf16.msra.mxu0 %v4809_v56 }
0x3117   :  { %3628 = vmatprep.subr.bf16.mxu0 %v4014_v0 }
0x311a   :  { %3629 = vmatpush3.bf16.msra.mxu0 %v4813_v15 }
0x311b   :  { %3630 = vmatprep.subr.bf16.mxu0 %v4014_v0 }
0x311e   :  { %3631 = vmatpush3.bf16.msra.mxu0 %v4817_v42 }
0x311f   :  { %3632 = vmatprep.subr.bf16.mxu0 %v4014_v0 }
0x3122   :  { %3633 = vmatpush3.bf16.msra.mxu0 %v4822_v48 }
0x3123   :  { %3634 = vmatprep.subr.bf16.mxu0 %v4014_v0 }
0x3126   :  { %3635 = vmatpush3.bf16.msra.mxu0 %v4826_v59 }
0x3127   :  { %3636 = vmatprep.subr.bf16.mxu0 %v4014_v0 }
0x312a   :  { %3637 = vmatpush3.bf16.msra.mxu0 %v4833_v47 }
0x312d   :  { %3639 = vmatmul.mubr.bf16.vlgmr.msra.gmra.mrb[68].mxu0 %v2711_v32 }
0x31b4   :  { %v2967_v23 = vpop.f32.mrb[80].mxu1 }
0x31b5   :  { %v3656_v41 = vpop.f32.mrb[81].mxu1 }
0x31b6   :  { %v2970_v26 = vpop.f32.mrb[82].mxu1 }
0x31b7   :  { %v3657_v7 = vpop.f32.mrb[83].mxu1 }
0x31c0   :  { %v2067_v29 = vpop.f32.mrb[60].mxu0 }
0x31c1   :  { %v4916_v30 = vadd.f32 %v3165_v2, %v2067_v29  ;;  %v3536_v31 = vpop.f32.mrb[61].mxu0 }
0x31c2   :  { %v2070_v36 = vpop.f32.mrb[62].mxu0 }
0x31c3   :  { %v3537_v38 = vpop.f32.mrb[63].mxu0  ;;  %v2074_v0 = vsel %vm2073_vm5, %v4916_v30, -inf }
0x31c4   :  { %2075 = vmax.xlane.f32.xlu1 %v2074_v0  ;;  %v3013_v56 = vpop.f32.mrb[84].mxu1 }
0x31c5   :  { %v3014_v15 = vadd.f32 %v3013_v56, %v2967_v23  ;;  %v3664_v42 = vpop.f32.mrb[85].mxu1 }
0x31c6   :  { %v3016_v44 = vpop.f32.mrb[86].mxu1 }
0x31c7   :  { %v3019_v46 = vadd.f32 %v4851_v11, %v3014_v15  ;;  %v3665_v33 = vpop.f32.mrb[87].mxu1 }
0x31c9   :  { %v3020_v48 = vmax.f32 %v3019_v46, 0.0 }
0x31cb   :  { %v3021_v16 = vpack.c.bf16 %v3020_v48, %v3020_v48 }
0x31cd   :  { %3683 = vmatmul.mubr.bf16.vlgmr.msra.gmra.mrb[88].mxu1 %v3021_v16 }
0x31e0   :  { %v2398_v37 = vpop.f32.mrb[64].mxu0 }
0x31e1   :  { %v4921_v45 = vadd.f32 %v3165_v2, %v2398_v37  ;;  %v3588_v59 = vpop.f32.mrb[65].mxu0 }
0x31e2   :  { %v2401_v58 = vpop.f32.mrb[66].mxu0 }
0x31e3   :  { %v3589_v57 = vpop.f32.mrb[67].mxu0  ;;  %v2404_v21 = vsel %vm2073_vm5, %v4921_v45, -inf }
0x31e4   :  { %2405 = vmax.xlane.f32.xlu0 %v2404_v21 }
0x3200   :  { %v2746_v34 = vpop.f32.mrb[68].mxu0 }
0x3201   :  { %v4925_v49 = vadd.f32 %v3165_v2, %v2746_v34  ;;  %v3640_v47 = vpop.f32.mrb[69].mxu0 }
0x3202   :  { %v2749_v50 = vpop.f32.mrb[70].mxu0 }
0x3203   :  { %v3641_v8 = vpop.f32.mrb[71].mxu0  ;;  %v2752_v12 = vsel %vm2073_vm5, %v4925_v49, -inf }
0x3204   :  { %2753 = vmax.xlane.f32.xlu0 %v2752_v12 }
0x321a   :  { %1623 = vrot.lane.b32.xlu0 %v1621_v18, %s4073_s5 }
0x321e   :  { %2088 = vrot.lane.b32.xlu0 %v3962_v52, %s4074_s15 }
0x3222   :  { %2418 = vrot.lane.b32.xlu0 %v4623_v43, %s4074_s15 }
0x3226   :  { %2766 = vrot.lane.b32.xlu0 %v4705_v35, %s4074_s15 }
0x322a   :  { %3076 = vrot.lane.b32.xlu0 %v4777_v63, %s4074_s15 }
0x3251   :  { %v2076_v27 = vpop.xlane.xlu1 %2075 }
0x3252   :  { %v2077_v14 = vsub.f32 %v4916_v30, %v2076_v27 }
0x3254   :  { %v2078_v13 = vmul.f32 1.442695, %v2077_v14 }
0x3256   :  { %3939 = vpow2.f32 %v2078_v13 }
0x3260   :  { %v3940_v61 = vpop.eup %3939 }
0x3261   :  { %v2080_v51 = vsel %vm2073_vm5, %v3940_v61, 0.0 }
0x3271   :  { %v2406_v3 = vpop.xlane.xlu0 %2405 }
0x3272   :  { %v2407_v17 = vsub.f32 %v4921_v45, %v2406_v3 }
0x3274   :  { %v2408_v35 = vmul.f32 1.442695, %v2407_v17 }
0x3276   :  { %3941 = vpow2.f32 %v2408_v35 }
0x3280   :  { %v3942_v60 = vpop.eup %3941 }
0x3281   :  { %v2410_v39 = vsel %vm2073_vm5, %v3942_v60, 0.0 }
0x3291   :  { %v4937_v62 = vpop.xlane.xlu0 %2753 }
0x3292   :  { %v2755_v63 = vsub.f32 %v4925_v49, %v4937_v62 }
0x3294   :  { %v2756_v9 = vmul.f32 1.442695, %v2755_v63 }
0x3295   :  { %v1624_v40 = vpop.permute.xlu0 %1623 }
0x3296   :  { %v1626_v43 = vsub.f32 %v1620_v1, %v1624_v40  ;;  %3943 = vpow2.f32 %v2756_v9 }
0x3298   :  { %v1628_v10 = vsub.f32 %v1626_v43, %v1627_v6 }
0x3299   :  { %v2089_v29 = vpop.permute.xlu0 %2088 }
0x329d   :  { %v2419_v44 = vpop.permute.xlu0 %2418 }
0x32a0   :  { %v3056_v5 = vpop.f32.mrb[88].mxu1  ;;  %v3944_v4 = vpop.eup %3943 }
0x32a1   :  { %v4946_v54 = vadd.f32 %v3165_v2, %v3056_v5  ;;  %v3684_v19 = vpop.f32.mrb[89].mxu1  ;;  %v2758_v25 = vsel %vm2073_vm5, %v3944_v4, 0.0  ;;  %v2767_v34 = vpop.permute.xlu0 %2766 }
0x32a2   :  { %v3059_v11 = vpop.f32.mrb[90].mxu1 }
0x32a3   :  { %v3685_v28 = vpop.f32.mrb[91].mxu1  ;;  %v3062_v53 = vsel %vm2073_vm5, %v4946_v54, -inf }
0x32a4   :  { %3063 = vmax.xlane.f32.xlu1 %v3062_v53 }
0x32a5   :  { %v3077_v14 = vpop.permute.xlu0 %3076 }
0x32a8   :  { %2081 = vadd.xlane.f32.xlu1 %v2080_v51 }
0x32ac   :  { %2411 = vadd.xlane.f32.xlu1 %v2410_v39 }
0x32b0   :  { %2759 = vadd.xlane.f32.xlu1 %v2758_v25 }
0x3331   :  { %v3064_v24 = vpop.xlane.xlu1 %3063 }
0x3332   :  { %v3065_v20 = vsub.f32 %v4946_v54, %v3064_v24 }
0x3334   :  { %v3066_v55 = vmul.f32 1.442695, %v3065_v20 }
0x3335   :  { %v2082_v22 = vpop.xlane.xlu1 %2081 }
0x3336   :  { %3945 = vpow2.f32 %v3066_v55 }
0x3337   :  { %3947 = vlog2.f32 %v2082_v22 }
0x3339   :  { %v2412_v32 = vpop.xlane.xlu1 %2411 }
0x333a   :  { %3949 = vlog2.f32 %v2412_v32 }
0x333d   :  { %v2760_v37 = vpop.xlane.xlu1 %2759 }
0x333e   :  { %3951 = vlog2.f32 %v2760_v37 }
0x3340   :  { %v3946_v23 = vpop.eup %3945 }
0x3341   :  { %v3948_v41 = vpop.eup %3947  ;;  %v3068_v26 = vsel %vm2073_vm5, %v3946_v23, 0.0 }
0x3342   :  { %v2084_v7 = vmul.f32 0.6931472, %v3948_v41  ;;  %3069 = vadd.xlane.f32.xlu1 %v3068_v26 }
0x3344   :  { %v3950_v2 = vpop.eup %3949  ;;  %v2085_v31 = vadd.f32 %v2084_v7, %v2076_v27 }
0x3345   :  { %v2414_v36 = vmul.f32 0.6931472, %v3950_v2 }
0x3346   :  { %v2086_v38 = vsub.f32 %v4916_v30, %v2085_v31 }
0x3347   :  { %v2415_v0 = vadd.f32 %v2414_v36, %v2406_v3 }
0x3348   :  { %v2087_v56 = vsub.f32 0.0, %v2086_v38  ;;  %v3952_v59 = vpop.eup %3951 }
0x3349   :  { %v2416_v15 = vsub.f32 %v4921_v45, %v2415_v0  ;;  %v2762_v30 = vmul.f32 0.6931472, %v3952_v59 }
0x334a   :  { %v2091_v42 = vmul.f32 %v2089_v29, %v2087_v56 }
0x334b   :  { %v2417_v46 = vsub.f32 0.0, %v2416_v15  ;;  %v2763_v58 = vadd.f32 %v2762_v30, %v4937_v62 }
0x334c   :  { %v2092_v33 = vsel %vm2073_vm5, %v2091_v42, 0.0 }
0x334d   :  { %v2421_v48 = vmul.f32 %v2419_v44, %v2417_v46  ;;  %2093 = vadd.xlane.f32.xlu0 %v2092_v33  ;;  %v2764_v45 = vsub.f32 %v4925_v49, %v2763_v58 }
0x334f   :  { %v2422_v16 = vsel %vm2073_vm5, %v2421_v48, 0.0  ;;  %v2765_v21 = vsub.f32 0.0, %v2764_v45 }
0x3351   :  { %2423 = vadd.xlane.f32.xlu0 %v2422_v16  ;;  %v2769_v50 = vmul.f32 %v2767_v34, %v2765_v21 }
0x3353   :  { %1630 = vrot.lane.b32.xlu1 %v1628_v10, %s4075_s3  ;;  %v2770_v12 = vsel %vm2073_vm5, %v2769_v50, 0.0 }
0x33cf   :  { %v3070_v57 = vpop.xlane.xlu1 %3069 }
0x33d0   :  { %3953 = vlog2.f32 %v3070_v57 }
0x33d3   :  { %v1631_v47 = vpop.permute.xlu1 %1630 }
0x33d4   :  { %v1634_v8 = vsel %vm1633_vm6, %v1631_v47, 0.0 }
0x33d5   :  { %1635 = vadd.xlane.f32.xlu1 %v1634_v8 }
0x33d9   :  { %2771 = vadd.xlane.f32.xlu1 %v2770_v12 }
0x33da   :  { %v3954_v18 = vpop.eup %3953  ;;  %v2094_v40 = vpop.xlane.xlu0 %2093 }
0x33db   :  { %v3072_v52 = vmul.f32 0.6931472, %v3954_v18  ;;  %v2095_v17 = vrot.slane %v2094_v40, 4 }
0x33dd   :  { %v3073_v3 = vadd.f32 %v3072_v52, %v3064_v24  ;;  %v2096_v43 = vadd.f32 %v2095_v17, %v2094_v40 }
0x33de   :  { %v2424_v13 = vpop.xlane.xlu0 %2423 }
0x33df   :  { %v3074_v27 = vsub.f32 %v4946_v54, %v3073_v3  ;;  %v2425_v6 = vrot.slane %v2424_v13, 4  ;;  %v2097_v35 = vrot.slane %v2096_v43, 2 }
0x33e1   :  { %v3075_v62 = vsub.f32 0.0, %v3074_v27  ;;  %v2426_v10 = vadd.f32 %v2425_v6, %v2424_v13  ;;  %v2098_v28 = vadd.f32 %v2097_v35, %v2096_v43 }
0x33e3   :  { %v3079_v49 = vmul.f32 %v3077_v14, %v3075_v62  ;;  %v2427_v9 = vrot.slane %v2426_v10, 2  ;;  %v2099_v39 = vrot.slane %v2098_v28, 1 }
0x33e5   :  { %v3080_v1 = vsel %vm2073_vm5, %v3079_v49, 0.0  ;;  %v2428_v61 = vadd.f32 %v2427_v9, %v2426_v10  ;;  %v2100_v22 = vadd.f32 %v2099_v39, %v2098_v28 }
0x33e6   :  { %3081 = vadd.xlane.f32.xlu0 %v3080_v1 }
0x33e7   :  { %v2429_v24 = vrot.slane %v2428_v61, 1 }
0x33e9   :  { %v2430_v32 = vadd.f32 %v2429_v24, %v2428_v61 }
0x3462   :  { %v1636_v63 = vpop.xlane.xlu1 %1635 }
0x3463   :  { %v1637_v5 = vrot.slane %v1636_v63, 4 }
0x3465   :  { %v1638_v19 = vadd.f32 %v1637_v5, %v1636_v63 }
0x3466   :  { %v2772_v11 = vpop.xlane.xlu1 %2771 }
0x3467   :  { %v1639_v54 = vrot.slane %v1638_v19, 2  ;;  %v2773_v53 = vrot.slane %v2772_v11, 4 }
0x3469   :  { %v2774_v51 = vadd.f32 %v2773_v53, %v2772_v11  ;;  %v1640_v60 = vadd.f32 %v1639_v54, %v1638_v19 }
0x346b   :  { %v2775_v4 = vrot.slane %v2774_v51, 2  ;;  %v1641_v25 = vrot.slane %v1640_v60, 1 }
0x346d   :  { %v2776_v20 = vadd.f32 %v2775_v4, %v2774_v51  ;;  %v1642_v55 = vadd.f32 %v1641_v25, %v1640_v60 }
0x346f   :  { %3688 = vpush %v1642_v55  ;;  %v2777_v23 = vrot.slane %v2776_v20, 1 }
0x3470   :  { %3690 = vpush %v2100_v22 }
0x3471   :  { %3692 = vpush %v2430_v32  ;;  %v2778_v41 = vadd.f32 %v2777_v23, %v2776_v20 }
0x3473   :  { %v3082_v26 = vpop.xlane.xlu0 %3081  ;;  %3694 = vpush %v2778_v41 }
0x3474   :  { %v3083_v7 = vrot.slane %v3082_v26, 4 }
0x3476   :  { %v3084_v2 = vadd.f32 %v3083_v7, %v3082_v26 }
0x3478   :  { %v3085_v29 = vrot.slane %v3084_v2, 2 }
0x347a   :  { %v3086_v31 = vadd.f32 %v3085_v29, %v3084_v2 }
0x347c   :  { %v3087_v36 = vrot.slane %v3086_v31, 1 }
0x347e   :  { %v3088_v38 = vadd.f32 %v3087_v36, %v3086_v31 }
0x3480   :  { %3696 = vpush %v3088_v38 }
0x34a0   :  { %s3689_s2 = spop %3688 }
0x34a1   :  { %s3691_s16 = spop %3690  ;;  %v1644_v0 = vstv %s3689_s2 }
0x34a2   :  { %s3693_s17 = spop %3692  ;;  %v2102_v56 = vstv %s3691_s16  ;;  %v1645_v44 = vmul.f32 -0.5, %v1644_v0 }
0x34a3   :  { %v2432_v15 = vstv %s3693_s17 }
0x34a4   :  { %s3695_s18 = spop %3694  ;;  %v2433_v46 = vadd.f32 %v2432_v15, %v2102_v56  ;;  %v3092_v16 = vmul.f32 0.001, %v1645_v44 }
0x34a5   :  { %v2780_v42 = vstv %s3695_s18 }
0x34a6   :  { %v2781_v33 = vadd.f32 %v2780_v42, %v2433_v46 }
0x34b1   :  { %s3697_s4 = spop %3696 }
0x34b2   :  { %v3090_v48 = vstv %s3697_s4 }
0x34b3   :  { %v3091_v37 = vadd.f32 %v3090_v48, %v2781_v33 }
0x34b5   :  { %v3093_v59 = vadd.f32 %v3092_v16, %v3091_v37 }
0x34b7   :  { %3095 = vst [vmem:[#allocation5] sm:$0xff] %v3093_v59 }
0x34b8   :  { %3996 = shalt.err (!%p3993_p12)
}
0x34b9   :  { %s3997_s23 = scalar_lea.hbm %s4983_s7, 128 }
0x34ba   :  { %p3998_p13 = scmp.ne.s32.totalorder %s4983_s7, %s3997_s23  ;;  %p4001_p0 = scmp.lt.u32.totalorder %s3997_s23, %s4983_s7 }
0x34bc   :  { %p4003_p1 = pnand %p4001_p0, %p3998_p13 }
0x34be   :  { %4006 = shalt.err (!%p4003_p1)
}
0x34bf   :  { %3105 = dma.vmem_to_hbm [thread:$0]  %s3103_s20, 128, %s4983_s7, [#allocation4]  }
0x34c0   :  { %4009 = dma.done.wait [#allocation4], 128  }
0x34c1   :  { %4010 = vsyncadd [#allocation4], 4294967168 }
0x34c2   :  { %3109 = vsyncpa [#allocation3], 1 }
0x34c3   :  { %3110 = vsyncpa [#allocation4], 1 }

</bundles_post_ra>
